<compile_context>
chip_gen: v5e
topology: v5e:2x2
jax: 0.10.0
libtpu: 0.0.40
codegen_flags: <defaults>
</compile_context>

<pallas_src>
import functools

import jax
import jax.numpy as jnp
from jax.experimental import pallas as pl
from jax.experimental.pallas import tpu as pltpu


def _attention_kernel(x_ref, wqkv_ref, bqkv_ref, wo_ref, bo_ref, out_ref):
    H = x_ref.shape[-1]
    scale = H ** -0.5

    # One fused (TB, H) @ (H, 3H) projection on the MXU; f32 accumulation.
    # x is cast to the weight dtype in-kernel (VPU convert, no extra XLA op).
    x = x_ref[...].astype(wqkv_ref.dtype)
    qkv = jnp.dot(x, wqkv_ref[...],
                  preferred_element_type=jnp.float32) + bqkv_ref[...]
    q = qkv[:, :H] * scale          # fold 1/sqrt(H) into the small (TB,H) q
    k = qkv[:, H:2 * H]
    v = qkv[:, 2 * H:]

    # Closed-form row max of s[b,i,j] = q[b,i]*k[b,j] (q already scaled):
    #   m[b,i] = q>=0 ? q*max_j k : q*min_j k   -- exact, (TB,H) work only.
    k_max = jnp.max(k, axis=-1, keepdims=True)       # (TB, 1)
    k_min = jnp.min(k, axis=-1, keepdims=True)       # (TB, 1)
    m = jnp.where(q >= 0.0, q * k_max, q * k_min)    # (TB, H)

    # TODO(synk): if H is ever scaled up, stream (TB,H,tj) score panels
    # flash-style instead of materializing the full (TB,H,H) tensor.
    s = q[:, :, None] * k[:, None, :]                # (TB, H, H) f32
    e = jnp.exp(s - m[:, :, None])                   # (TB, H, H) f32

    # Single traversal of e: reduce it against a stacked [v, 1] RHS on the
    # (otherwise idle) MXU -> both weighted sum and row sum in one pass.
    vo = jnp.concatenate([v[:, :, None], jnp.ones_like(v)[:, :, None]],
                         axis=-1)                    # (TB, H, 2)
    both = jnp.einsum("bij,bjc->bic", e, vo,
                      preferred_element_type=jnp.float32)   # (TB, H, 2)
    acc = both[:, :, 0]                              # (TB, H)
    denom = both[:, :, 1]                            # (TB, H)
    attn = acc * pl.reciprocal(denom)                # exact recip, tiny tensor

    # TODO(synk): nn.Dropout(0.2) is identity in eval mode; training-mode
    # dropout (pltpu.prng_*) not implemented here.

    # Output projection: keep attn in f32; up-cast (tiny) wo tile instead of
    # down-casting the activations.
    out = jnp.dot(attn, wo_ref[...].astype(jnp.float32),
                  preferred_element_type=jnp.float32) + bo_ref[...]
    out_ref[...] = out.astype(out_ref.dtype)

    # TODO(synk): with H=32 the output store is a masked vst (32/128 lanes);
    # a lane-dense (B/4, 4H) slab relayout only pays off at much larger B.


def _default_tb(B, H, vmem_budget_bytes=24 << 20):
    """Largest batch tile whose (tb,H,H) score temporaries fit a conservative
    VMEM budget.  For small problems this returns the whole batch -> grid=(1,)
    (per-step overhead ~0.35us dwarfs the compute at B=16, H=32)."""
    per_row = 3 * H * H * 4 + 16 * H * 4     # s/e/temporary f32 + row tensors
    max_rows = max(1, vmem_budget_bytes // per_row)
    if B <= max_rows:
        return B
    best = 1
    for d in range(1, max_rows + 1):         # trace-time only; cheap
        if B % d == 0:
            best = d
    return best


def prepare_attention_params(wq, bq, wk, bk, wv, bv, wo, bo,
                             matmul_dtype=jnp.bfloat16):
    """Fuse / transpose / cast the nn.Linear parameters ONCE at model init.

    w*: (H, H) nn.Linear weights (out, in);  b*: (H,).
    matmul_dtype: MXU operand dtype for the projections (bf16 is native on
    v5e/v6e/v7x); biases and all softmax math stay f32.
    """
    H = wq.shape[0]
    wqkv_t = jnp.concatenate([wq.T, wk.T, wv.T], axis=1).astype(matmul_dtype)
    bqkv = jnp.concatenate([bq, bk, bv]).astype(jnp.float32).reshape(1, 3 * H)
    wo_t = wo.T.astype(matmul_dtype)
    bo2 = bo.astype(jnp.float32).reshape(1, H)
    return wqkv_t, bqkv, wo_t, bo2


@functools.partial(jax.jit, static_argnames=("tb",))
def attention_forward(x, wqkv_t, bqkv, wo_t, bo2, *, tb=None):
    """Eval-mode forward.  x: (B, H) f32; fused params from
    prepare_attention_params (no per-call weight prep)."""
    B, H = x.shape
    assert wqkv_t.shape == (H, 3 * H)
    if tb is None:
        tb = _default_tb(B, H)
    assert B % tb == 0, "batch must be divisible by the batch tile"
    steps = B // tb

    # Explicit scoped-VMEM limit derived from the tile footprint, capped well
    # below v7x's 64 MiB physical VMEM (v5e/v6e have 128 MiB).
    w_item = jnp.dtype(wqkv_t.dtype).itemsize
    weight_bytes = (H * 3 * H + H * H) * w_item + (3 * H + H) * 4
    io_bytes = 2 * (tb * H * 4) * (2 if steps > 1 else 1)
    tmp_bytes = 4 * tb * H * H * 4 + 16 * tb * H * 4
    vmem_limit = int(min(max(2 * (weight_bytes + io_bytes + tmp_bytes),
                             16 << 20), 48 << 20))

    def _const_spec(shape):
        # Grid-invariant weights/biases: single-buffer them when the grid has
        # more than one step (a second pipeline buffer would be wasted VMEM).
        idx = lambda i: (0,) * len(shape)
        if steps > 1:
            return pl.BlockSpec(shape, idx, pipeline_mode=pl.Buffered(1))
        return pl.BlockSpec(shape, idx)

    # TODO(synk): for very large B on v7x, shard the batch axis across the two
    # TensorCores with pltpu.CORE_PARALLEL; at small B one step is fastest.
    return pl.pallas_call(
        _attention_kernel,
        out_shape=jax.ShapeDtypeStruct((B, H), jnp.float32),
        grid_spec=pltpu.PrefetchScalarGridSpec(
            num_scalar_prefetch=0,
            grid=(steps,),
            in_specs=[
                pl.BlockSpec((tb, H), lambda i: (i, 0)),   # x
                _const_spec((H, 3 * H)),                   # fused q/k/v weight
                _const_spec((1, 3 * H)),                   # fused q/k/v bias
                _const_spec((H, H)),                       # output weight
                _const_spec((1, H)),                       # output bias
            ],
            out_specs=pl.BlockSpec((tb, H), lambda i: (i, 0)),
        ),
        compiler_params=pltpu.CompilerParams(
            dimension_semantics=("arbitrary",),
            vmem_limit_bytes=vmem_limit),
    )(x, wqkv_t, bqkv, wo_t, bo2)


def _init_linear(key, in_dim, out_dim):
    """Deterministic init matching nn.Linear default (uniform +-1/sqrt(in))."""
    kw, kb = jax.random.split(key)
    bound = 1.0 / jnp.sqrt(jnp.float32(in_dim))
    w = jax.random.uniform(kw, (out_dim, in_dim), jnp.float32, -bound, bound)
    b = jax.random.uniform(kb, (out_dim,), jnp.float32, -bound, bound)
    return w, b


def _reference(x, wq, bq, wk, bk, wv, bv, wo, bo):
    """Pure-JAX reference mirroring the PyTorch forward (eval mode)."""
    H = x.shape[-1]
    q = x @ wq.T + bq
    k = x @ wk.T + bk
    v = x @ wv.T + bv
    s = (q[:, :, None] * k[:, None, :]) / jnp.sqrt(jnp.float32(H))
    w = jax.nn.softmax(s, axis=-1)
    attn = jnp.einsum("bij,bj->bi", w, v)
    return attn @ wo.T + bo


if __name__ == "__main__":
    B, H = 16, 32
    key = jax.random.PRNGKey(0)
    kx, kq, kk, kv, ko = jax.random.split(key, 5)

    x = jax.random.normal(kx, (B, H), jnp.float32)
    wq, bq = _init_linear(kq, H, H)
    wk, bk = _init_linear(kk, H, H)
    wv, bv = _init_linear(kv, H, H)
    wo, bo = _init_linear(ko, H, H)

    ref = _reference(x, wq, bq, wk, bk, wv, bv, wo, bo)

    # f32 MXU operands: tight parity with the PyTorch module (exact max,
    # exact reciprocal, f32 accumulation everywhere).
    params_f32 = prepare_attention_params(wq, bq, wk, bk, wv, bv, wo, bo,
                                          matmul_dtype=jnp.float32)
    out = jax.block_until_ready(attention_forward(x, *params_f32))
    assert out.shape == (B, H) and out.dtype == jnp.float32
    assert jnp.allclose(out, ref, atol=1e-3, rtol=1e-3), (
        float(jnp.max(jnp.abs(out - ref))))

    # Default bf16 MXU operands (bf16-native MXU on v5e/v6e/v7x); softmax and
    # the attention output stay f32.
    params_bf16 = prepare_attention_params(wq, bq, wk, bk, wv, bv, wo, bo)
    out_bf16 = jax.block_until_ready(attention_forward(x, *params_bf16))
    assert out_bf16.shape == (B, H) and out_bf16.dtype == jnp.float32
    assert jnp.allclose(out_bf16, ref, atol=6e-2, rtol=6e-2), (
        float(jnp.max(jnp.abs(out_bf16 - ref))))

    print("KERNEL_OK")
</pallas_src>

<mosaic_0001>
module attributes {stable_mosaic.version = 11 : i64} {
  func.func @_attention_kernel(%arg0: i32, %arg1: memref<16x32xf32, #tpu.memory_space<vmem>>, %arg2: memref<32x96xf32, #tpu.memory_space<vmem>>, %arg3: memref<1x96xf32, #tpu.memory_space<vmem>>, %arg4: memref<32x32xf32, #tpu.memory_space<vmem>>, %arg5: memref<1x32xf32, #tpu.memory_space<vmem>>, %arg6: memref<16x32xf32, #tpu.memory_space<vmem>>) attributes {dimension_semantics = [#tpu.dimension_semantics<arbitrary>], iteration_bounds = array<i64: 1>, scalar_prefetch = 0 : i64, scratch_operands = 0 : i64, tpu.core_type = #tpu.core_type<tc>, window_params = [{transform_indices = @transform_0, window_bounds = array<i64: 16, 32>}, {pipeline_mode = #tpu.pipeline_mode<synchronous>, transform_indices = @transform_1, window_bounds = array<i64: 32, 96>}, {pipeline_mode = #tpu.pipeline_mode<synchronous>, transform_indices = @transform_2, window_bounds = array<i64: 1, 96>}, {pipeline_mode = #tpu.pipeline_mode<synchronous>, transform_indices = @transform_3, window_bounds = array<i64: 32, 32>}, {pipeline_mode = #tpu.pipeline_mode<synchronous>, transform_indices = @transform_4, window_bounds = array<i64: 1, 32>}, {transform_indices = @transform_5, window_bounds = array<i64: 16, 32>}]} {
    %c0 = arith.constant 0 : index
    %c0_0 = arith.constant 0 : index
    %0 = vector.load %arg1[%c0, %c0_0] : memref<16x32xf32, #tpu.memory_space<vmem>>, vector<16x32xf32>
    %c0_1 = arith.constant 0 : index
    %c0_2 = arith.constant 0 : index
    %1 = vector.load %arg2[%c0_1, %c0_2] : memref<32x96xf32, #tpu.memory_space<vmem>>, vector<32x96xf32>
    %cst = arith.constant dense<0.000000e+00> : vector<16x96xf32>
    %2 = tpu.matmul %0, %1, %cst {dimension_numbers = #tpu.dot_dimension_numbers<[1], [0], [0], [1], [0, 0, 1, 1], [], []>} : vector<16x32xf32>, vector<32x96xf32>, vector<16x96xf32> -> vector<16x96xf32>
    %c0_3 = arith.constant 0 : index
    %c0_4 = arith.constant 0 : index
    %3 = vector.load %arg3[%c0_3, %c0_4] : memref<1x96xf32, #tpu.memory_space<vmem>>, vector<1x96xf32>
    %4 = vector.broadcast %3 : vector<1x96xf32> to vector<16x96xf32>
    %5 = arith.addf %2, %4 : vector<16x96xf32>
    %6 = vector.extract_strided_slice %5 {offsets = [0, 0], sizes = [16, 32], strides = [1, 1]} : vector<16x96xf32> to vector<16x32xf32>
    %cst_5 = arith.constant 0.176776692 : f32
    %7 = vector.broadcast %cst_5 : f32 to vector<16x32xf32>
    %8 = arith.mulf %6, %7 : vector<16x32xf32>
    %9 = vector.extract_strided_slice %5 {offsets = [0, 32], sizes = [16, 32], strides = [1, 1]} : vector<16x96xf32> to vector<16x32xf32>
    %10 = vector.extract_strided_slice %5 {offsets = [0, 64], sizes = [16, 32], strides = [1, 1]} : vector<16x96xf32> to vector<16x32xf32>
    %cst_6 = arith.constant dense<0xFF800000> : vector<16xf32>
    %11 = vector.multi_reduction <maximumf>, %9, %cst_6 [1] : vector<16x32xf32> to vector<16xf32>
    %12 = vector.shape_cast %11 : vector<16xf32> to vector<16x1xf32>
    %cst_7 = arith.constant dense<0x7F800000> : vector<16xf32>
    %13 = vector.multi_reduction <minimumf>, %9, %cst_7 [1] : vector<16x32xf32> to vector<16xf32>
    %14 = vector.shape_cast %13 : vector<16xf32> to vector<16x1xf32>
    %cst_8 = arith.constant 0.000000e+00 : f32
    %15 = vector.broadcast %cst_8 : f32 to vector<16x32xf32>
    %16 = arith.cmpf oge, %8, %15 : vector<16x32xf32>
    %17 = vector.broadcast %12 : vector<16x1xf32> to vector<16x32xf32>
    %18 = arith.mulf %8, %17 : vector<16x32xf32>
    %19 = vector.broadcast %14 : vector<16x1xf32> to vector<16x32xf32>
    %20 = arith.mulf %8, %19 : vector<16x32xf32>
    %21 = arith.select %16, %18, %20 : vector<16x32xi1>, vector<16x32xf32>
    %22 = vector.shape_cast %8 : vector<16x32xf32> to vector<16x32x1xf32>
    %23 = vector.shape_cast %9 : vector<16x32xf32> to vector<16x1x32xf32>
    %24 = vector.broadcast %22 : vector<16x32x1xf32> to vector<16x32x32xf32>
    %25 = vector.broadcast %23 : vector<16x1x32xf32> to vector<16x32x32xf32>
    %26 = arith.mulf %24, %25 : vector<16x32x32xf32>
    %27 = vector.shape_cast %21 : vector<16x32xf32> to vector<16x32x1xf32>
    %28 = vector.broadcast %27 : vector<16x32x1xf32> to vector<16x32x32xf32>
    %29 = arith.subf %26, %28 : vector<16x32x32xf32>
    %30 = math.exp %29 : vector<16x32x32xf32>
    %31 = vector.shape_cast %10 : vector<16x32xf32> to vector<16x32x1xf32>
    %cst_9 = arith.constant 1.000000e+00 : f32
    %32 = vector.broadcast %cst_9 : f32 to vector<16x32xf32>
    %33 = vector.shape_cast %32 : vector<16x32xf32> to vector<16x32x1xf32>
    %34 = tpu.concatenate %31, %33 in 2 : vector<16x32x1xf32>, vector<16x32x1xf32> -> vector<16x32x2xf32>
    "tpu.trace_start"() <{level = 10 : i32, message = "bij,bjc->bic"}> : () -> ()
    %cst_10 = arith.constant dense<0.000000e+00> : vector<16x32x2xf32>
    %35 = tpu.matmul %30, %34, %cst_10 {dimension_numbers = #tpu.dot_dimension_numbers<[2], [1], [1], [2], [0, 0, 0, 1, 1, 2], [0], [0]>} : vector<16x32x32xf32>, vector<16x32x2xf32>, vector<16x32x2xf32> -> vector<16x32x2xf32>
    "tpu.trace_stop"() : () -> ()
    %36 = vector.extract_strided_slice %35 {offsets = [0, 0, 0], sizes = [16, 32, 1], strides = [1, 1, 1]} : vector<16x32x2xf32> to vector<16x32x1xf32>
    %37 = vector.shape_cast %36 : vector<16x32x1xf32> to vector<16x32xf32>
    %38 = vector.extract_strided_slice %35 {offsets = [0, 0, 1], sizes = [16, 32, 1], strides = [1, 1, 1]} : vector<16x32x2xf32> to vector<16x32x1xf32>
    %39 = vector.shape_cast %38 : vector<16x32x1xf32> to vector<16x32xf32>
    %40 = tpu.reciprocal %39 : vector<16x32xf32> -> vector<16x32xf32>
    %41 = arith.mulf %37, %40 : vector<16x32xf32>
    %c0_11 = arith.constant 0 : index
    %c0_12 = arith.constant 0 : index
    %42 = vector.load %arg4[%c0_11, %c0_12] : memref<32x32xf32, #tpu.memory_space<vmem>>, vector<32x32xf32>
    %cst_13 = arith.constant dense<0.000000e+00> : vector<16x32xf32>
    %43 = tpu.matmul %41, %42, %cst_13 {dimension_numbers = #tpu.dot_dimension_numbers<[1], [0], [0], [1], [0, 0, 1, 1], [], []>} : vector<16x32xf32>, vector<32x32xf32>, vector<16x32xf32> -> vector<16x32xf32>
    %c0_14 = arith.constant 0 : index
    %c0_15 = arith.constant 0 : index
    %44 = vector.load %arg5[%c0_14, %c0_15] : memref<1x32xf32, #tpu.memory_space<vmem>>, vector<1x32xf32>
    %45 = vector.broadcast %44 : vector<1x32xf32> to vector<16x32xf32>
    %46 = arith.addf %43, %45 : vector<16x32xf32>
    %c0_16 = arith.constant 0 : index
    %c0_17 = arith.constant 0 : index
    %47 = vector.load %arg6[%c0_16, %c0_17] : memref<16x32xf32, #tpu.memory_space<vmem>>, vector<16x32xf32>
    tpu.vector_store %arg6[%c0_16, %c0_17], %46 {strides = array<i32>} : memref<16x32xf32, #tpu.memory_space<vmem>>, vector<16x32xf32>,
    return
  }
  func.func @transform_0(%arg0: i32) -> (i32, i32) {
    %c0_i32 = arith.constant 0 : i32
    %c0_i32_0 = arith.constant 0 : i32
    return %arg0, %c0_i32 : i32, i32
  }
  func.func @transform_1(%arg0: i32) -> (i32, i32) {
    %c0_i32 = arith.constant 0 : i32
    %c0_i32_0 = arith.constant 0 : i32
    %c0_i32_1 = arith.constant 0 : i32
    return %c0_i32, %c0_i32_0 : i32, i32
  }
  func.func @transform_2(%arg0: i32) -> (i32, i32) {
    %c0_i32 = arith.constant 0 : i32
    %c0_i32_0 = arith.constant 0 : i32
    %c0_i32_1 = arith.constant 0 : i32
    return %c0_i32, %c0_i32_0 : i32, i32
  }
  func.func @transform_3(%arg0: i32) -> (i32, i32) {
    %c0_i32 = arith.constant 0 : i32
    %c0_i32_0 = arith.constant 0 : i32
    %c0_i32_1 = arith.constant 0 : i32
    return %c0_i32, %c0_i32_0 : i32, i32
  }
  func.func @transform_4(%arg0: i32) -> (i32, i32) {
    %c0_i32 = arith.constant 0 : i32
    %c0_i32_0 = arith.constant 0 : i32
    %c0_i32_1 = arith.constant 0 : i32
    return %c0_i32, %c0_i32_0 : i32, i32
  }
  func.func @transform_5(%arg0: i32) -> (i32, i32) {
    %c0_i32 = arith.constant 0 : i32
    %c0_i32_0 = arith.constant 0 : i32
    return %arg0, %c0_i32 : i32, i32
  }
}

</mosaic_0001>

<bundles_post_ra>
// kernel: attention_forward.1
= control target key start
LH: loop header
LB: loop body
LE: loop exit
PB: predicated region body
PF: predicated region fallthrough
CT: control target
= control target key end

     0   :  { %10 = vsyncpa [#allocation3], 0  ;;  %s7947_s0 = inlined_call_operand.hbm [shape: f32[16,32], index: 0, kind: input, shape index: {}]   ;;  %s7948_s1 = inlined_call_operand.hbm [shape: f32[32,96], index: 1, kind: input, shape index: {}]   ;;  %s7949_s2 = inlined_call_operand.vmem [shape: f32[1,96], index: 2, kind: input, shape index: {}]   ;;  %s7950_s3 = inlined_call_operand.hbm [shape: f32[32,32], index: 3, kind: input, shape index: {}]   ;;  %s7951_s4 = inlined_call_operand.vmem [shape: f32[1,32], index: 4, kind: input, shape index: {}]   ;;  %s7952_s5 = inlined_call_operand.hbm [shape: f32[16,32], index: 5, kind: output, shape index: {}]  }
   0x1   :  { %11 = vsyncpa [#allocation6], 0 }
   0x2   :  { %12 = vsyncpa [#allocation4], 0  ;;  %s30_s20 = sshll.u32 %s7948_s1, 4  ;;  %s4913_s21 = smov [#allocation5]   ;;  %s31_s20 = int_to_ptr.hbm [resolvable:$true] %s30_s20 }
   0x3   :  { %s32_s22 = sshll.u32 %s4913_s21, 4  ;;  %s17_s25 = sshll.u32 %s7947_s0, 4  ;;  %s33_s22 = int_to_ptr.vmem [resolvable:$true] %s32_s22  ;;  %s18_s25 = int_to_ptr.hbm [resolvable:$true] %s17_s25 }
   0x4   :  { %s4914_s26 = smov 128   ;;  %s4915_s27 = smov 8  }
   0x5   :  { %38 = dma.hbm_to_vmem [thread:$0]  %s31_s20, 512, %s33_s22, [#allocation6], %s4914_s26, %s4914_s26, %s4915_s27  }
   0x6   :  { %s4916_s28 = smov [#allocation2]   ;;  %s45_s1 = sshll.u32 %s7950_s3, 4  ;;  %s46_s1 = int_to_ptr.hbm [resolvable:$true] %s45_s1 }
   0x7   :  { %s19_s29 = sshll.u32 %s4916_s28, 4  ;;  %s4917_s0 = smov [#allocation7]   ;;  %s20_s29 = int_to_ptr.vmem [resolvable:$true] %s19_s29 }
   0x8   :  { %25 = dma.hbm_to_vmem [thread:$0]  %s18_s25, 256, %s20_s29, [#allocation3], %s4914_s26, %s4914_s26, %s4915_s27  }
   0x9   :  { %s47_s7 = sshll.u32 %s4917_s0, 4  ;;  %s48_s7 = int_to_ptr.vmem [resolvable:$true] %s47_s7 }
   0xa   :  { %53 = dma.hbm_to_vmem [thread:$0]  %s46_s1, 512, %s48_s7, [#allocation6], %s4914_s26, %s4914_s26, %s4915_s27  }
   0xb   :  { %4907 = dma.done.wait [#allocation3], 256  }
   0xc   :  { %4908 = vsyncadd [#allocation3], 4294967040 }
   0xd   :  { %4909 = dma.done.wait [#allocation6], 1024  }
   0xe   :  { %4910 = vsyncadd [#allocation6], 4294966272  ;;  %v7953_v0 = vlaneseq  ;;  %v73_v2 = vld [vmem:[#allocation5 + $0x18] sm:$0xff]  ;;  %v72_v3 = vld [vmem:[#allocation5 + $0x10] sm:$0xff]  ;;  %vm78_vm0 = vcmask 261120   ;;  %vm110_vm1 = vcmask 523520  }
   0xf   :  { %97 = vmatpush.msra.mxu0 %v73_v2  ;;  %4222 = vmatpush.msra.mxu2 %v73_v2  ;;  %v71_v4 = vld [vmem:[#allocation5 + $0x8] sm:$0xff]  ;;  %v70_v5 = vld [vmem:[#allocation5] sm:$0xff]  ;;  %v68_v6 = vld [vmem:[#allocation2] sm:$0xff]  ;;  %vm1635_vm4 = vcmask 7168   ;;  %s4919_s9 = smov 127   ;;  %s4921_s12 = smov [#allocation8]  }
  0x10   :  { %v4971_v1 = vshrl.u32 %v7953_v0, 7  ;;  %v69_v7 = vld [vmem:[#allocation2 + $0x8] sm:$0xff]  ;;  %v4553_v9 = vld [vmem:[%s7949_s2] ss:$0 sm:$0xff]  ;;  %s4918_s2 = smov 96   ;;  %s4138_s13 = sshll.u32 %s4921_s12, 4  ;;  %s4139_s13 = int_to_ptr.vmem [resolvable:$true] %s4138_s13 }
  0x11   :  { %98 = vmatpush.msra.mxu0 %v72_v3  ;;  %4223 = vmatpush.msra.mxu2 %v72_v3  ;;  %s4140_s16 = sshll.u32 %s7952_s5, 4  ;;  %s4141_s16 = int_to_ptr.hbm [resolvable:$true] %s4140_s16 }
  0x12   :  { %4239 = vset.pattern.permute.xlu2 %v4971_v1  ;;  %v4977_v8 = vadd.s32 24, %v4971_v1  ;;  %v5002_v20 = vadd.s32 8, %v4971_v1  ;;  %v5020_v26 = vadd.s32 16, %v4971_v1  ;;  %v5301_v0 = vadd.s32 72, %v4971_v1 }
  0x13   :  { %99 = vmatpush.msra.mxu0 %v71_v4  ;;  %4224 = vmatpush.msra.mxu2 %v71_v4 }
  0x14   :  { %4249 = vset.pattern.permute.xlu0 %v4977_v8  ;;  %4241 = vset.pattern.permute.xlu1 %v4977_v8 }
  0x15   :  { %100 = vmatpush.msra.mxu0 %v70_v5  ;;  %4225 = vmatpush.msra.mxu2 %v70_v5 }
  0x16   :  { %4154 = vmatmul.msk.f32.vlgmr.msra.gmra.mxu0 %vm78_vm0, %v68_v6  ;;  %4155 = vmatmul.msk.f32.vlgmr.msra.gmra.mxu2 %vm78_vm0, %v69_v7 }
  0x93   :  { %v102_v10 = vpop.f32.mrf.mxu0 }
  0x94   :  { %v4984_v11 = vadd.f32 %v4553_v9, %v102_v10 }
  0x96   :  { %v117_v12 = vsel %vm110_vm1, %v4984_v11, inf  ;;  %v111_v13 = vsel %vm110_vm1, %v4984_v11, -inf  ;;  %v4991_v14 = vmul.f32 0.17677669, %v4984_v11  ;;  %v1385_v16 = vperm.slane %v4984_v11, 6 }
  0x97   :  { %118 = vmin.xlane.f32.xlu1 %v117_v12  ;;  %112 = vmax.xlane.f32.xlu0 %v111_v13  ;;  %v1410_v17 = vperm.slane %v4984_v11, 7  ;;  %v1335_v18 = vperm.slane %v4984_v11, 4  ;;  %v1360_v19 = vperm.slane %v4984_v11, 5 }
  0x98   :  { %v4994_v15 = vperm.slane %v4991_v14, 0  ;;  %v181_v23 = vperm.slane %v4991_v14, 2  ;;  %v156_v24 = vperm.slane %v4991_v14, 1  ;;  %v231_v25 = vperm.slane %v4991_v14, 4 }
  0x99   :  { %v5004_v21 = vpack.i.bf16 %v1360_v19, %v1335_v18  ;;  %v5006_v22 = vpack.i.bf16 %v1410_v17, %v1385_v16  ;;  %v256_v27 = vperm.slane %v4991_v14, 5  ;;  %v5028_v28 = vperm.slane %v4991_v14, 7  ;;  %v105_v30 = vpop.f32.mrf.mxu2 }
  0x9a   :  { %136 = vperm.xlu2 %4239, %v4994_v15   ;;  %v206_v29 = vperm.slane %v4991_v14, 3  ;;  %v5037_v31 = vadd.f32 %v4553_v9, %v105_v30  ;;  %v5060_v36 = vperm.slane %v4991_v14, 6  ;;  %vm123_vm2 = vcmp.ge.f32.partialorder %v4991_v14, 0.0 }
  0x9c   :  { %v114_v32 = vsel %vm110_vm1, %v5037_v31, -inf  ;;  %v5044_v33 = vmul.f32 0.17677669, %v5037_v31  ;;  %v1485_v44 = vperm.slane %v5037_v31, 2  ;;  %v1510_v45 = vperm.slane %v5037_v31, 3 }
  0x9d   :  { %v1585_v47 = vperm.slane %v5037_v31, 6  ;;  %v1610_v48 = vperm.slane %v5037_v31, 7  ;;  %v120_v53 = vsel %vm110_vm1, %v5037_v31, inf }
  0x9e   :  { %v5048_v34 = vperm.slane %v5044_v33, 1  ;;  %v5055_v35 = vperm.slane %v5044_v33, 2  ;;  %v5066_v37 = vperm.slane %v5044_v33, 4  ;;  %v5074_v38 = vperm.slane %v5044_v33, 6 }
  0x9f   :  { %v5082_v39 = vperm.slane %v5044_v33, 7  ;;  %v5098_v49 = vpack.i.bf16 %v1510_v45, %v1485_v44  ;;  %v5103_v51 = vpack.i.bf16 %v1610_v48, %v1585_v47  ;;  %v331_v55 = vperm.slane %v5044_v33, 0 }
  0xa0   :  { %v5167_v6 = vperm.slane %v5044_v33, 3  ;;  %vm124_vm3 = vcmp.ge.f32.partialorder %v5044_v33, 0.0 }
  0xa1   :  { %8005 = vst [vmem:[#allocation12_spill] sm:$0xff] %v5103_v51 }
  0xa2   :  { %4240 = vset.pattern.permute.xlu2 %v5002_v20 }
  0xaa   :  { %142 = vperm.xlu2 %4240, %v4994_v15  }
  0xab   :  { %204 = vperm.xlu0 %4249, %v181_v23  }
  0xb0   :  { %154 = vperm.xlu1 %4241, %v4994_v15  }
  0xb2   :  { %4242 = vset.pattern.permute.xlu2 %v4971_v1 }
  0xb3   :  { %4254 = vset.pattern.permute.xlu0 %v4971_v1 }
  0xb8   :  { %4246 = vset.pattern.permute.xlu1 %v4971_v1 }
  0xba   :  { %161 = vperm.xlu2 %4242, %v156_v24  }
  0xbb   :  { %236 = vperm.xlu0 %4254, %v231_v25  }
  0xc0   :  { %186 = vperm.xlu1 %4246, %v181_v23  }
  0xc2   :  { %4243 = vset.pattern.permute.xlu2 %v5002_v20 }
  0xc3   :  { %4259 = vset.pattern.permute.xlu0 %v5002_v20 }
  0xc8   :  { %4248 = vset.pattern.permute.xlu1 %v5020_v26 }
  0xca   :  { %167 = vperm.xlu2 %4243, %v156_v24  }
  0xcb   :  { %267 = vperm.xlu0 %4259, %v256_v27  }
  0xd0   :  { %198 = vperm.xlu1 %4248, %v181_v23  }
  0xd2   :  { %4244 = vset.pattern.permute.xlu2 %v5020_v26 }
  0xd3   :  { %4268 = vset.pattern.permute.xlu0 %v4977_v8 }
  0xd8   :  { %4251 = vset.pattern.permute.xlu1 %v5002_v20 }
  0xda   :  { %173 = vperm.xlu2 %4244, %v156_v24  }
  0xdb   :  { %329 = vperm.xlu0 %4268, %v5028_v28  }
  0xe0   :  { %217 = vperm.xlu1 %4251, %v206_v29  }
  0xe2   :  { %4245 = vset.pattern.permute.xlu2 %v4977_v8 }
  0xe3   :  { %4273 = vset.pattern.permute.xlu0 %v4971_v1 }
  0xe8   :  { %4253 = vset.pattern.permute.xlu1 %v4977_v8 }
  0xea   :  { %179 = vperm.xlu2 %4245, %v156_v24  }
  0xf0   :  { %229 = vperm.xlu1 %4253, %v206_v29  }
  0xf2   :  { %4247 = vset.pattern.permute.xlu2 %v5002_v20 }
  0xf8   :  { %4256 = vset.pattern.permute.xlu1 %v5020_v26 }
  0xfa   :  { %192 = vperm.xlu2 %4247, %v181_v23   ;;  %v5194_v23 = vpop.permute.xlu2 %136 }
 0x100   :  { %248 = vperm.xlu1 %4256, %v231_v25  }
 0x102   :  { %4250 = vset.pattern.permute.xlu2 %v4971_v1 }
 0x104   :  { %v5199_v24 = vpop.permute.xlu2 %142 }
 0x105   :  { %115 = vmax.xlane.f32.xlu0 %v114_v32 }
 0x108   :  { %4258 = vset.pattern.permute.xlu1 %v4971_v1 }
 0x10a   :  { %211 = vperm.xlu2 %4250, %v206_v29   ;;  %v119_v40 = vpop.xlane.xlu1 %118  ;;  %v113_v41 = vpop.xlane.xlu0 %112 }
 0x10b   :  { %v127_v42 = vmul.f32 %v119_v40, %v4991_v14  ;;  %v125_v43 = vmul.f32 %v113_v41, %v4991_v14 }
 0x10d   :  { %v5094_v46 = vsel %vm123_vm2, %v125_v43, %v127_v42 }
 0x10e   :  { %v5101_v50 = vperm.slane %v5094_v46, 1  ;;  %v5110_v52 = vperm.slane %v5094_v46, 3  ;;  %v5119_v54 = vperm.slane %v5094_v46, 4  ;;  %v5128_v57 = vperm.slane %v5094_v46, 6 }
 0x10f   :  { %v643_v45 = vperm.slane %v5094_v46, 0  ;;  %v5272_v48 = vperm.slane %v5094_v46, 5 }
 0x110   :  { %261 = vperm.xlu1 %4258, %v256_v27  }
 0x112   :  { %4252 = vset.pattern.permute.xlu2 %v5020_v26 }
 0x118   :  { %4261 = vset.pattern.permute.xlu1 %v4977_v8 }
 0x119   :  { %361 = vperm.xlu0 %4273, %v5048_v34  }
 0x11a   :  { %223 = vperm.xlu2 %4252, %v206_v29  }
 0x11d   :  { %v5155_v2 = vpop.permute.xlu0 %204 }
 0x11e   :  { %8011 = vst [vmem:[#allocation18_spill] sm:$0xff] %v5155_v2 }
 0x120   :  { %279 = vperm.xlu1 %4261, %v256_v27  }
 0x121   :  { %4278 = vset.pattern.permute.xlu0 %v5002_v20 }
 0x122   :  { %4255 = vset.pattern.permute.xlu2 %v5002_v20  ;;  %v5125_v56 = vpop.permute.xlu1 %154 }
 0x123   :  { %8006 = vst [vmem:[#allocation13_spill] sm:$0xff] %v5125_v56 }
 0x128   :  { %4263 = vset.pattern.permute.xlu1 %v5002_v20 }
 0x129   :  { %392 = vperm.xlu0 %4278, %v5055_v35  }
 0x12a   :  { %242 = vperm.xlu2 %4255, %v231_v25  }
 0x12d   :  { %v5161_v4 = vpop.permute.xlu0 %236 }
 0x130   :  { %292 = vperm.xlu1 %4263, %v5060_v36  }
 0x131   :  { %4287 = vset.pattern.permute.xlu0 %v4977_v8 }
 0x132   :  { %4257 = vset.pattern.permute.xlu2 %v4977_v8  ;;  %v5132_v58 = vpop.permute.xlu1 %186 }
 0x133   :  { %8007 = vst [vmem:[#allocation14_spill] sm:$0xff] %v5132_v58 }
 0x138   :  { %4265 = vset.pattern.permute.xlu1 %v4971_v1 }
 0x139   :  { %454 = vperm.xlu0 %4287, %v5066_v37  }
 0x13a   :  { %254 = vperm.xlu2 %4257, %v231_v25  }
 0x13d   :  { %v5170_v7 = vpop.permute.xlu0 %267 }
 0x13e   :  { %8013 = vst [vmem:[#allocation20_spill] sm:$0xff] %v5170_v7 }
 0x140   :  { %311 = vperm.xlu1 %4265, %v5028_v28  }
 0x141   :  { %4292 = vset.pattern.permute.xlu0 %v4971_v1 }
 0x142   :  { %4260 = vset.pattern.permute.xlu2 %v5020_v26  ;;  %v5136_v59 = vpop.permute.xlu1 %198 }
 0x148   :  { %4267 = vset.pattern.permute.xlu1 %v5020_v26 }
 0x149   :  { %486 = vperm.xlu0 %4292, %v5074_v38  }
 0x14a   :  { %273 = vperm.xlu2 %4260, %v256_v27   ;;  %v5207_v27 = vpop.permute.xlu2 %161 }
 0x14d   :  { %v5176_v10 = vpop.permute.xlu0 %329 }
 0x150   :  { %323 = vperm.xlu1 %4267, %v5028_v28  }
 0x151   :  { %4297 = vset.pattern.permute.xlu0 %v5002_v20 }
 0x152   :  { %4262 = vset.pattern.permute.xlu2 %v4971_v1  ;;  %v5140_v60 = vpop.permute.xlu1 %217  ;;  %v5212_v29 = vpop.permute.xlu2 %167 }
 0x153   :  { %8015 = vst [vmem:[#allocation22_spill] sm:$0xff] %v5212_v29 }
 0x158   :  { %4270 = vset.pattern.permute.xlu1 %v5002_v20 }
 0x159   :  { %517 = vperm.xlu0 %4297, %v5082_v39  }
 0x15a   :  { %286 = vperm.xlu2 %4262, %v5060_v36   ;;  %v5219_v32 = vpop.permute.xlu2 %173 }
 0x15b   :  { %8016 = vst [vmem:[#allocation23_spill] sm:$0xff] %v5219_v32 }
 0x161   :  { %4306 = vset.pattern.permute.xlu0 %v4977_v8 }
 0x162   :  { %4264 = vset.pattern.permute.xlu2 %v4977_v8  ;;  %v5144_v61 = vpop.permute.xlu1 %229 }
 0x163   :  { %8008 = vst [vmem:[#allocation15_spill] sm:$0xff] %v5144_v61 }
 0x169   :  { %691 = vperm.xlu0 %4306, %v5101_v50  }
 0x16a   :  { %304 = vperm.xlu2 %4264, %v5060_v36  }
 0x171   :  { %4311 = vset.pattern.permute.xlu0 %v4971_v1 }
 0x172   :  { %4266 = vset.pattern.permute.xlu2 %v5002_v20  ;;  %v5148_v62 = vpop.permute.xlu1 %248 }
 0x173   :  { %8009 = vst [vmem:[#allocation16_spill] sm:$0xff] %v5148_v62 }
 0x178   :  { %v116_v13 = vpop.xlane.xlu0 %115 }
 0x179   :  { %723 = vperm.xlu0 %4311, %v5110_v52   ;;  %v126_v16 = vmul.f32 %v116_v13, %v5044_v33 }
 0x17a   :  { %121 = vmin.xlane.f32.xlu1 %v120_v53  ;;  %317 = vperm.xlu2 %4266, %v5028_v28   ;;  %v456_v28 = vperm.slane %v5044_v33, 5 }
 0x181   :  { %4316 = vset.pattern.permute.xlu0 %v5002_v20 }
 0x182   :  { %4269 = vset.pattern.permute.xlu2 %v4971_v1  ;;  %v5152_v63 = vpop.permute.xlu1 %261 }
 0x183   :  { %8010 = vst [vmem:[#allocation17_spill] sm:$0xff] %v5152_v63  ;;  %v5350_v63 = vadd.s32 88, %v4971_v1 }
 0x189   :  { %754 = vperm.xlu0 %4316, %v5119_v54  }
 0x18a   :  { %336 = vperm.xlu2 %4269, %v331_v55  }
 0x18b   :  { %v5255_v44 = vpop.permute.xlu0 %361 }
 0x18c   :  { %8021 = vst [vmem:[#allocation28_spill] sm:$0xff] %v5255_v44 }
 0x191   :  { %4325 = vset.pattern.permute.xlu0 %v4977_v8 }
 0x192   :  { %4271 = vset.pattern.permute.xlu2 %v5020_v26  ;;  %v5158_v3 = vpop.permute.xlu1 %279 }
 0x193   :  { %342 = vperm.xlu1 %4270, %v331_v55   ;;  %8012 = vst [vmem:[#allocation19_spill] sm:$0xff] %v5158_v3 }
 0x199   :  { %816 = vperm.xlu0 %4325, %v5128_v57  }
 0x19a   :  { %348 = vperm.xlu2 %4271, %v331_v55  }
 0x19b   :  { %4272 = vset.pattern.permute.xlu1 %v4977_v8 }
 0x1a1   :  { %4330 = vset.pattern.permute.xlu0 %v4971_v1 }
 0x1a2   :  { %4274 = vset.pattern.permute.xlu2 %v5002_v20  ;;  %v5164_v5 = vpop.permute.xlu1 %292 }
 0x1a3   :  { %354 = vperm.xlu1 %4272, %v331_v55  }
 0x1aa   :  { %367 = vperm.xlu2 %4274, %v5048_v34  }
 0x1ab   :  { %4275 = vset.pattern.permute.xlu1 %v5020_v26 }
 0x1b2   :  { %4276 = vset.pattern.permute.xlu2 %v4977_v8  ;;  %v5173_v9 = vpop.permute.xlu1 %311 }
 0x1b3   :  { %373 = vperm.xlu1 %4275, %v5048_v34  }
 0x1ba   :  { %379 = vperm.xlu2 %4276, %v5048_v34  }
 0x1bb   :  { %4277 = vset.pattern.permute.xlu1 %v4971_v1 }
 0x1c2   :  { %4279 = vset.pattern.permute.xlu2 %v5020_v26  ;;  %v5179_v12 = vpop.permute.xlu1 %323 }
 0x1c3   :  { %386 = vperm.xlu1 %4277, %v5055_v35   ;;  %8014 = vst [vmem:[#allocation21_spill] sm:$0xff] %v5179_v12  ;;  %v5330_v12 = vperm.slane %v5037_v31, 0 }
 0x1ca   :  { %398 = vperm.xlu2 %4279, %v5055_v35  }
 0x1cb   :  { %4280 = vset.pattern.permute.xlu1 %v4977_v8 }
 0x1d2   :  { %4281 = vset.pattern.permute.xlu2 %v4971_v1 }
 0x1d3   :  { %404 = vperm.xlu1 %4280, %v5055_v35  }
 0x1da   :  { %411 = vperm.xlu2 %4281, %v5167_v6  }
 0x1db   :  { %4282 = vset.pattern.permute.xlu1 %v5002_v20 }
 0x1e2   :  { %4283 = vset.pattern.permute.xlu2 %v4977_v8 }
 0x1e3   :  { %417 = vperm.xlu1 %4282, %v5167_v6  }
 0x1ea   :  { %429 = vperm.xlu2 %4283, %v5167_v6  }
 0x1eb   :  { %4284 = vset.pattern.permute.xlu1 %v4971_v1 }
 0x1ed   :  { %v122_v14 = vpop.xlane.xlu1 %121 }
 0x1ee   :  { %v128_v17 = vmul.f32 %v122_v14, %v5044_v33  ;;  %v5223_v33 = vpop.permute.xlu2 %179 }
 0x1f0   :  { %v5186_v18 = vsel %vm124_vm3, %v126_v16, %v128_v17 }
 0x1f1   :  { %v5189_v19 = vperm.slane %v5186_v18, 0  ;;  %v5202_v25 = vperm.slane %v5186_v18, 3  ;;  %v5215_v30 = vperm.slane %v5186_v18, 5  ;;  %v5226_v34 = vperm.slane %v5186_v18, 1 }
 0x1f2   :  { %4285 = vset.pattern.permute.xlu2 %v5002_v20  ;;  %v5290_v14 = vperm.slane %v5186_v18, 7 }
 0x1f3   :  { %436 = vperm.xlu1 %4284, %v5066_v37   ;;  %848 = vperm.xlu0 %4330, %v5189_v19  }
 0x1f6   :  { %v5230_v35 = vpop.permute.xlu2 %192 }
 0x1f7   :  { %8017 = vst [vmem:[#allocation24_spill] sm:$0xff] %v5230_v35 }
 0x1fa   :  { %442 = vperm.xlu2 %4285, %v5066_v37  }
 0x1fb   :  { %4286 = vset.pattern.permute.xlu1 %v5020_v26  ;;  %4343 = vset.pattern.permute.xlu0 %v4977_v8 }
 0x1fe   :  { %v5238_v40 = vpop.permute.xlu2 %211 }
 0x1ff   :  { %8018 = vst [vmem:[#allocation25_spill] sm:$0xff] %v5238_v40 }
 0x202   :  { %4288 = vset.pattern.permute.xlu2 %v4971_v1 }
 0x203   :  { %448 = vperm.xlu1 %4286, %v5066_v37   ;;  %941 = vperm.xlu0 %4343, %v5202_v25   ;;  %v5233_v37 = vperm.slane %v5186_v18, 6 }
 0x205   :  { %v5296_v17 = vpop.permute.xlu1 %342 }
 0x206   :  { %v5243_v41 = vpop.permute.xlu2 %223  ;;  %8029 = vst [vmem:[#allocation36_spill] sm:$0xff] %v5296_v17 }
 0x207   :  { %8019 = vst [vmem:[#allocation26_spill] sm:$0xff] %v5243_v41  ;;  %v5384_v41 = vadd.s32 64, %v4971_v1 }
 0x20a   :  { %461 = vperm.xlu2 %4288, %v456_v28  }
 0x20b   :  { %4289 = vset.pattern.permute.xlu1 %v5002_v20  ;;  %4348 = vset.pattern.permute.xlu0 %v4971_v1 }
 0x20e   :  { %v5248_v42 = vpop.permute.xlu2 %242 }
 0x20f   :  { %8020 = vst [vmem:[#allocation27_spill] sm:$0xff] %v5248_v42 }
 0x212   :  { %4290 = vset.pattern.permute.xlu2 %v5020_v26 }
 0x213   :  { %467 = vperm.xlu1 %4289, %v456_v28   ;;  %973 = vperm.xlu0 %4348, %v5215_v30  }
 0x216   :  { %v5253_v43 = vpop.permute.xlu2 %254 }
 0x21a   :  { %473 = vperm.xlu2 %4290, %v456_v28  }
 0x21b   :  { %4291 = vset.pattern.permute.xlu1 %v4977_v8  ;;  %4349 = vset.pattern.permute.xlu0 %v5002_v20 }
 0x222   :  { %4293 = vset.pattern.permute.xlu2 %v5002_v20 }
 0x223   :  { %479 = vperm.xlu1 %4291, %v456_v28   ;;  %879 = vperm.xlu0 %4349, %v5226_v34  }
 0x22a   :  { %492 = vperm.xlu2 %4293, %v5074_v38  }
 0x22b   :  { %4294 = vset.pattern.permute.xlu1 %v5020_v26  ;;  %1004 = vperm.xlu0 %4349, %v5233_v37  }
 0x232   :  { %4295 = vset.pattern.permute.xlu2 %v4977_v8 }
 0x233   :  { %498 = vperm.xlu1 %4294, %v5074_v38   ;;  %4354 = vset.pattern.permute.xlu0 %v5020_v26 }
 0x23a   :  { %504 = vperm.xlu2 %4295, %v5074_v38   ;;  %v5260_v38 = vpop.permute.xlu2 %273 }
 0x23b   :  { %4296 = vset.pattern.permute.xlu1 %v4971_v1  ;;  %148 = vperm.xlu0 %4354, %v4994_v15   ;;  %v5262_v15 = vpop.permute.xlu0 %392 }
 0x23c   :  { %8022 = vst [vmem:[#allocation29_spill] sm:$0xff] %v5262_v15 }
 0x242   :  { %4298 = vset.pattern.permute.xlu2 %v5020_v26 }
 0x243   :  { %511 = vperm.xlu1 %4296, %v5082_v39   ;;  %298 = vperm.xlu0 %4354, %v5060_v36   ;;  %v5267_v36 = vpop.permute.xlu2 %286  ;;  %v5269_v47 = vpop.permute.xlu0 %454 }
 0x244   :  { %8023 = vst [vmem:[#allocation30_spill] sm:$0xff] %v5267_v36  ;;  %v693_v36 = vperm.slane %v5094_v46, 2 }
 0x245   :  { %8024 = vst [vmem:[#allocation31_spill] sm:$0xff] %v5269_v47 }
 0x24a   :  { %523 = vperm.xlu2 %4298, %v5082_v39  }
 0x24b   :  { %4299 = vset.pattern.permute.xlu1 %v4977_v8  ;;  %423 = vperm.xlu0 %4354, %v5167_v6   ;;  %v5276_v53 = vpop.permute.xlu2 %304  ;;  %v5278_v55 = vpop.permute.xlu0 %486  ;;  %v5281_v6 = vperm.slane %v5186_v18, 2 }
 0x24c   :  { %8025 = vst [vmem:[#allocation32_spill] sm:$0xff] %v5276_v53 }
 0x24d   :  { %8026 = vst [vmem:[#allocation33_spill] sm:$0xff] %v5278_v55  ;;  %v5308_v55 = vpop.permute.xlu1 %354 }
 0x24e   :  { %8030 = vst [vmem:[#allocation37_spill] sm:$0xff] %v5308_v55 }
 0x252   :  { %4300 = vset.pattern.permute.xlu2 %v4971_v1 }
 0x253   :  { %529 = vperm.xlu1 %4299, %v5082_v39   ;;  %660 = vperm.xlu0 %4354, %v643_v45   ;;  %v5285_v39 = vpop.permute.xlu2 %317  ;;  %v5287_v13 = vpop.permute.xlu0 %517 }
 0x254   :  { %8027 = vst [vmem:[#allocation34_spill] sm:$0xff] %v5285_v39 }
 0x255   :  { %v5317_v44 = vpop.permute.xlu1 %373 }
 0x256   :  { %8032 = vst [vmem:[#allocation39_spill] sm:$0xff] %v5317_v44  ;;  %v1460_v44 = vperm.slane %v5037_v31, 1 }
 0x258   :  { %v5339_v3 = vpack.i.bf16 %v1460_v44, %v5330_v12 }
 0x25a   :  { %648 = vperm.xlu2 %4300, %v643_v45  }
 0x25b   :  { %4301 = vset.pattern.permute.xlu1 %v5002_v20  ;;  %785 = vperm.xlu0 %4354, %v5272_v48   ;;  %v5294_v16 = vpop.permute.xlu2 %336  ;;  %v5298_v28 = vpop.permute.xlu0 %691 }
 0x25c   :  { %8028 = vst [vmem:[#allocation35_spill] sm:$0xff] %v5294_v16  ;;  %v5322_v16 = vadd.s32 80, %v4971_v1 }
 0x25d   :  { %v5332_v39 = vpop.permute.xlu1 %386 }
 0x262   :  { %4302 = vset.pattern.permute.xlu2 %v4977_v8 }
 0x263   :  { %910 = vperm.xlu0 %4354, %v5281_v6   ;;  %654 = vperm.xlu1 %4301, %v643_v45   ;;  %v5310_v47 = vpop.permute.xlu0 %723 }
 0x264   :  { %8031 = vst [vmem:[#allocation38_spill] sm:$0xff] %v5310_v47 }
 0x26a   :  { %666 = vperm.xlu2 %4302, %v643_v45   ;;  %v5306_v45 = vpop.permute.xlu2 %348 }
 0x26b   :  { %1035 = vperm.xlu0 %4354, %v5290_v14   ;;  %4303 = vset.pattern.permute.xlu1 %v4971_v1  ;;  %v5319_v17 = vpop.permute.xlu0 %754 }
 0x26c   :  { %8033 = vst [vmem:[#allocation40_spill] sm:$0xff] %v5319_v17 }
 0x272   :  { %4304 = vset.pattern.permute.xlu2 %v5002_v20  ;;  %v5315_v15 = vpop.permute.xlu2 %367 }
 0x273   :  { %4426 = vset.pattern.permute.xlu0 %v5301_v0  ;;  %673 = vperm.xlu1 %4303, %v5101_v50   ;;  %v5335_v53 = vpop.permute.xlu0 %816 }
 0x274   :  { %8035 = vst [vmem:[#allocation42_spill] sm:$0xff] %v5335_v53  ;;  %v5357_v53 = vperm.slane %v4984_v11, 0 }
 0x27a   :  { %679 = vperm.xlu2 %4304, %v5101_v50   ;;  %v5327_v55 = vpop.permute.xlu2 %379 }
 0x27b   :  { %4428 = vperm.xlu0 %4426, %v5006_v22   ;;  %4305 = vset.pattern.permute.xlu1 %v5020_v26  ;;  %8034 = vst [vmem:[#allocation41_spill] sm:$0xff] %v5327_v55  ;;  %v5345_v55 = vpop.permute.xlu1 %404  ;;  %v5347_v7 = vpop.permute.xlu0 %848 }
 0x27c   :  { %8037 = vst [vmem:[#allocation44_spill] sm:$0xff] %v5347_v7 }
 0x282   :  { %4307 = vset.pattern.permute.xlu2 %v4971_v1 }
 0x283   :  { %4456 = vset.pattern.permute.xlu0 %v5322_v16  ;;  %685 = vperm.xlu1 %4305, %v5101_v50   ;;  %v5343_v50 = vpop.permute.xlu2 %398  ;;  %v5359_v17 = vpop.permute.xlu1 %417 }
 0x284   :  { %8036 = vst [vmem:[#allocation43_spill] sm:$0xff] %v5343_v50  ;;  %v1260_v50 = vperm.slane %v4984_v11, 1  ;;  %v5362_v62 = vpop.permute.xlu0 %941 }
 0x285   :  { %8039 = vst [vmem:[#allocation46_spill] sm:$0xff] %v5359_v17 }
 0x286   :  { %8040 = vst [vmem:[#allocation47_spill] sm:$0xff] %v5362_v62  ;;  %v5365_v7 = vpack.i.bf16 %v1260_v50, %v5357_v53 }
 0x28a   :  { %698 = vperm.xlu2 %4307, %v693_v36  }
 0x28b   :  { %4458 = vperm.xlu0 %4456, %v5339_v3   ;;  %4308 = vset.pattern.permute.xlu1 %v5002_v20  ;;  %v5354_v44 = vpop.permute.xlu2 %411 }
 0x28c   :  { %8038 = vst [vmem:[#allocation45_spill] sm:$0xff] %v5354_v44  ;;  %v5371_v44 = vpop.permute.xlu1 %436  ;;  %v5373_v61 = vpop.permute.xlu0 %973 }
 0x28d   :  { %8042 = vst [vmem:[#allocation49_spill] sm:$0xff] %v5371_v44 }
 0x292   :  { %4309 = vset.pattern.permute.xlu2 %v5020_v26 }
 0x293   :  { %4462 = vset.pattern.permute.xlu0 %v5350_v63  ;;  %704 = vperm.xlu1 %4308, %v693_v36   ;;  %v5369_v42 = vpop.permute.xlu2 %429 }
 0x294   :  { %8041 = vst [vmem:[#allocation48_spill] sm:$0xff] %v5369_v42  ;;  %v5379_v50 = vpop.permute.xlu1 %448 }
 0x295   :  { %8043 = vst [vmem:[#allocation50_spill] sm:$0xff] %v5379_v50  ;;  %v5381_v17 = vpop.permute.xlu0 %879 }
 0x29a   :  { %710 = vperm.xlu2 %4309, %v693_v36  }
 0x29b   :  { %4464 = vperm.xlu0 %4462, %v5365_v7   ;;  %4310 = vset.pattern.permute.xlu1 %v4977_v8  ;;  %v5377_v62 = vpop.permute.xlu2 %442 }
 0x29c   :  { %v5391_v42 = vpop.permute.xlu1 %467 }
 0x29d   :  { %8044 = vst [vmem:[#allocation51_spill] sm:$0xff] %v5391_v42 }
 0x2a2   :  { %4312 = vset.pattern.permute.xlu2 %v5002_v20 }
 0x2a3   :  { %4493 = vperm.xlu0 %4462, %v5098_v49   ;;  %716 = vperm.xlu1 %4310, %v693_v36   ;;  %v5389_v44 = vpop.permute.xlu2 %461  ;;  %v5393_v36 = vpop.permute.xlu0 %1004 }
 0x2a4   :  { %8045 = vst [vmem:[#allocation52_spill] sm:$0xff] %v5393_v36  ;;  %v5400_v47 = vpop.permute.xlu1 %479 }
 0x2aa   :  { %729 = vperm.xlu2 %4312, %v5110_v52  }
 0x2ab   :  { %4497 = vset.pattern.permute.xlu0 %v5384_v41  ;;  %4313 = vset.pattern.permute.xlu1 %v5020_v26  ;;  %v5398_v50 = vpop.permute.xlu2 %473 }
 0x2ac   :  { %8046 = vst [vmem:[#allocation53_spill] sm:$0xff] %v5398_v50  ;;  %v5409_v36 = vpop.permute.xlu1 %498 }
 0x2ad   :  { %v5402_v40 = vpop.permute.xlu0 %148 }
 0x2ae   :  { %8047 = vst [vmem:[#allocation54_spill] sm:$0xff] %v5402_v40 }
 0x2b2   :  { %4314 = vset.pattern.permute.xlu2 %v4977_v8 }
 0x2b3   :  { %4499 = vperm.xlu0 %4497, %v5004_v21   ;;  %735 = vperm.xlu1 %4313, %v5110_v52   ;;  %v5407_v42 = vpop.permute.xlu2 %492 }
 0x2b4   :  { %8048 = vst [vmem:[#allocation55_spill] sm:$0xff] %v5407_v42 }
 0x2b5   :  { %v5412_v2 = vpop.permute.xlu0 %298  ;;  %v5417_v35 = vpop.permute.xlu1 %511 }
 0x2b6   :  { %8049 = vst [vmem:[#allocation56_spill] sm:$0xff] %v5412_v2  ;;  %v580_v2 = vmul.f32 %v5357_v53, %v5199_v24 }
 0x2b7   :  { %8051 = vst [vmem:[#allocation58_spill] sm:$0xff] %v5417_v35 }
 0x2ba   :  { %741 = vperm.xlu2 %4314, %v5110_v52  }
 0x2bb   :  { %4528 = vperm.xlu0 %4497, %v5103_v51   ;;  %4315 = vset.pattern.permute.xlu1 %v4971_v1  ;;  %v5415_v50 = vpop.permute.xlu2 %504 }
 0x2bc   :  { %8050 = vst [vmem:[#allocation57_spill] sm:$0xff] %v5415_v50 }
 0x2bd   :  { %v5423_v58 = vpop.permute.xlu0 %423 }
 0x2c2   :  { %4317 = vset.pattern.permute.xlu2 %v5020_v26 }
 0x2c3   :  { %748 = vperm.xlu1 %4315, %v5119_v54   ;;  %v5421_v52 = vpop.permute.xlu2 %523 }
 0x2c4   :  { %8052 = vst [vmem:[#allocation59_spill] sm:$0xff] %v5421_v52  ;;  %v533_v52 = vrot.slane %v4984_v11, 1 }
 0x2c5   :  { %v5425_v42 = vpop.permute.xlu1 %529  ;;  %v5433_v29 = vpop.permute.xlu0 %660 }
 0x2c6   :  { %8053 = vst [vmem:[#allocation60_spill] sm:$0xff] %v5425_v42  ;;  %v5442_v24 = vperm.slane %v533_v52, 0 }
 0x2c7   :  { %8055 = vst [vmem:[#allocation62_spill] sm:$0xff] %v5433_v29 }
 0x2ca   :  { %760 = vperm.xlu2 %4317, %v5119_v54  }
 0x2cb   :  { %4318 = vset.pattern.permute.xlu1 %v4977_v8  ;;  %v5431_v50 = vpop.permute.xlu2 %648 }
 0x2cc   :  { %8054 = vst [vmem:[#allocation61_spill] sm:$0xff] %v5431_v50 }
 0x2cd   :  { %v5440_v40 = vpop.permute.xlu0 %785 }
 0x2d2   :  { %4319 = vset.pattern.permute.xlu2 %v4971_v1 }
 0x2d3   :  { %766 = vperm.xlu1 %4318, %v5119_v54   ;;  %v5437_v42 = vpop.permute.xlu2 %666 }
 0x2d4   :  { %8056 = vst [vmem:[#allocation63_spill] sm:$0xff] %v5437_v42  ;;  %v586_v42 = vmul.f32 %v5442_v24, %v5223_v33 }
 0x2d5   :  { %v655_v35 = vpop.permute.xlu1 %654 }
 0x2d6   :  { %v1044_v32 = vsub.f32 %v580_v2, %v655_v35  ;;  %v1050_v52 = vsub.f32 %v586_v42, %v5298_v28 }
 0x2d8   :  { %v1109_v56 = vmul.f32 1.442695, %v1044_v32 }
 0x2da   :  { %773 = vperm.xlu2 %4319, %v5272_v48   ;;  %4555 = vpow2.f32 %v1109_v56  ;;  %v583_v56 = vmul.f32 %v5442_v24, %v5207_v27  ;;  %v534_v27 = vrot.slane %v4984_v11, 2 }
 0x2db   :  { %4320 = vset.pattern.permute.xlu1 %v5002_v20  ;;  %v5449_v2 = vpop.permute.xlu2 %679 }
 0x2dc   :  { %8057 = vst [vmem:[#allocation64_spill] sm:$0xff] %v5449_v2  ;;  %v1121_v2 = vmul.f32 1.442695, %v1050_v52 }
 0x2e0   :  { %v4556_v54 = vpop.eup %4555 }
 0x2e1   :  { %1706 = vrot.lane.b32.xlu0 %v4556_v54, %s4918_s2  ;;  %v5455_v54 = vpop.permute.xlu0 %910 }
 0x2e2   :  { %4321 = vset.pattern.permute.xlu2 %v4977_v8  ;;  %8058 = vst [vmem:[#allocation65_spill] sm:$0xff] %v5455_v54  ;;  %v537_v54 = vrot.slane %v4984_v11, 5 }
 0x2e3   :  { %779 = vperm.xlu1 %4320, %v5272_v48  }
 0x2e4   :  { %v5458_v50 = vpop.permute.xlu2 %698 }
 0x2e5   :  { %v674_v32 = vpop.permute.xlu1 %673 }
 0x2e6   :  { %v1047_v35 = vsub.f32 %v583_v56, %v674_v32  ;;  %v5461_v56 = vperm.slane %v534_v27, 0 }
 0x2e8   :  { %v1115_v29 = vmul.f32 1.442695, %v1047_v35 }
 0x2e9   :  { %v5468_v42 = vpop.permute.xlu0 %1035 }
 0x2ea   :  { %4557 = vpow2.f32 %v1115_v29  ;;  %791 = vperm.xlu2 %4321, %v5272_v48   ;;  %v589_v29 = vmul.f32 %v5461_v56, %v5136_v59  ;;  %8059 = vst [vmem:[#allocation66_spill] sm:$0xff] %v5468_v42 }
 0x2eb   :  { %4322 = vset.pattern.permute.xlu1 %v4971_v1  ;;  %4559 = vpow2.f32 %v1121_v2 }
 0x2f0   :  { %v4558_v51 = vpop.eup %4557 }
 0x2f1   :  { %1753 = vrot.lane.b32.xlu0 %v4558_v51, %s4918_s2  ;;  %v4560_v32 = vpop.eup %4559  ;;  %v535_v51 = vrot.slane %v4984_v11, 3  ;;  %v5474_v2 = vpop.permute.xlu0 %4428 }
 0x2f2   :  { %4323 = vset.pattern.permute.xlu2 %v5002_v20 }
 0x2f3   :  { %798 = vperm.xlu1 %4322, %v5128_v57   ;;  %v5476_v35 = vperm.slane %v535_v51, 0 }
 0x2f4   :  { %v711_v33 = vpop.permute.xlu2 %710 }
 0x2f5   :  { %v1053_v48 = vsub.f32 %v589_v29, %v711_v33  ;;  %v592_v52 = vmul.f32 %v5476_v35, %v5140_v60 }
 0x2f7   :  { %v1127_v28 = vmul.f32 1.442695, %v1053_v48 }
 0x2f9   :  { %4561 = vpow2.f32 %v1127_v28  ;;  %1759 = vrot.lane.b32.xlu0 %v4560_v32, %s4918_s2  ;;  %v818_v28 = vperm.slane %v5094_v46, 7  ;;  %v5491_v46 = vpop.permute.xlu1 %685 }
 0x2fa   :  { %804 = vperm.xlu2 %4323, %v5128_v57  }
 0x2fb   :  { %4324 = vset.pattern.permute.xlu1 %v5020_v26 }
 0x2fd   :  { %v5483_v29 = vpop.permute.xlu0 %4458 }
 0x2ff   :  { %v4562_v59 = vpop.eup %4561 }
 0x301   :  { %1806 = vrot.lane.b32.xlu0 %v4562_v59, %s4918_s2 }
 0x302   :  { %4326 = vset.pattern.permute.xlu2 %v4971_v1 }
 0x303   :  { %810 = vperm.xlu1 %4324, %v5128_v57  }
 0x304   :  { %v730_v27 = vpop.permute.xlu2 %729 }
 0x305   :  { %v1056_v33 = vsub.f32 %v592_v52, %v730_v27  ;;  %v5494_v52 = vpop.permute.xlu1 %704 }
 0x307   :  { %v1133_v48 = vmul.f32 1.442695, %v1056_v33  ;;  %v536_v33 = vrot.slane %v4984_v11, 4 }
 0x309   :  { %4563 = vpow2.f32 %v1133_v48  ;;  %v5504_v48 = vperm.slane %v536_v33, 0 }
 0x30a   :  { %823 = vperm.xlu2 %4326, %v818_v28  }
 0x30b   :  { %4327 = vset.pattern.permute.xlu1 %v5002_v20  ;;  %8060 = vst [vmem:[#allocation67_spill] sm:$0xff] %v5504_v48 }
 0x30d   :  { %v4465_v32 = vpop.permute.xlu0 %4464 }
 0x30e   :  { %v4466_v51 = vunpack.i.l.bf16 %v4465_v32  ;;  %v4467_v59 = vunpack.i.h.bf16 %v4465_v32  ;;  %v595_v32 = vmul.f32 %v5504_v48, %v5161_v4  ;;  %v598_v4 = vmul.f32 %v5504_v48, %v5253_v43 }
 0x30f   :  { %v4564_v42 = vpop.eup %4563  ;;  %v538_v43 = vrot.slane %v4984_v11, 6 }
 0x310   :  { %1853 = vrot.lane.b32.xlu0 %v4564_v42, %s4918_s2  ;;  %v1639_v57 = vsel %vm1635_vm4, %v4466_v51, 1.0  ;;  %v1643_v60 = vsel %vm1635_vm4, %v4467_v59, 1.0 }
 0x311   :  { %1732 = vmatpush.msra.mxu1 %v1639_v57  ;;  %4226 = vmatpush.msra.mxu3 %v1639_v57 }
 0x312   :  { %1781 = vmatpush.msrb.mxu2 %v1643_v60  ;;  %4328 = vset.pattern.permute.xlu2 %v5020_v26 }
 0x313   :  { %829 = vperm.xlu1 %4327, %v818_v28  }
 0x315   :  { %v5497_v42 = vpop.permute.xlu1 %716 }
 0x31a   :  { %835 = vperm.xlu2 %4328, %v818_v28  }
 0x31b   :  { %4329 = vset.pattern.permute.xlu1 %v4977_v8 }
 0x322   :  { %4331 = vset.pattern.permute.xlu2 %v5002_v20 }
 0x323   :  { %841 = vperm.xlu1 %4329, %v818_v28   ;;  %v5510_v28 = vpop.permute.xlu2 %741 }
 0x324   :  { %8061 = vst [vmem:[#allocation68_spill] sm:$0xff] %v5510_v28 }
 0x325   :  { %v5501_v27 = vpop.permute.xlu1 %735 }
 0x32a   :  { %854 = vperm.xlu2 %4331, %v5189_v19  }
 0x32b   :  { %4332 = vset.pattern.permute.xlu1 %v5020_v26  ;;  %v5514_v60 = vpop.permute.xlu2 %760 }
 0x32c   :  { %8062 = vst [vmem:[#allocation69_spill] sm:$0xff] %v5514_v60 }
 0x332   :  { %4333 = vset.pattern.permute.xlu2 %v4977_v8 }
 0x333   :  { %860 = vperm.xlu1 %4332, %v5189_v19  }
 0x335   :  { %v749_v51 = vpop.permute.xlu1 %748 }
 0x336   :  { %v1059_v59 = vsub.f32 %v595_v32, %v749_v51  ;;  %v5522_v32 = vpop.permute.xlu2 %773 }
 0x337   :  { %8063 = vst [vmem:[#allocation70_spill] sm:$0xff] %v5522_v32 }
 0x338   :  { %v1139_v57 = vmul.f32 1.442695, %v1059_v59 }
 0x33a   :  { %4565 = vpow2.f32 %v1139_v57  ;;  %866 = vperm.xlu2 %4333, %v5189_v19   ;;  %v5524_v19 = vperm.slane %v537_v54, 0  ;;  %v5534_v54 = vperm.slane %v538_v43, 0 }
 0x33b   :  { %4334 = vset.pattern.permute.xlu1 %v4971_v1 }
 0x33c   :  { %v601_v57 = vmul.f32 %v5524_v19, %v5260_v38 }
 0x340   :  { %v4566_v33 = vpop.eup %4565 }
 0x341   :  { %1900 = vrot.lane.b32.xlu0 %v4566_v33, %s4918_s2  ;;  %v1065_v33 = vsub.f32 %v601_v57, %v5440_v40  ;;  %v604_v40 = vmul.f32 %v5534_v54, %v5164_v5 }
 0x342   :  { %4335 = vset.pattern.permute.xlu2 %v5020_v26 }
 0x343   :  { %873 = vperm.xlu1 %4334, %v5226_v34   ;;  %v1151_v32 = vmul.f32 1.442695, %v1065_v33 }
 0x344   :  { %v5531_v28 = vpop.permute.xlu2 %791 }
 0x345   :  { %v767_v51 = vpop.permute.xlu1 %766 }
 0x346   :  { %v1062_v59 = vsub.f32 %v598_v4, %v767_v51 }
 0x348   :  { %v1145_v60 = vmul.f32 1.442695, %v1062_v59 }
 0x34a   :  { %4567 = vpow2.f32 %v1145_v60  ;;  %885 = vperm.xlu2 %4335, %v5226_v34  }
 0x34b   :  { %4336 = vset.pattern.permute.xlu1 %v4977_v8  ;;  %4569 = vpow2.f32 %v1151_v32 }
 0x350   :  { %v4568_v48 = vpop.eup %4567 }
 0x351   :  { %1906 = vrot.lane.b32.xlu0 %v4568_v48, %s4918_s2  ;;  %v4570_v51 = vpop.eup %4569  ;;  %v539_v48 = vrot.slane %v4984_v11, 7 }
 0x352   :  { %4337 = vset.pattern.permute.xlu2 %v4971_v1 }
 0x353   :  { %891 = vperm.xlu1 %4336, %v5226_v34   ;;  %v5545_v59 = vperm.slane %v539_v48, 0 }
 0x354   :  { %v805_v38 = vpop.permute.xlu2 %804 }
 0x355   :  { %v1068_v60 = vsub.f32 %v604_v40, %v805_v38  ;;  %v607_v5 = vmul.f32 %v5545_v59, %v5173_v9  ;;  %v5557_v40 = vpop.permute.xlu1 %779  ;;  %v943_v38 = vperm.slane %v5186_v18, 4 }
 0x357   :  { %v1157_v4 = vmul.f32 1.442695, %v1068_v60 }
 0x359   :  { %4571 = vpow2.f32 %v1157_v4  ;;  %1953 = vrot.lane.b32.xlu0 %v4570_v51, %s4918_s2  ;;  %v610_v4 = vmul.f32 %v5545_v59, %v5176_v10  ;;  %v613_v10 = vmul.f32 %v5330_v12, %v5306_v45  ;;  %v541_v45 = vrot.slane %v5037_v31, 2 }
 0x35a   :  { %898 = vperm.xlu2 %4337, %v5281_v6  }
 0x35b   :  { %4338 = vset.pattern.permute.xlu1 %v5002_v20 }
 0x35f   :  { %v4572_v32 = vpop.eup %4571 }
 0x361   :  { %2000 = vrot.lane.b32.xlu0 %v4572_v32, %s4918_s2 }
 0x362   :  { %4339 = vset.pattern.permute.xlu2 %v4977_v8 }
 0x363   :  { %904 = vperm.xlu1 %4338, %v5281_v6  }
 0x364   :  { %v824_v34 = vpop.permute.xlu2 %823 }
 0x365   :  { %v1071_v57 = vsub.f32 %v607_v5, %v824_v34  ;;  %v5561_v9 = vpop.permute.xlu1 %798  ;;  %v540_v34 = vrot.slane %v5037_v31, 1 }
 0x367   :  { %v1163_v33 = vmul.f32 1.442695, %v1071_v57 }
 0x369   :  { %4573 = vpow2.f32 %v1163_v33 }
 0x36a   :  { %916 = vperm.xlu2 %4339, %v5281_v6  }
 0x36b   :  { %4340 = vset.pattern.permute.xlu1 %v4971_v1 }
 0x36f   :  { %v4574_v43 = vpop.eup %4573 }
 0x370   :  { %2047 = vrot.lane.b32.xlu0 %v4574_v43, %s4918_s2  ;;  %v5586_v43 = vperm.slane %v540_v34, 0  ;;  %v5596_v34 = vperm.slane %v541_v45, 0 }
 0x372   :  { %4341 = vset.pattern.permute.xlu2 %v5002_v20 }
 0x373   :  { %923 = vperm.xlu1 %4340, %v5202_v25  }
 0x374   :  { %v5574_v51 = vpop.permute.xlu2 %835 }
 0x375   :  { %v5565_v6 = vpop.permute.xlu1 %810 }
 0x37a   :  { %929 = vperm.xlu2 %4341, %v5202_v25  }
 0x37b   :  { %4342 = vset.pattern.permute.xlu1 %v5020_v26 }
 0x382   :  { %4344 = vset.pattern.permute.xlu2 %v4971_v1 }
 0x383   :  { %935 = vperm.xlu1 %4342, %v5202_v25  }
 0x384   :  { %v5577_v18 = vpop.permute.xlu2 %854 }
 0x385   :  { %v5569_v60 = vpop.permute.xlu1 %829 }
 0x38a   :  { %948 = vperm.xlu2 %4344, %v943_v38  }
 0x38b   :  { %4345 = vset.pattern.permute.xlu1 %v5002_v20 }
 0x392   :  { %4346 = vset.pattern.permute.xlu2 %v5020_v26 }
 0x393   :  { %954 = vperm.xlu1 %4345, %v943_v38  }
 0x394   :  { %v5584_v57 = vpop.permute.xlu2 %866 }
 0x395   :  { %v842_v48 = vpop.permute.xlu1 %841  ;;  %8064 = vst [vmem:[#allocation71_spill] sm:$0xff] %v5584_v57 }
 0x396   :  { %v1074_v32 = vsub.f32 %v610_v4, %v842_v48  ;;  %v616_v48 = vmul.f32 %v5586_v43, %v5315_v15  ;;  %v619_v15 = vmul.f32 %v5596_v34, %v5332_v39  ;;  %v622_v39 = vmul.f32 %v5596_v34, %v5345_v55 }
 0x398   :  { %v1169_v25 = vmul.f32 1.442695, %v1074_v32 }
 0x39a   :  { %4575 = vpow2.f32 %v1169_v25  ;;  %960 = vperm.xlu2 %4346, %v943_v38   ;;  %v1080_v25 = vsub.f32 %v616_v48, %v5381_v17 }
 0x39b   :  { %4347 = vset.pattern.permute.xlu1 %v4977_v8 }
 0x3a0   :  { %v4576_v5 = vpop.eup %4575 }
 0x3a1   :  { %2053 = vrot.lane.b32.xlu0 %v4576_v5, %s4918_s2  ;;  %v1181_v5 = vmul.f32 1.442695, %v1080_v25 }
 0x3a2   :  { %4350 = vset.pattern.permute.xlu2 %v5002_v20 }
 0x3a3   :  { %966 = vperm.xlu1 %4347, %v943_v38  }
 0x3a4   :  { %v5593_v38 = vpop.permute.xlu2 %885 }
 0x3a5   :  { %v861_v33 = vpop.permute.xlu1 %860 }
 0x3a6   :  { %v1077_v4 = vsub.f32 %v613_v10, %v861_v33 }
 0x3a8   :  { %v1175_v32 = vmul.f32 1.442695, %v1077_v4 }
 0x3aa   :  { %4577 = vpow2.f32 %v1175_v32  ;;  %979 = vperm.xlu2 %4350, %v5215_v30  }
 0x3ab   :  { %4351 = vset.pattern.permute.xlu1 %v5020_v26  ;;  %4579 = vpow2.f32 %v1181_v5 }
 0x3b0   :  { %v4578_v57 = vpop.eup %4577 }
 0x3b1   :  { %2100 = vrot.lane.b32.xlu0 %v4578_v57, %s4918_s2  ;;  %v4580_v4 = vpop.eup %4579 }
 0x3b2   :  { %4352 = vset.pattern.permute.xlu2 %v4977_v8 }
 0x3b3   :  { %985 = vperm.xlu1 %4351, %v5215_v30  }
 0x3b4   :  { %v899_v17 = vpop.permute.xlu2 %898 }
 0x3b5   :  { %v1083_v10 = vsub.f32 %v619_v15, %v899_v17 }
 0x3b7   :  { %v1187_v33 = vmul.f32 1.442695, %v1083_v10 }
 0x3b9   :  { %4581 = vpow2.f32 %v1187_v33  ;;  %2147 = vrot.lane.b32.xlu0 %v4580_v4, %s4918_s2  ;;  %v543_v33 = vrot.slane %v5037_v31, 4 }
 0x3ba   :  { %991 = vperm.xlu2 %4352, %v5215_v30  }
 0x3bb   :  { %4353 = vset.pattern.permute.xlu1 %v4971_v1 }
 0x3bf   :  { %v4582_v57 = vpop.eup %4581 }
 0x3c1   :  { %2194 = vrot.lane.b32.xlu0 %v4582_v57, %s4918_s2  ;;  %v5645_v57 = vperm.slane %v543_v33, 0 }
 0x3c2   :  { %4355 = vset.pattern.permute.xlu2 %v5020_v26  ;;  %v5616_v26 = vpop.permute.xlu1 %873 }
 0x3c3   :  { %998 = vperm.xlu1 %4353, %v5233_v37  }
 0x3c4   :  { %v917_v48 = vpop.permute.xlu2 %916 }
 0x3c5   :  { %v1086_v32 = vsub.f32 %v622_v39, %v917_v48  ;;  %v628_v39 = vmul.f32 %v5645_v57, %v5377_v62 }
 0x3c7   :  { %v1193_v25 = vmul.f32 1.442695, %v1086_v32  ;;  %v1285_v32 = vperm.slane %v4984_v11, 2 }
 0x3c9   :  { %4583 = vpow2.f32 %v1193_v25  ;;  %v1310_v25 = vperm.slane %v4984_v11, 3 }
 0x3ca   :  { %1010 = vperm.xlu2 %4355, %v5233_v37   ;;  %v5620_v55 = vpop.permute.xlu1 %891 }
 0x3cb   :  { %4356 = vset.pattern.permute.xlu1 %v4977_v8 }
 0x3cf   :  { %v4584_v30 = vpop.eup %4583 }
 0x3d0   :  { %2200 = vrot.lane.b32.xlu0 %v4584_v30, %s4918_s2 }
 0x3d2   :  { %4357 = vset.pattern.permute.xlu2 %v4971_v1 }
 0x3d3   :  { %1016 = vperm.xlu1 %4356, %v5233_v37   ;;  %v542_v37 = vrot.slane %v5037_v31, 3 }
 0x3d5   :  { %v5624_v45 = vpop.permute.xlu1 %904  ;;  %v5631_v5 = vperm.slane %v542_v37, 0 }
 0x3da   :  { %1023 = vperm.xlu2 %4357, %v5290_v14  }
 0x3db   :  { %4358 = vset.pattern.permute.xlu1 %v5002_v20  ;;  %v5637_v20 = vpop.permute.xlu2 %929 }
 0x3e2   :  { %4359 = vset.pattern.permute.xlu2 %v4977_v8  ;;  %v625_v8 = vmul.f32 %v5631_v5, %v5423_v58  ;;  %v544_v58 = vrot.slane %v5037_v31, 5 }
 0x3e3   :  { %1029 = vperm.xlu1 %4358, %v5290_v14  }
 0x3e4   :  { %v5641_v10 = vpop.permute.xlu2 %948  ;;  %v5656_v37 = vperm.slane %v544_v58, 0 }
 0x3e5   :  { %v5628_v1 = vpop.permute.xlu1 %923 }
 0x3e6   :  { %v634_v11 = vmul.f32 %v5656_v37, %v5400_v47 }
 0x3ea   :  { %1041 = vperm.xlu2 %4359, %v5290_v14  }
 0x3eb   :  { %4360 = vset.pattern.permute.xlu1 %v5384_v41 }
 0x3f2   :  { %4366 = vset.pattern.permute.xlu2 %v5301_v0 }
 0x3f3   :  { %4362 = vperm.xlu1 %4360, %v5365_v7  }
 0x3f4   :  { %v5652_v48 = vpop.permute.xlu2 %960 }
 0x3f5   :  { %v936_v15 = vpop.permute.xlu1 %935 }
 0x3f6   :  { %v1089_v17 = vsub.f32 %v625_v8, %v936_v15  ;;  %v631_v15 = vmul.f32 %v5656_v37, %v5389_v44 }
 0x3f8   :  { %v1199_v14 = vmul.f32 1.442695, %v1089_v17 }
 0x3fa   :  { %4585 = vpow2.f32 %v1199_v14  ;;  %4368 = vperm.xlu2 %4366, %v5365_v7   ;;  %v4379_v14 = vpack.i.bf16 %v1310_v25, %v1285_v32  ;;  %v545_v32 = vrot.slane %v5037_v31, 6 }
 0x3fb   :  { %4372 = vset.pattern.permute.xlu1 %v5322_v16 }
 0x400   :  { %v4586_v4 = vpop.eup %4585 }
 0x401   :  { %2247 = vrot.lane.b32.xlu0 %v4586_v4, %s4918_s2 }
 0x402   :  { %4378 = vset.pattern.permute.xlu2 %v5384_v41 }
 0x403   :  { %4374 = vperm.xlu1 %4372, %v5365_v7   ;;  %v1095_v7 = vsub.f32 %v631_v15, %v5373_v61 }
 0x404   :  { %v5662_v62 = vpop.permute.xlu2 %979 }
 0x405   :  { %v955_v30 = vpop.permute.xlu1 %954  ;;  %v1211_v33 = vmul.f32 1.442695, %v1095_v7 }
 0x406   :  { %v1092_v8 = vsub.f32 %v628_v39, %v955_v30  ;;  %v5671_v30 = vperm.slane %v545_v32, 0  ;;  %v5705_v32 = vpop.permute.xlu0 %4493 }
 0x408   :  { %v1205_v17 = vmul.f32 1.442695, %v1092_v8  ;;  %8065 = vst [vmem:[#allocation72_spill] sm:$0xff] %v5671_v30  ;;  %v637_v47 = vmul.f32 %v5671_v30, %v5409_v36 }
 0x40a   :  { %4587 = vpow2.f32 %v1205_v17  ;;  %4380 = vperm.xlu2 %4378, %v4379_v14  }
 0x40b   :  { %4384 = vset.pattern.permute.xlu1 %v5301_v0  ;;  %4589 = vpow2.f32 %v1211_v33 }
 0x410   :  { %v4588_v4 = vpop.eup %4587 }
 0x411   :  { %2294 = vrot.lane.b32.xlu0 %v4588_v4, %s4918_s2  ;;  %v4590_v39 = vpop.eup %4589 }
 0x412   :  { %4390 = vset.pattern.permute.xlu2 %v5322_v16 }
 0x413   :  { %4386 = vperm.xlu1 %4384, %v4379_v14  }
 0x414   :  { %v992_v44 = vpop.permute.xlu2 %991 }
 0x415   :  { %v1098_v58 = vsub.f32 %v634_v11, %v992_v44  ;;  %v5682_v33 = vpop.permute.xlu1 %966  ;;  %v546_v11 = vrot.slane %v5037_v31, 7 }
 0x417   :  { %v1217_v61 = vmul.f32 1.442695, %v1098_v58  ;;  %v5697_v44 = vperm.slane %v546_v11, 0 }
 0x419   :  { %4591 = vpow2.f32 %v1217_v61  ;;  %2341 = vrot.lane.b32.xlu0 %v4590_v39, %s4918_s2  ;;  %8068 = vst [vmem:[#allocation75_spill] sm:$0xff] %v5697_v44 }
 0x41a   :  { %4392 = vperm.xlu2 %4390, %v4379_v14  }
 0x41b   :  { %4396 = vset.pattern.permute.xlu1 %v5350_v63 }
 0x41f   :  { %v4592_v25 = vpop.eup %4591 }
 0x421   :  { %2347 = vrot.lane.b32.xlu0 %v4592_v25, %s4918_s2 }
 0x422   :  { %4402 = vset.pattern.permute.xlu2 %v5301_v0 }
 0x423   :  { %4398 = vperm.xlu1 %4396, %v4379_v14  }
 0x424   :  { %v1011_v8 = vpop.permute.xlu2 %1010 }
 0x425   :  { %v1101_v15 = vsub.f32 %v637_v47, %v1011_v8  ;;  %v5686_v36 = vpop.permute.xlu1 %985 }
 0x427   :  { %v1223_v17 = vmul.f32 1.442695, %v1101_v15 }
 0x429   :  { %4593 = vpow2.f32 %v1223_v17 }
 0x42a   :  { %4404 = vperm.xlu2 %4402, %v5004_v21  }
 0x42b   :  { %4408 = vset.pattern.permute.xlu1 %v5322_v16 }
 0x42f   :  { %v4594_v7 = vpop.eup %4593 }
 0x430   :  { %2394 = vrot.lane.b32.xlu0 %v4594_v7, %s4918_s2 }
 0x432   :  { %4414 = vset.pattern.permute.xlu2 %v5350_v63 }
 0x433   :  { %4410 = vperm.xlu1 %4408, %v5004_v21  }
 0x434   :  { %v5709_v47 = vpop.permute.xlu2 %1023 }
 0x435   :  { %v5690_v14 = vpop.permute.xlu1 %998  ;;  %8069 = vst [vmem:[#allocation76_spill] sm:$0xff] %v5709_v47 }
 0x436   :  { %8066 = vst [vmem:[#allocation73_spill] sm:$0xff] %v5690_v14 }
 0x43a   :  { %4416 = vperm.xlu2 %4414, %v5004_v21   ;;  %v640_v21 = vmul.f32 %v5697_v44, %v5287_v13 }
 0x43b   :  { %4420 = vset.pattern.permute.xlu1 %v5384_v41 }
 0x442   :  { %4432 = vset.pattern.permute.xlu2 %v5322_v16 }
 0x443   :  { %4422 = vperm.xlu1 %4420, %v5006_v22  }
 0x444   :  { %v5715_v13 = vpop.permute.xlu2 %1041 }
 0x445   :  { %v5694_v4 = vpop.permute.xlu1 %1016  ;;  %8070 = vst [vmem:[#allocation77_spill] sm:$0xff] %v5715_v13 }
 0x446   :  { %8067 = vst [vmem:[#allocation74_spill] sm:$0xff] %v5694_v4 }
 0x44a   :  { %4434 = vperm.xlu2 %4432, %v5006_v22  }
 0x44b   :  { %4438 = vset.pattern.permute.xlu1 %v5350_v63 }
 0x452   :  { %4444 = vset.pattern.permute.xlu2 %v5384_v41 }
 0x453   :  { %4440 = vperm.xlu1 %4438, %v5006_v22   ;;  %v5712_v22 = vpop.permute.xlu0 %4499 }
 0x454   :  { %v4369_v17 = vpop.permute.xlu2 %4368 }
 0x455   :  { %v1030_v58 = vpop.permute.xlu1 %1029 }
 0x456   :  { %v1104_v61 = vsub.f32 %v640_v21, %v1030_v58 }
 0x458   :  { %v1229_v39 = vmul.f32 1.442695, %v1104_v61  ;;  %v4370_v61 = vunpack.i.l.bf16 %v4369_v17 }
 0x45a   :  { %4595 = vpow2.f32 %v1229_v39  ;;  %4446 = vperm.xlu2 %4444, %v5339_v3   ;;  %v4371_v39 = vunpack.i.h.bf16 %v4369_v17  ;;  %v1637_v47 = vsel %vm1635_vm4, %v4370_v61, 1.0  ;;  %v1535_v61 = vperm.slane %v5037_v31, 4 }
 0x45b   :  { %4450 = vset.pattern.permute.xlu1 %v5301_v0  ;;  %v5718_v15 = vpop.permute.xlu0 %4528 }
 0x45c   :  { %8071 = vst [vmem:[#allocation78_spill] sm:$0xff] %v5718_v15 }
 0x460   :  { %v4596_v25 = vpop.eup %4595 }
 0x461   :  { %2441 = vrot.lane.b32.xlu0 %v4596_v25, %s4918_s2 }
 0x462   :  { %4468 = vset.pattern.permute.xlu2 %v5350_v63 }
 0x463   :  { %4452 = vperm.xlu1 %4450, %v5339_v3   ;;  %v5722_v11 = vpop.permute.xlu0 %1706 }
 0x464   :  { %v4381_v4 = vpop.permute.xlu2 %4380 }
 0x465   :  { %v4363_v8 = vpop.permute.xlu1 %4362 }
 0x466   :  { %v4364_v13 = vunpack.i.l.bf16 %v4363_v8  ;;  %v4365_v15 = vunpack.i.h.bf16 %v4363_v8 }
 0x468   :  { %v1636_v17 = vsel %vm1635_vm4, %v4364_v13, 1.0 }
 0x46a   :  { %4470 = vperm.xlu2 %4468, %v5339_v3  }
 0x46b   :  { %4474 = vset.pattern.permute.xlu1 %v5384_v41 }
 0x472   :  { %4480 = vset.pattern.permute.xlu2 %v5301_v0 }
 0x473   :  { %4476 = vperm.xlu1 %4474, %v5098_v49  }
 0x474   :  { %v4393_v8 = vpop.permute.xlu2 %4392 }
 0x475   :  { %v4375_v7 = vpop.permute.xlu1 %4374 }
 0x476   :  { %v4376_v21 = vunpack.i.l.bf16 %v4375_v7  ;;  %v4377_v58 = vunpack.i.h.bf16 %v4375_v7  ;;  %v1641_v7 = vsel %vm1635_vm4, %v4371_v39, 1.0 }
 0x478   :  { %v1638_v3 = vsel %vm1635_vm4, %v4376_v21, 1.0  ;;  %v1642_v25 = vsel %vm1635_vm4, %v4377_v58, 1.0  ;;  %v1640_v21 = vsel %vm1635_vm4, %v4365_v15, 1.0  ;;  %v1754_v58 = vpop.permute.xlu0 %1753 }
 0x479   :  { %1733 = vmatpush.msra.mxu1 %v1638_v3  ;;  %4227 = vmatpush.msra.mxu3 %v1638_v3 }
 0x47a   :  { %1782 = vmatpush.msrb.mxu2 %v1642_v25  ;;  %4482 = vperm.xlu2 %4480, %v5098_v49  }
 0x47b   :  { %4486 = vset.pattern.permute.xlu1 %v5322_v16  ;;  %1734 = vmatpush.msra.mxu1 %v1637_v47 }
 0x47c   :  { %4228 = vmatpush.msra.mxu3 %v1637_v47  ;;  %1783 = vmatpush.msrb.mxu2 %v1641_v7  ;;  %v1560_v47 = vperm.slane %v5037_v31, 5 }
 0x47d   :  { %1735 = vmatpush.msra.mxu1 %v1636_v17 }
 0x47e   :  { %4229 = vmatpush.msra.mxu3 %v1636_v17  ;;  %1784 = vmatpush.msrb.mxu2 %v1640_v21  ;;  %v4504_v39 = vpack.i.bf16 %v1560_v47, %v1535_v61  ;;  %v4394_v21 = vunpack.i.l.bf16 %v4393_v8  ;;  %v4395_v61 = vunpack.i.h.bf16 %v4393_v8  ;;  %v4383_v8 = vunpack.i.h.bf16 %v4381_v4 }
 0x47f   :  { %4160 = vmatmul.msk.f32.vlgmr.msrb.gmra.mxu2 %vm78_vm0, %v1754_v58 }
 0x482   :  { %4503 = vset.pattern.permute.xlu2 %v5384_v41 }
 0x483   :  { %4488 = vperm.xlu1 %4486, %v5098_v49  }
 0x484   :  { %v4405_v13 = vpop.permute.xlu2 %4404 }
 0x485   :  { %v4387_v15 = vpop.permute.xlu1 %4386 }
 0x486   :  { %v4388_v14 = vunpack.i.l.bf16 %v4387_v15  ;;  %v4389_v30 = vunpack.i.h.bf16 %v4387_v15  ;;  %v1648_v15 = vsel %vm1635_vm4, %v4383_v8, 1.0 }
 0x48a   :  { %4505 = vperm.xlu2 %4503, %v4504_v39  }
 0x48b   :  { %4509 = vset.pattern.permute.xlu1 %v5301_v0 }
 0x492   :  { %4515 = vset.pattern.permute.xlu2 %v5322_v16 }
 0x493   :  { %4511 = vperm.xlu1 %4509, %v4504_v39  }
 0x494   :  { %v4417_v3 = vpop.permute.xlu2 %4416 }
 0x495   :  { %v4419_v25 = vunpack.i.h.bf16 %v4417_v3  ;;  %v4399_v7 = vpop.permute.xlu1 %4398  ;;  %v4418_v41 = vunpack.i.l.bf16 %v4417_v3  ;;  %v1646_v3 = vsel %vm1635_vm4, %v4394_v21, 1.0 }
 0x496   :  { %v4400_v17 = vunpack.i.l.bf16 %v4399_v7  ;;  %v4401_v49 = vunpack.i.h.bf16 %v4399_v7  ;;  %v4382_v7 = vunpack.i.l.bf16 %v4381_v4  ;;  %v4406_v4 = vunpack.i.l.bf16 %v4405_v13 }
 0x497   :  { %v1655_v58 = vsel %vm1635_vm4, %v4418_v41, 1.0  ;;  %v1659_v31 = vsel %vm1635_vm4, %v4419_v25, 1.0  ;;  %v1650_v25 = vsel %vm1635_vm4, %v4395_v61, 1.0  ;;  %v1645_v41 = vsel %vm1635_vm4, %v4388_v14, 1.0 }
 0x498   :  { %1928 = vmatpush.msrb.mxu1 %v1655_v58  ;;  %1977 = vmatpush.msra.mxu2 %v1659_v31  ;;  %v1647_v47 = vsel %vm1635_vm4, %v4400_v17, 1.0  ;;  %v1651_v44 = vsel %vm1635_vm4, %v4401_v49, 1.0  ;;  %v1649_v17 = vsel %vm1635_vm4, %v4389_v30, 1.0  ;;  %v4407_v31 = vunpack.i.h.bf16 %v4405_v13 }
 0x499   :  { %1830 = vmatpush.msrb.mxu3 %v1647_v47  ;;  %1879 = vmatpush.msrb.mxu0 %v1651_v44  ;;  %v1644_v44 = vsel %vm1635_vm4, %v4382_v7, 1.0  ;;  %v4501_v30 = vunpack.i.l.bf16 %v5712_v22  ;;  %v4502_v47 = vunpack.i.h.bf16 %v5712_v22  ;;  %v8073_v7 = vld [vmem:[#allocation61_spill] sm:$0xff] }
 0x49a   :  { %4517 = vperm.xlu2 %4515, %v4504_v39   ;;  %v1657_v13 = vsel %vm1635_vm4, %v4407_v31, 1.0 }
 0x49b   :  { %4521 = vset.pattern.permute.xlu1 %v5350_v63  ;;  %1831 = vmatpush.msrb.mxu3 %v1646_v3  ;;  %v579_v3 = vmul.f32 %v5357_v53, %v5194_v23  ;;  %v1652_v8 = vsel %vm1635_vm4, %v4501_v30, 1.0  ;;  %v1656_v22 = vsel %vm1635_vm4, %v4502_v47, 1.0  ;;  %v8074_v23 = vld [vmem:[#allocation54_spill] sm:$0xff] }
 0x49c   :  { %1880 = vmatpush.msrb.mxu0 %v1650_v25 }
 0x49d   :  { %1832 = vmatpush.msrb.mxu3 %v1645_v41  ;;  %v1043_v25 = vsub.f32 %v579_v3, %v8073_v7  ;;  %v8079_v3 = vld [vmem:[#allocation23_spill] sm:$0xff] }
 0x49e   :  { %1881 = vmatpush.msrb.mxu0 %v1649_v17  ;;  %v581_v17 = vmul.f32 %v5357_v53, %v8074_v23  ;;  %v8081_v23 = vld [vmem:[#allocation14_spill] sm:$0xff] }
 0x49f   :  { %1833 = vmatpush.msrb.mxu3 %v1644_v44  ;;  %v1107_v41 = vmul.f32 1.442695, %v1043_v25  ;;  %v8075_v44 = vld [vmem:[#allocation13_spill] sm:$0xff] }
 0x4a0   :  { %1882 = vmatpush.msrb.mxu0 %v1648_v15  ;;  %v582_v15 = vmul.f32 %v5357_v53, %v8075_v44  ;;  %v585_v53 = vmul.f32 %v5442_v24, %v8079_v3 }
 0x4a1   :  { %4597 = vpow2.f32 %v1107_v41 }
 0x4a2   :  { %4532 = vset.pattern.permute.xlu2 %v5301_v0  ;;  %v8072_v0 = vld [vmem:[#allocation12_spill] sm:$0xff] }
 0x4a3   :  { %4523 = vperm.xlu1 %4521, %v4504_v39   ;;  %v1653_v39 = vsel %vm1635_vm4, %v4406_v4, 1.0 }
 0x4a4   :  { %v5772_v4 = vpop.permute.xlu2 %4434 }
 0x4a5   :  { %v4411_v49 = vpop.permute.xlu1 %4410 }
 0x4a6   :  { %v4413_v21 = vunpack.i.h.bf16 %v4411_v49  ;;  %v4412_v58 = vunpack.i.l.bf16 %v4411_v49 }
 0x4a7   :  { %v4598_v47 = vpop.eup %4597 }
 0x4a8   :  { %v1654_v14 = vsel %vm1635_vm4, %v4412_v58, 1.0  ;;  %v1658_v61 = vsel %vm1635_vm4, %v4413_v21, 1.0  ;;  %v8077_v21 = vld [vmem:[#allocation63_spill] sm:$0xff] }
 0x4a9   :  { %1929 = vmatpush.msrb.mxu1 %v1654_v14  ;;  %1978 = vmatpush.msra.mxu2 %v1658_v61  ;;  %v1046_v58 = vsub.f32 %v582_v15, %v8077_v21  ;;  %v8078_v61 = vld [vmem:[#allocation22_spill] sm:$0xff] }
 0x4aa   :  { %4534 = vperm.xlu2 %4532, %v8072_v0   ;;  %v584_v30 = vmul.f32 %v5442_v24, %v8078_v61  ;;  %v587_v24 = vmul.f32 %v5461_v56, %v8081_v23 }
 0x4ab   :  { %4538 = vset.pattern.permute.xlu1 %v5322_v16  ;;  %1930 = vmatpush.msrb.mxu1 %v1653_v39  ;;  %v8076_v16 = vld [vmem:[#allocation62_spill] sm:$0xff]  ;;  %v1113_v14 = vmul.f32 1.442695, %v1046_v58 }
 0x4ac   :  { %1979 = vmatpush.msra.mxu2 %v1657_v13  ;;  %v1045_v49 = vsub.f32 %v581_v17, %v8076_v16  ;;  %v1049_v13 = vsub.f32 %v585_v53, %v5491_v46  ;;  %v1051_v15 = vsub.f32 %v587_v24, %v5458_v50  ;;  %v8083_v53 = vld [vmem:[#allocation18_spill] sm:$0xff] }
 0x4ad   :  { %1931 = vmatpush.msrb.mxu1 %v1652_v8 }
 0x4ae   :  { %1980 = vmatpush.msra.mxu2 %v1656_v22  ;;  %v1111_v31 = vmul.f32 1.442695, %v1045_v49  ;;  %v1119_v22 = vmul.f32 1.442695, %v1049_v13  ;;  %v4461_v49 = vunpack.i.h.bf16 %v5483_v29  ;;  %v1123_v61 = vmul.f32 1.442695, %v1051_v15 }
 0x4b0   :  { %4599 = vpow2.f32 %v1111_v31  ;;  %v4437_v31 = vunpack.i.h.bf16 %v5772_v4 }
 0x4b1   :  { %4601 = vpow2.f32 %v1113_v14 }
 0x4b2   :  { %4544 = vset.pattern.permute.xlu2 %v5350_v63  ;;  %v8080_v63 = vld [vmem:[#allocation64_spill] sm:$0xff]  ;;  %v1666_v23 = vsel %vm1635_vm4, %v4437_v31, 1.0 }
 0x4b3   :  { %4540 = vperm.xlu1 %4538, %v8072_v0   ;;  %v1048_v39 = vsub.f32 %v584_v30, %v8080_v63  ;;  %v4431_v30 = vunpack.i.h.bf16 %v5474_v2  ;;  %v590_v63 = vmul.f32 %v5461_v56, %v8083_v53 }
 0x4b4   :  { %v5782_v7 = vpop.permute.xlu2 %4446 }
 0x4b5   :  { %v5784_v25 = vpop.permute.xlu1 %4422  ;;  %v1117_v8 = vmul.f32 1.442695, %v1048_v39  ;;  %v1674_v39 = vsel %vm1635_vm4, %v4461_v49, 1.0  ;;  %v1054_v24 = vsub.f32 %v590_v63, %v5497_v42  ;;  %v8087_v42 = vld [vmem:[#allocation15_spill] sm:$0xff] }
 0x4b6   :  { %v4600_v41 = vpop.eup %4599 }
 0x4b7   :  { %v4602_v17 = vpop.eup %4601  ;;  %4603 = vpow2.f32 %v1117_v8  ;;  %v8084_v8 = vld [vmem:[#allocation25_spill] sm:$0xff]  ;;  %v1129_v15 = vmul.f32 1.442695, %v1054_v24 }
 0x4b8   :  { %4605 = vpow2.f32 %v1119_v22  ;;  %v591_v22 = vmul.f32 %v5476_v35, %v8084_v8  ;;  %v8089_v8 = vld [vmem:[#allocation27_spill] sm:$0xff] }
 0x4b9   :  { %4607 = vpow2.f32 %v1123_v61  ;;  %v594_v61 = vmul.f32 %v5476_v35, %v8087_v42 }
 0x4ba   :  { %4546 = vperm.xlu2 %4544, %v8072_v0   ;;  %v8082_v0 = vld [vmem:[#allocation24_spill] sm:$0xff] }
 0x4bb   :  { %1704 = vrot.lane.b32.xlu1 %v4598_v47, %s4918_s2  ;;  %v588_v44 = vmul.f32 %v5461_v56, %v8082_v0  ;;  %v8085_v56 = vld [vmem:[#allocation38_spill] sm:$0xff]  ;;  %v1665_v0 = vsel %vm1635_vm4, %v4431_v30, 1.0  ;;  %v8088_v30 = vld [vmem:[#allocation68_spill] sm:$0xff] }
 0x4bd   :  { %v1052_v46 = vsub.f32 %v588_v44, %v5494_v52  ;;  %v4604_v3 = vpop.eup %4603 }
 0x4be   :  { %v4606_v13 = vpop.eup %4605 }
 0x4bf   :  { %v1125_v47 = vmul.f32 1.442695, %v1052_v46  ;;  %v4608_v49 = vpop.eup %4607 }
 0x4c1   :  { %4609 = vpow2.f32 %v1125_v47  ;;  %v1058_v47 = vsub.f32 %v594_v61, %v8088_v30  ;;  %v8095_v61 = vld [vmem:[#allocation20_spill] sm:$0xff]  ;;  %v8096_v30 = vld [vmem:[#allocation70_spill] sm:$0xff] }
 0x4c2   :  { %1708 = vrot.lane.b32.xlu2 %v4600_v41, %s4918_s2  ;;  %v4425_v41 = vunpack.i.h.bf16 %v5784_v25  ;;  %4611 = vpow2.f32 %v1129_v15 }
 0x4c3   :  { %1710 = vrot.lane.b32.xlu1 %v4602_v17, %s4918_s2  ;;  %v1055_v17 = vsub.f32 %v591_v22, %v8085_v56  ;;  %v8090_v22 = vld [vmem:[#allocation67_spill] sm:$0xff] }
 0x4c4   :  { %v5794_v16 = vpop.permute.xlu2 %4470  ;;  %v1664_v44 = vsel %vm1635_vm4, %v4425_v41, 1.0  ;;  %v596_v41 = vmul.f32 %v8090_v22, %v8089_v8 }
 0x4c5   :  { %v4473_v21 = vunpack.i.h.bf16 %v5794_v16  ;;  %v5798_v58 = vpop.permute.xlu1 %4440  ;;  %v1131_v46 = vmul.f32 1.442695, %v1055_v17  ;;  %v8092_v17 = vld [vmem:[#allocation40_spill] sm:$0xff] }
 0x4c6   :  { %v4443_v14 = vunpack.i.h.bf16 %v5798_v58 }
 0x4c7   :  { %v1675_v50 = vsel %vm1635_vm4, %v4473_v21, 1.0  ;;  %v8086_v21 = vld [vmem:[#allocation26_spill] sm:$0xff]  ;;  %4613 = vpow2.f32 %v1131_v46 }
 0x4c8   :  { %2173 = vmatpush.msrb.mxu2 %v1675_v50  ;;  %v1667_v52 = vsel %vm1635_vm4, %v4443_v14, 1.0  ;;  %v593_v31 = vmul.f32 %v5476_v35, %v8086_v21  ;;  %v4610_v14 = vpop.eup %4609 }
 0x4c9   :  { %2075 = vmatpush.msra.mxu0 %v1667_v52 }
 0x4ca   :  { %1755 = vrot.lane.b32.xlu2 %v4604_v3, %s4918_s2  ;;  %2174 = vmatpush.msrb.mxu2 %v1674_v39  ;;  %v1057_v50 = vsub.f32 %v593_v31, %v5501_v27  ;;  %v4449_v3 = vunpack.i.h.bf16 %v5782_v7  ;;  %v1137_v39 = vmul.f32 1.442695, %v1058_v47  ;;  %v8094_v31 = vld [vmem:[#allocation17_spill] sm:$0xff] }
 0x4cb   :  { %1757 = vrot.lane.b32.xlu1 %v4606_v13, %s4918_s2  ;;  %2076 = vmatpush.msra.mxu0 %v1666_v23  ;;  %v4612_v13 = vpop.eup %4611  ;;  %v8091_v23 = vld [vmem:[#allocation16_spill] sm:$0xff] }
 0x4cc   :  { %v1135_v63 = vmul.f32 1.442695, %v1057_v50  ;;  %v597_v24 = vmul.f32 %v8090_v22, %v8091_v23  ;;  %v1672_v56 = vsel %vm1635_vm4, %v4449_v3, 1.0  ;;  %v600_v50 = vmul.f32 %v5524_v19, %v8095_v61  ;;  %v8098_v22 = vld [vmem:[#allocation30_spill] sm:$0xff] }
 0x4cd   :  { %2077 = vmatpush.msra.mxu0 %v1665_v0  ;;  %v4614_v27 = vpop.eup %4613  ;;  %v1060_v0 = vsub.f32 %v596_v41, %v8092_v17  ;;  %v603_v41 = vmul.f32 %v5534_v54, %v8098_v22  ;;  %v8099_v17 = vld [vmem:[#allocation56_spill] sm:$0xff] }
 0x4ce   :  { %4615 = vpow2.f32 %v1135_v63  ;;  %v1064_v3 = vsub.f32 %v600_v50, %v5557_v40 }
 0x4cf   :  { %2078 = vmatpush.msra.mxu0 %v1664_v44  ;;  %4617 = vpow2.f32 %v1137_v39  ;;  %v8093_v44 = vld [vmem:[#allocation69_spill] sm:$0xff]  ;;  %v1141_v46 = vmul.f32 1.442695, %v1060_v0  ;;  %v1067_v40 = vsub.f32 %v603_v41, %v5561_v9 }
 0x4d0   :  { %v1061_v15 = vsub.f32 %v597_v24, %v8093_v44  ;;  %v1149_v63 = vmul.f32 1.442695, %v1064_v3  ;;  %v8100_v44 = vld [vmem:[#allocation32_spill] sm:$0xff] }
 0x4d1   :  { %4619 = vpow2.f32 %v1141_v46  ;;  %v1155_v24 = vmul.f32 1.442695, %v1067_v40  ;;  %v8101_v46 = vld [vmem:[#allocation42_spill] sm:$0xff] }
 0x4d2   :  { %1802 = vrot.lane.b32.xlu2 %v4608_v49, %s4918_s2  ;;  %v1143_v49 = vmul.f32 1.442695, %v1061_v15  ;;  %v606_v15 = vmul.f32 %v5534_v54, %v8100_v44  ;;  %v8108_v44 = vld [vmem:[#allocation28_spill] sm:$0xff] }
 0x4d3   :  { %1804 = vrot.lane.b32.xlu1 %v4610_v14, %s4918_s2  ;;  %v599_v14 = vmul.f32 %v5524_v19, %v8094_v31 }
 0x4d4   :  { %v4616_v21 = vpop.eup %4615  ;;  %4621 = vpow2.f32 %v1143_v49  ;;  %v1070_v49 = vsub.f32 %v606_v15, %v8101_v46  ;;  %v5864_v9 = vpop.permute.xlu2 %4482  ;;  %v615_v15 = vmul.f32 %v5586_v43, %v8108_v44 }
 0x4d5   :  { %v5826_v52 = vpop.permute.xlu1 %4452  ;;  %v4618_v42 = vpop.eup %4617  ;;  %v1063_v47 = vsub.f32 %v599_v14, %v8096_v30 }
 0x4d6   :  { %v4455_v53 = vunpack.i.h.bf16 %v5826_v52  ;;  %v1161_v31 = vmul.f32 1.442695, %v1070_v49 }
 0x4d7   :  { %v4620_v39 = vpop.eup %4619 }
 0x4d8   :  { %v1673_v35 = vsel %vm1635_vm4, %v4455_v53, 1.0  ;;  %v1147_v53 = vmul.f32 1.442695, %v1063_v47 }
 0x4d9   :  { %2175 = vmatpush.msrb.mxu2 %v1673_v35  ;;  %v8097_v35 = vld [vmem:[#allocation19_spill] sm:$0xff] }
 0x4da   :  { %1808 = vrot.lane.b32.xlu2 %v4612_v13, %s4918_s2  ;;  %v602_v13 = vmul.f32 %v5524_v19, %v8097_v35  ;;  %v4622_v8 = vpop.eup %4621  ;;  %4623 = vpow2.f32 %v1147_v53  ;;  %v605_v19 = vmul.f32 %v5534_v54, %v8099_v17  ;;  %v8103_v54 = vld [vmem:[#allocation21_spill] sm:$0xff]  ;;  %v8104_v35 = vld [vmem:[#allocation35_spill] sm:$0xff] }
 0x4db   :  { %1851 = vrot.lane.b32.xlu1 %v4614_v27, %s4918_s2  ;;  %2176 = vmatpush.msrb.mxu2 %v1672_v56  ;;  %4625 = vpow2.f32 %v1149_v63  ;;  %v609_v30 = vmul.f32 %v5545_v59, %v8103_v54  ;;  %v8107_v17 = vld [vmem:[#allocation37_spill] sm:$0xff] }
 0x4dc   :  { %v1066_v27 = vsub.f32 %v602_v13, %v5531_v28  ;;  %v1069_v28 = vsub.f32 %v605_v19, %v5565_v6  ;;  %v611_v13 = vmul.f32 %v5330_v12, %v8104_v35  ;;  %v614_v19 = vmul.f32 %v5330_v12, %v8107_v17  ;;  %v8111_v54 = vld [vmem:[#allocation41_spill] sm:$0xff] }
 0x4dd   :  { %v1073_v47 = vsub.f32 %v609_v30, %v5574_v51  ;;  %v618_v30 = vmul.f32 %v5586_v43, %v8111_v54  ;;  %v8115_v17 = vld [vmem:[#allocation45_spill] sm:$0xff]  ;;  %v5939_v54 = vpop.permute.xlu0 %1759 }
 0x4de   :  { %v1153_v23 = vmul.f32 1.442695, %v1066_v27 }
 0x4df   :  { %v1167_v63 = vmul.f32 1.442695, %v1073_v47 }
 0x4e0   :  { %v4624_v56 = vpop.eup %4623  ;;  %4627 = vpow2.f32 %v1153_v23 }
 0x4e1   :  { %v4626_v0 = vpop.eup %4625  ;;  %4629 = vpow2.f32 %v1155_v24 }
 0x4e2   :  { %1855 = vrot.lane.b32.xlu2 %v4616_v21, %s4918_s2  ;;  %v1159_v21 = vmul.f32 1.442695, %v1069_v28  ;;  %v8109_v28 = vld [vmem:[#allocation71_spill] sm:$0xff] }
 0x4e3   :  { %1857 = vrot.lane.b32.xlu1 %v4618_v42, %s4918_s2  ;;  %v8102_v42 = vld [vmem:[#allocation34_spill] sm:$0xff]  ;;  %v1078_v46 = vsub.f32 %v614_v19, %v8109_v28 }
 0x4e4   :  { %v608_v61 = vmul.f32 %v5545_v59, %v8102_v42  ;;  %4631 = vpow2.f32 %v1159_v21  ;;  %v5874_v3 = vpop.permute.xlu2 %4505  ;;  %v8105_v59 = vld [vmem:[#allocation36_spill] sm:$0xff]  ;;  %v8110_v42 = vld [vmem:[#allocation39_spill] sm:$0xff] }
 0x4e5   :  { %4633 = vpow2.f32 %v1161_v31  ;;  %v612_v22 = vmul.f32 %v5330_v12, %v8105_v59  ;;  %v5886_v40 = vpop.permute.xlu1 %4476  ;;  %v1177_v31 = vmul.f32 1.442695, %v1078_v46  ;;  %v8113_v59 = vld [vmem:[#allocation43_spill] sm:$0xff] }
 0x4e6   :  { %v4628_v14 = vpop.eup %4627  ;;  %v1072_v6 = vsub.f32 %v608_v61, %v5569_v60  ;;  %v8106_v60 = vld [vmem:[#allocation44_spill] sm:$0xff]  ;;  %v617_v61 = vmul.f32 %v5586_v43, %v8110_v42 }
 0x4e7   :  { %v4630_v50 = vpop.eup %4629  ;;  %v1075_v41 = vsub.f32 %v611_v13, %v8106_v60  ;;  %v1076_v51 = vsub.f32 %v612_v22, %v5577_v18  ;;  %v1079_v18 = vsub.f32 %v615_v15, %v5616_v26  ;;  %v1082_v26 = vsub.f32 %v618_v30, %v5620_v55  ;;  %v8112_v13 = vld [vmem:[#allocation29_spill] sm:$0xff] }
 0x4e8   :  { %v1165_v53 = vmul.f32 1.442695, %v1072_v6  ;;  %v1081_v6 = vsub.f32 %v617_v61, %v5593_v38  ;;  %v620_v43 = vmul.f32 %v5596_v34, %v8112_v13  ;;  %v621_v22 = vmul.f32 %v5596_v34, %v8113_v59  ;;  %v8114_v55 = vld [vmem:[#allocation65_spill] sm:$0xff] }
 0x4e9   :  { %v1171_v23 = vmul.f32 1.442695, %v1075_v41  ;;  %v1173_v24 = vmul.f32 1.442695, %v1076_v51  ;;  %v1179_v12 = vmul.f32 1.442695, %v1079_v18  ;;  %v623_v34 = vmul.f32 %v5631_v5, %v8115_v17 }
 0x4ea   :  { %1902 = vrot.lane.b32.xlu2 %v4620_v39, %s4918_s2  ;;  %v4632_v39 = vpop.eup %4631  ;;  %4635 = vpow2.f32 %v1165_v53  ;;  %v1084_v38 = vsub.f32 %v620_v43, %v5624_v45  ;;  %v1085_v60 = vsub.f32 %v621_v22, %v8114_v55  ;;  %v4472_v30 = vunpack.i.l.bf16 %v5794_v16  ;;  %v8120_v22 = vld [vmem:[#allocation50_spill] sm:$0xff]  ;;  %v8121_v55 = vld [vmem:[#allocation31_spill] sm:$0xff] }
 0x4eb   :  { %1904 = vrot.lane.b32.xlu1 %v4622_v8, %s4918_s2  ;;  %v4634_v8 = vpop.eup %4633  ;;  %4637 = vpow2.f32 %v1167_v63  ;;  %v1183_v63 = vmul.f32 1.442695, %v1081_v6  ;;  %v1087_v45 = vsub.f32 %v623_v34, %v5628_v1  ;;  %v4436_v17 = vunpack.i.l.bf16 %v5772_v4 }
 0x4ec   :  { %4639 = vpow2.f32 %v1171_v23  ;;  %v1189_v23 = vmul.f32 1.442695, %v1084_v38  ;;  %v1671_v16 = vsel %vm1635_vm4, %v4472_v30, 1.0  ;;  %v4424_v4 = vunpack.i.l.bf16 %v5784_v25 }
 0x4ed   :  { %4641 = vpow2.f32 %v1173_v24  ;;  %v1191_v24 = vmul.f32 1.442695, %v1085_v60  ;;  %v1195_v18 = vmul.f32 1.442695, %v1087_v45  ;;  %v4442_v60 = vunpack.i.l.bf16 %v5798_v58 }
 0x4ee   :  { %4643 = vpow2.f32 %v1177_v31  ;;  %v4484_v30 = vunpack.i.l.bf16 %v5864_v9 }
 0x4ef   :  { %4645 = vpow2.f32 %v1179_v12 }
 0x4f0   :  { %4647 = vpow2.f32 %v1183_v63 }
 0x4f2   :  { %1949 = vrot.lane.b32.xlu2 %v4624_v56, %s4918_s2  ;;  %v4636_v56 = vpop.eup %4635 }
 0x4f3   :  { %1951 = vrot.lane.b32.xlu1 %v4626_v0, %s4918_s2  ;;  %v4638_v0 = vpop.eup %4637 }
 0x4f4   :  { %v5884_v27 = vpop.permute.xlu2 %4517 }
 0x4f5   :  { %v5898_v21 = vpop.permute.xlu1 %4488 }
 0x4fa   :  { %1955 = vrot.lane.b32.xlu2 %v4628_v14, %s4918_s2  ;;  %v4640_v14 = vpop.eup %4639 }
 0x4fb   :  { %1998 = vrot.lane.b32.xlu1 %v4630_v50, %s4918_s2  ;;  %v4642_v50 = vpop.eup %4641 }
 0x4fc   :  { %v4644_v35 = vpop.eup %4643 }
 0x502   :  { %2002 = vrot.lane.b32.xlu2 %v4632_v39, %s4918_s2  ;;  %v1185_v39 = vmul.f32 1.442695, %v1082_v26  ;;  %v4460_v26 = vunpack.i.l.bf16 %v5483_v29 }
 0x503   :  { %2004 = vrot.lane.b32.xlu1 %v4634_v8, %s4918_s2  ;;  %v4646_v8 = vpop.eup %4645 }
 0x504   :  { %v5896_v49 = vpop.permute.xlu2 %4534  ;;  %4649 = vpow2.f32 %v1185_v39  ;;  %v1670_v59 = vsel %vm1635_vm4, %v4460_v26, 1.0  ;;  %v8124_v26 = vld [vmem:[#allocation33_spill] sm:$0xff] }
 0x505   :  { %v5910_v53 = vpop.permute.xlu1 %4511  ;;  %4651 = vpow2.f32 %v1189_v23 }
 0x506   :  { %4653 = vpow2.f32 %v1191_v24  ;;  %v5963_v24 = vpop.permute.xlu0 %1806 }
 0x507   :  { %4655 = vpow2.f32 %v1195_v18  ;;  %v8123_v18 = vld [vmem:[#allocation53_spill] sm:$0xff] }
 0x50a   :  { %2049 = vrot.lane.b32.xlu2 %v4636_v56, %s4918_s2  ;;  %v4648_v56 = vpop.eup %4647 }
 0x50b   :  { %2051 = vrot.lane.b32.xlu1 %v4638_v0, %s4918_s2  ;;  %v4650_v19 = vpop.eup %4649  ;;  %v8116_v0 = vld [vmem:[#allocation46_spill] sm:$0xff] }
 0x50c   :  { %v624_v44 = vmul.f32 %v5631_v5, %v8116_v0  ;;  %v4652_v12 = vpop.eup %4651 }
 0x50d   :  { %v4654_v61 = vpop.eup %4653 }
 0x50e   :  { %v1088_v15 = vsub.f32 %v624_v44, %v5637_v20  ;;  %v8119_v20 = vld [vmem:[#allocation47_spill] sm:$0xff]  ;;  %v4656_v29 = vpop.eup %4655  ;;  %v1662_v44 = vsel %vm1635_vm4, %v4436_v17, 1.0 }
 0x510   :  { %v1197_v31 = vmul.f32 1.442695, %v1088_v15  ;;  %v8122_v15 = vld [vmem:[#allocation51_spill] sm:$0xff] }
 0x512   :  { %2096 = vrot.lane.b32.xlu2 %v4640_v14, %s4918_s2  ;;  %v8117_v14 = vld [vmem:[#allocation48_spill] sm:$0xff]  ;;  %4657 = vpow2.f32 %v1197_v31 }
 0x513   :  { %2098 = vrot.lane.b32.xlu1 %v4642_v50, %s4918_s2  ;;  %v626_v42 = vmul.f32 %v5631_v5, %v8117_v14  ;;  %v8118_v50 = vld [vmem:[#allocation49_spill] sm:$0xff]  ;;  %v5986_v14 = vpop.permute.xlu0 %1853 }
 0x514   :  { %v5908_v47 = vpop.permute.xlu2 %4546  ;;  %v627_v1 = vmul.f32 %v5645_v57, %v8118_v50  ;;  %v4490_v50 = vunpack.i.l.bf16 %v5898_v21 }
 0x515   :  { %v5922_v51 = vpop.permute.xlu1 %4523  ;;  %v1090_v6 = vsub.f32 %v626_v42, %v8119_v20 }
 0x516   :  { %v1091_v5 = vsub.f32 %v627_v1, %v5641_v10  ;;  %v629_v10 = vmul.f32 %v5645_v57, %v8120_v22  ;;  %v8128_v22 = vld [vmem:[#allocation52_spill] sm:$0xff] }
 0x517   :  { %v1201_v13 = vmul.f32 1.442695, %v1090_v6 }
 0x518   :  { %v1203_v43 = vmul.f32 1.442695, %v1091_v5  ;;  %v4658_v38 = vpop.eup %4657  ;;  %v8125_v5 = vld [vmem:[#allocation72_spill] sm:$0xff] }
 0x519   :  { %4659 = vpow2.f32 %v1201_v13  ;;  %v8126_v13 = vld [vmem:[#allocation55_spill] sm:$0xff] }
 0x51a   :  { %2102 = vrot.lane.b32.xlu2 %v4644_v35, %s4918_s2  ;;  %v4454_v35 = vunpack.i.l.bf16 %v5826_v52  ;;  %v630_v52 = vmul.f32 %v5645_v57, %v8121_v55  ;;  %4661 = vpow2.f32 %v1203_v43  ;;  %v636_v43 = vmul.f32 %v8125_v5, %v8126_v13 }
 0x51b   :  { %2145 = vrot.lane.b32.xlu1 %v4646_v8, %s4918_s2  ;;  %v4448_v8 = vunpack.i.l.bf16 %v5782_v7  ;;  %v1093_v7 = vsub.f32 %v629_v10, %v5652_v48  ;;  %v1663_v48 = vsel %vm1635_vm4, %v4442_v60, 1.0 }
 0x51c   :  { %v5920_v41 = vpop.permute.xlu2 %1708  ;;  %v1669_v23 = vsel %vm1635_vm4, %v4454_v35, 1.0  ;;  %v4478_v35 = vunpack.i.l.bf16 %v5886_v40  ;;  %v1100_v10 = vsub.f32 %v636_v43, %v8128_v22  ;;  %v8137_v43 = vld [vmem:[#allocation77_spill] sm:$0xff] }
 0x51d   :  { %v1668_v58 = vsel %vm1635_vm4, %v4448_v8, 1.0  ;;  %v1207_v0 = vmul.f32 1.442695, %v1093_v7 }
 0x51e   :  { %v1676_v60 = vsel %vm1635_vm4, %v4478_v35, 1.0 }
 0x51f   :  { %v4660_v45 = vpop.eup %4659  ;;  %4663 = vpow2.f32 %v1207_v0  ;;  %v4507_v0 = vunpack.i.l.bf16 %v5874_v3 }
 0x522   :  { %2149 = vrot.lane.b32.xlu2 %v4648_v56, %s4918_s2  ;;  %v1094_v56 = vsub.f32 %v630_v52, %v5682_v33  ;;  %v4519_v52 = vunpack.i.l.bf16 %v5884_v27 }
 0x523   :  { %2151 = vrot.lane.b32.xlu1 %v4650_v19, %s4918_s2  ;;  %v4430_v19 = vunpack.i.l.bf16 %v5474_v2  ;;  %v4662_v2 = vpop.eup %4661 }
 0x524   :  { %v1756_v28 = vpop.permute.xlu2 %1755  ;;  %v1209_v33 = vmul.f32 1.442695, %v1094_v56  ;;  %v4513_v56 = vunpack.i.l.bf16 %v5910_v53 }
 0x525   :  { %v5932_v46 = vpop.permute.xlu1 %4540  ;;  %4161 = vmatmul.msk.f32.gmra.mxu2 %vm78_vm0, %v1756_v28  ;;  %v632_v28 = vmul.f32 %v5656_v37, %v8122_v15  ;;  %v1661_v31 = vsel %vm1635_vm4, %v4430_v19, 1.0  ;;  %v4664_v6 = vpop.eup %4663  ;;  %v8129_v19 = vld [vmem:[#allocation57_spill] sm:$0xff]  ;;  %v4496_v15 = vunpack.i.h.bf16 %v5705_v32 }
 0x526   :  { %4665 = vpow2.f32 %v1209_v33  ;;  %v1686_v33 = vsel %vm1635_vm4, %v4519_v52, 1.0 }
 0x527   :  { %v1096_v25 = vsub.f32 %v632_v28, %v5662_v62  ;;  %v8132_v28 = vld [vmem:[#allocation74_spill] sm:$0xff] }
 0x529   :  { %v1213_v62 = vmul.f32 1.442695, %v1096_v25  ;;  %v4526_v25 = vunpack.i.h.bf16 %v5922_v51 }
 0x52a   :  { %2196 = vrot.lane.b32.xlu2 %v4652_v12, %s4918_s2  ;;  %v4495_v12 = vunpack.i.l.bf16 %v5705_v32  ;;  %v1684_v32 = vsel %vm1635_vm4, %v4507_v0, 1.0 }
 0x52b   :  { %2198 = vrot.lane.b32.xlu1 %v4654_v61, %s4918_s2  ;;  %4667 = vpow2.f32 %v1213_v62 }
 0x52c   :  { %v5947_v63 = vpop.permute.xlu2 %1802 }
 0x52d   :  { %v1705_v39 = vpop.permute.xlu1 %1704 }
 0x52e   :  { %4156 = vmatmul.msk.f32.vlgmr.msra.gmra.mxu1 %vm78_vm0, %v1705_v39  ;;  %v635_v39 = vmul.f32 %v8125_v5, %v8124_v26 }
 0x52f   :  { %2124 = vmatpush.msra.mxu1 %v1671_v16  ;;  %v4666_v16 = vpop.eup %4665 }
 0x531   :  { %2125 = vmatpush.msra.mxu1 %v1670_v59  ;;  %v4525_v59 = vunpack.i.l.bf16 %v5922_v51  ;;  %v1683_v51 = vsel %vm1635_vm4, %v4496_v15, 1.0 }
 0x532   :  { %2243 = vrot.lane.b32.xlu2 %v4656_v29, %s4918_s2  ;;  %v1677_v29 = vsel %vm1635_vm4, %v4484_v30, 1.0  ;;  %v4485_v30 = vunpack.i.h.bf16 %v5864_v9  ;;  %v4479_v9 = vunpack.i.h.bf16 %v5886_v40 }
 0x533   :  { %2126 = vmatpush.msra.mxu1 %v1669_v23  ;;  %2245 = vrot.lane.b32.xlu1 %v4658_v38, %s4918_s2  ;;  %v1901_v38 = vpop.permute.xlu0 %1900  ;;  %v1687_v17 = vsel %vm1635_vm4, %v4525_v59, 1.0 }
 0x534   :  { %v5967_v57 = vpop.permute.xlu2 %1808  ;;  %v1681_v40 = vsel %vm1635_vm4, %v4485_v30, 1.0  ;;  %v1680_v59 = vsel %vm1635_vm4, %v4479_v9, 1.0 }
 0x535   :  { %2127 = vmatpush.msra.mxu1 %v1668_v58  ;;  %v1711_v34 = vpop.permute.xlu1 %1710  ;;  %v1221_v58 = vmul.f32 1.442695, %v1100_v10 }
 0x536   :  { %4157 = vmatmul.msk.f32.gmra.mxu1 %vm78_vm0, %v5722_v11  ;;  %4159 = vmatmul.msk.f32.vlgmr.msra.gmra.mxu3 %vm78_vm0, %v1711_v34  ;;  %v633_v11 = vmul.f32 %v5656_v37, %v8123_v18  ;;  %v1660_v37 = vsel %vm1635_vm4, %v4424_v4, 1.0  ;;  %v4668_v34 = vpop.eup %4667  ;;  %v8130_v4 = vld [vmem:[#allocation58_spill] sm:$0xff]  ;;  %v1685_v18 = vsel %vm1635_vm4, %v4513_v56, 1.0 }
 0x537   :  { %2026 = vmatpush.msra.mxu3 %v1663_v48  ;;  %v638_v48 = vmul.f32 %v8125_v5, %v8129_v19  ;;  %v4548_v19 = vunpack.i.l.bf16 %v5908_v47 }
 0x538   :  { %v1097_v42 = vsub.f32 %v633_v11, %v5686_v36  ;;  %v1679_v36 = vsel %vm1635_vm4, %v4495_v12, 1.0 }
 0x539   :  { %2027 = vmatpush.msra.mxu3 %v1662_v44  ;;  %v8131_v44 = vld [vmem:[#allocation75_spill] sm:$0xff] }
 0x53a   :  { %2249 = vrot.lane.b32.xlu2 %v4660_v45, %s4918_s2  ;;  %v1215_v20 = vmul.f32 1.442695, %v1097_v42  ;;  %v639_v45 = vmul.f32 %v8131_v44, %v8130_v4  ;;  %v4543_v4 = vunpack.i.h.bf16 %v5932_v46 }
 0x53b   :  { %2028 = vmatpush.msra.mxu3 %v1661_v31  ;;  %2292 = vrot.lane.b32.xlu1 %v4662_v2, %s4918_s2  ;;  %v1102_v2 = vsub.f32 %v638_v48, %v8132_v28  ;;  %v6031_v11 = vpop.permute.xlu0 %1906  ;;  %v8133_v31 = vld [vmem:[#allocation76_spill] sm:$0xff]  ;;  %v4542_v48 = vunpack.i.l.bf16 %v5932_v46  ;;  %v4537_v28 = vunpack.i.h.bf16 %v5896_v49 }
 0x53c   :  { %v5989_v61 = vpop.permute.xlu2 %1855  ;;  %4669 = vpow2.f32 %v1215_v20  ;;  %v1103_v12 = vsub.f32 %v639_v45, %v8133_v31  ;;  %v8138_v45 = vld [vmem:[#allocation78_spill] sm:$0xff] }
 0x53d   :  { %2029 = vmatpush.msra.mxu3 %v1660_v37  ;;  %v1758_v1 = vpop.permute.xlu1 %1757  ;;  %v4491_v37 = vunpack.i.h.bf16 %v5898_v21  ;;  %v1225_v62 = vmul.f32 1.442695, %v1102_v2  ;;  %v4514_v21 = vunpack.i.h.bf16 %v5910_v53  ;;  %v4508_v53 = vunpack.i.h.bf16 %v5874_v3 }
 0x53e   :  { %4158 = vmatmul.msk.f32.gmra.mxu1 %vm78_vm0, %v5920_v41  ;;  %4162 = vmatmul.msk.f32.gmra.mxu2 %vm78_vm0, %v1758_v1  ;;  %v1678_v41 = vsel %vm1635_vm4, %v4490_v50, 1.0  ;;  %v4520_v1 = vunpack.i.h.bf16 %v5884_v27  ;;  %v1691_v27 = vsel %vm1635_vm4, %v4526_v25, 1.0  ;;  %v4530_v15 = vunpack.i.l.bf16 %v8138_v45 }
 0x53f   :  { %4164 = vmatmul.msk.f32.vlgmr.msrb.gmra.mxu3 %vm78_vm0, %v5947_v63  ;;  %v8127_v63 = vld [vmem:[#allocation73_spill] sm:$0xff]  ;;  %v1688_v10 = vsel %vm1635_vm4, %v4508_v53, 1.0  ;;  %v1694_v46 = vsel %vm1635_vm4, %v4542_v48, 1.0 }
 0x540   :  { %2222 = vmatpush.msrb.mxu3 %v1679_v36  ;;  %v1099_v8 = vsub.f32 %v635_v39, %v8127_v63  ;;  %v1227_v36 = vmul.f32 1.442695, %v1103_v12  ;;  %v8135_v39 = vld [vmem:[#allocation60_spill] sm:$0xff]  ;;  %v1697_v12 = vsel %vm1635_vm4, %v4537_v28, 1.0 }
 0x541   :  { %v642_v35 = vmul.f32 %v8131_v44, %v8135_v39  ;;  %v6120_v39 = vpop.f32.mrf.mxu2 }
 0x542   :  { %2223 = vmatpush.msrb.mxu3 %v1678_v41  ;;  %2296 = vrot.lane.b32.xlu2 %v4664_v6, %s4918_s2  ;;  %v1219_v7 = vmul.f32 1.442695, %v1099_v8  ;;  %v8134_v6 = vld [vmem:[#allocation59_spill] sm:$0xff]  ;;  %v1690_v41 = vsel %vm1635_vm4, %v4520_v1, 1.0  ;;  %v1689_v8 = vsel %vm1635_vm4, %v4514_v21, 1.0  ;;  %vm2545_vm10 = vweird.f32 %v6120_v39 }
 0x543   :  { %2298 = vrot.lane.b32.xlu1 %v4666_v16, %s4918_s2  ;;  %v641_v26 = vmul.f32 %v8131_v44, %v8134_v6  ;;  %v8136_v16 = vld [vmem:[#allocation66_spill] sm:$0xff]  ;;  %v1106_v63 = vsub.f32 %v642_v35, %v8137_v43  ;;  %v1954_v22 = vpop.permute.xlu0 %1953  ;;  %v1695_v44 = vsel %vm1635_vm4, %v4548_v19, 1.0  ;;  %v2551_v19 = vand.u32 2147483648, %v6120_v39 }
 0x544   :  { %2224 = vmatpush.msrb.mxu3 %v1677_v29  ;;  %v1903_v55 = vpop.permute.xlu2 %1902  ;;  %4671 = vpow2.f32 %v1219_v7 }
 0x545   :  { %v1805_v23 = vpop.permute.xlu1 %1804  ;;  %4673 = vpow2.f32 %v1221_v58  ;;  %v1105_v13 = vsub.f32 %v641_v26, %v8136_v16 }
 0x546   :  { %2225 = vmatpush.msrb.mxu3 %v1676_v60  ;;  %4163 = vmatmul.msk.f32.gmra.mxu2 %vm78_vm0, %v5939_v54  ;;  %v4670_v54 = vpop.eup %4669  ;;  %4675 = vpow2.f32 %v1225_v62 }
 0x547   :  { %4165 = vmatmul.msk.f32.gmra.mxu3 %vm78_vm0, %v1805_v23  ;;  %4172 = vmatmul.msk.f32.vlgmr.msrb.gmra.mxu1 %vm78_vm0, %v1901_v38  ;;  %4677 = vpow2.f32 %v1227_v36  ;;  %v1231_v38 = vmul.f32 1.442695, %v1105_v13 }
 0x548   :  { %2320 = vmatpush.msrb.mxu1 %v1687_v17 }
 0x549   :  { %4679 = vpow2.f32 %v1231_v38 }
 0x54a   :  { %2321 = vmatpush.msrb.mxu1 %v1686_v33  ;;  %2343 = vrot.lane.b32.xlu2 %v4668_v34, %s4918_s2  ;;  %v4672_v20 = vpop.eup %4671 }
 0x54b   :  { %2345 = vrot.lane.b32.xlu1 %v4670_v54, %s4918_s2  ;;  %v4674_v5 = vpop.eup %4673  ;;  %v2001_v56 = vpop.permute.xlu0 %2000  ;;  %v4536_v54 = vunpack.i.l.bf16 %v5896_v49  ;;  %v1692_v49 = vsel %vm1635_vm4, %v4530_v15, 1.0 }
 0x54c   :  { %2322 = vmatpush.msrb.mxu1 %v1685_v18  ;;  %v1950_v42 = vpop.permute.xlu2 %1949  ;;  %v4676_v52 = vpop.eup %4675  ;;  %v4531_v18 = vunpack.i.h.bf16 %v8138_v45 }
 0x54d   :  { %v1852_v50 = vpop.permute.xlu1 %1851  ;;  %v4678_v60 = vpop.eup %4677  ;;  %v1693_v31 = vsel %vm1635_vm4, %v4536_v54, 1.0 }
 0x54e   :  { %2323 = vmatpush.msrb.mxu1 %v1684_v32  ;;  %4168 = vmatmul.msk.f32.vlgmr.msrb.gmra.mxu0 %vm78_vm0, %v1852_v50 }
 0x54f   :  { %4166 = vmatmul.msk.f32.gmra.mxu3 %vm78_vm0, %v5963_v24  ;;  %4173 = vmatmul.msk.f32.gmra.mxu1 %vm78_vm0, %v1903_v55  ;;  %v1682_v24 = vsel %vm1635_vm4, %v4491_v37, 1.0  ;;  %v1233_v55 = vmul.f32 1.442695, %v1106_v63  ;;  %v1696_v37 = vsel %vm1635_vm4, %v4531_v18, 1.0 }
 0x550   :  { %4176 = vmatmul.msk.f32.vlgmr.msra.gmra.mxu2 %vm78_vm0, %v1950_v42  ;;  %2271 = vmatpush.msrb.mxu0 %v1683_v51 }
 0x551   :  { %2369 = vmatpush.msra.mxu2 %v1691_v27  ;;  %4681 = vpow2.f32 %v1233_v55 }
 0x552   :  { %2272 = vmatpush.msrb.mxu0 %v1682_v24  ;;  %2390 = vrot.lane.b32.xlu2 %v4672_v20, %s4918_s2  ;;  %4683 = vrcp.f32 %v6120_v39 }
 0x553   :  { %2370 = vmatpush.msra.mxu2 %v1690_v41  ;;  %2392 = vrot.lane.b32.xlu1 %v4674_v5, %s4918_s2  ;;  %v2048_v34 = vpop.permute.xlu0 %2047 }
 0x554   :  { %2273 = vmatpush.msrb.mxu0 %v1681_v40  ;;  %v6061_v3 = vpop.permute.xlu2 %1955 }
 0x555   :  { %2371 = vmatpush.msra.mxu2 %v1689_v8  ;;  %v1858_v29 = vpop.permute.xlu1 %1857 }
 0x556   :  { %2274 = vmatpush.msrb.mxu0 %v1680_v59 }
 0x557   :  { %2372 = vmatpush.msra.mxu2 %v1688_v10  ;;  %4167 = vmatmul.msk.f32.gmra.mxu3 %vm78_vm0, %v5967_v57  ;;  %v4680_v57 = vpop.eup %4679 }
 0x558   :  { %4169 = vmatmul.msk.f32.gmra.mxu0 %vm78_vm0, %v5986_v14  ;;  %v4682_v17 = vpop.eup %4681 }
 0x559   :  { %v6131_v40 = vpop.eup %4683 }
 0x55a   :  { %2396 = vrot.lane.b32.xlu2 %v4676_v52, %s4918_s2  ;;  %v2541_v59 = vmul.f32 %v6131_v40, %v6120_v39  ;;  %vm2546_vm8 = vweird.f32 %v6131_v40 }
 0x55b   :  { %2439 = vrot.lane.b32.xlu1 %v4678_v60, %s4918_s2  ;;  %vm6182_vm13 = vmor %vm2545_vm10, %vm2546_vm8 }
 0x55c   :  { %v2003_v23 = vpop.permute.xlu2 %2002  ;;  %v2542_v10 = vsub.f32 1.0, %v2541_v59 }
 0x55d   :  { %v1905_v7 = vpop.permute.xlu1 %1904 }
 0x55e   :  { %4174 = vmatmul.msk.f32.gmra.mxu1 %vm78_vm0, %v1905_v7 }
 0x560   :  { %4170 = vmatmul.msk.f32.gmra.mxu0 %vm78_vm0, %v5989_v61  ;;  %v4549_v61 = vunpack.i.h.bf16 %v5908_v47  ;;  %v2054_v47 = vpop.permute.xlu0 %2053 }
 0x562   :  { %2443 = vrot.lane.b32.xlu2 %v4680_v57, %s4918_s2  ;;  %v1699_v2 = vsel %vm1635_vm4, %v4549_v61, 1.0 }
 0x563   :  { %2445 = vrot.lane.b32.xlu1 %v4682_v17, %s4918_s2  ;;  %v2543_v17 = vmul.f32 %v6131_v40, %v2542_v10 }
 0x564   :  { %v2050_v14 = vpop.permute.xlu2 %2049 }
 0x565   :  { %v1952_v58 = vpop.permute.xlu1 %1951 }
 0x566   :  { %4175 = vmatmul.msk.f32.gmra.mxu1 %vm78_vm0, %v6031_v11  ;;  %4177 = vmatmul.msk.f32.gmra.mxu2 %vm78_vm0, %v1952_v58  ;;  %v1698_v11 = vsel %vm1635_vm4, %v4543_v4, 1.0 }
 0x568   :  { %4171 = vmatmul.msk.f32.gmra.mxu0 %vm78_vm0, %v1858_v29  ;;  %v2101_v32 = vpop.permute.xlu0 %2100 }
 0x56c   :  { %v2097_v0 = vpop.permute.xlu2 %2096 }
 0x56d   :  { %v1999_v33 = vpop.permute.xlu1 %1998 }
 0x56e   :  { %4178 = vmatmul.msk.f32.gmra.mxu2 %vm78_vm0, %v1954_v22  ;;  %4180 = vmatmul.msk.f32.vlgmr.msra.gmra.mxu3 %vm78_vm0, %v1999_v33 }
 0x56f   :  { %4188 = vmatmul.msk.f32.vlgmr.msra.gmra.mxu1 %vm78_vm0, %v2097_v0  ;;  %2418 = vmatpush.msra.mxu3 %v1695_v44  ;;  %v2544_v44 = vadd.f32 %v6131_v40, %v2543_v17 }
 0x570   :  { %4184 = vmatmul.msk.f32.vlgmr.msra.gmra.mxu0 %vm78_vm0, %v2048_v34  ;;  %v2148_v62 = vpop.permute.xlu0 %2147  ;;  %v2549_v34 = vand.u32 2147483647, %v6120_v39 }
 0x571   :  { %2467 = vmatpush.msra.mxu0 %v1699_v2  ;;  %2419 = vmatpush.msra.mxu3 %v1694_v46 }
 0x572   :  { %vm6186_vm14 = vcmp.eq.f32.partialorder %v2549_v34, 8.507059e+37 }
 0x573   :  { %2468 = vmatpush.msra.mxu0 %v1698_v11  ;;  %2420 = vmatpush.msra.mxu3 %v1693_v31 }
 0x574   :  { %v2103_v25 = vpop.permute.xlu2 %2102 }
 0x575   :  { %2469 = vmatpush.msra.mxu0 %v1697_v12  ;;  %2421 = vmatpush.msra.mxu3 %v1692_v49  ;;  %v2005_v42 = vpop.permute.xlu1 %2004  ;;  %v2552_v49 = vor.u32 1.1754944e-38, %v2551_v19 }
 0x576   :  { %4179 = vmatmul.msk.f32.gmra.mxu2 %vm78_vm0, %v6061_v3  ;;  %4181 = vmatmul.msk.f32.gmra.mxu3 %vm78_vm0, %v2001_v56 }
 0x577   :  { %2470 = vmatpush.msra.mxu0 %v1696_v37  ;;  %v2548_v37 = vsel %vm6182_vm13, %v6131_v40, %v2544_v44 }
 0x578   :  { %4185 = vmatmul.msk.f32.gmra.mxu0 %vm78_vm0, %v2050_v14  ;;  %v2195_v36 = vpop.permute.xlu0 %2194  ;;  %v2553_v59 = vsel %vm6186_vm14, %v2552_v49, %v2548_v37 }
 0x57c   :  { %v2150_v50 = vpop.permute.xlu2 %2149 }
 0x57d   :  { %v2052_v1 = vpop.permute.xlu1 %2051 }
 0x57e   :  { %4182 = vmatmul.msk.f32.gmra.mxu3 %vm78_vm0, %v2003_v23 }
 0x580   :  { %4186 = vmatmul.msk.f32.gmra.mxu0 %vm78_vm0, %v2052_v1  ;;  %v2201_v20 = vpop.permute.xlu0 %2200 }
 0x584   :  { %v2197_v30 = vpop.permute.xlu2 %2196 }
 0x585   :  { %v2099_v51 = vpop.permute.xlu1 %2098 }
 0x586   :  { %4183 = vmatmul.msk.f32.gmra.mxu3 %vm78_vm0, %v2005_v42  ;;  %4189 = vmatmul.msk.f32.gmra.mxu1 %vm78_vm0, %v2099_v51 }
 0x588   :  { %4187 = vmatmul.msk.f32.gmra.mxu0 %vm78_vm0, %v2054_v47  ;;  %v2248_v9 = vpop.permute.xlu0 %2247 }
 0x58c   :  { %v2244_v21 = vpop.permute.xlu2 %2243 }
 0x58d   :  { %v2146_v27 = vpop.permute.xlu1 %2145 }
 0x58e   :  { %4190 = vmatmul.msk.f32.gmra.mxu1 %vm78_vm0, %v2101_v32  ;;  %4192 = vmatmul.msk.f32.vlgmr.msrb.gmra.mxu2 %vm78_vm0, %v2146_v27 }
 0x58f   :  { %4196 = vmatmul.msk.f32.vlgmr.msrb.gmra.mxu3 %vm78_vm0, %v2195_v36 }
 0x590   :  { %4200 = vmatmul.msk.f32.vlgmr.msrb.gmra.mxu0 %vm78_vm0, %v2244_v21  ;;  %v2295_v35 = vpop.permute.xlu0 %2294 }
 0x594   :  { %v2250_v6 = vpop.permute.xlu2 %2249 }
 0x595   :  { %v2152_v26 = vpop.permute.xlu1 %2151 }
 0x596   :  { %4191 = vmatmul.msk.f32.gmra.mxu1 %vm78_vm0, %v2103_v25  ;;  %4193 = vmatmul.msk.f32.gmra.mxu2 %vm78_vm0, %v2148_v62 }
 0x597   :  { %4197 = vmatmul.msk.f32.gmra.mxu3 %vm78_vm0, %v2197_v30 }
 0x598   :  { %v2342_v8 = vpop.permute.xlu0 %2341 }
 0x59c   :  { %v6116_v24 = vpop.permute.xlu2 %2296 }
 0x59d   :  { %v2199_v5 = vpop.permute.xlu1 %2198 }
 0x59e   :  { %4194 = vmatmul.msk.f32.gmra.mxu2 %vm78_vm0, %v2150_v50 }
 0x59f   :  { %4198 = vmatmul.msk.f32.gmra.mxu3 %vm78_vm0, %v2199_v5 }
 0x5a0   :  { %v2348_v5 = vpop.permute.xlu0 %2347 }
 0x5a4   :  { %v2344_v53 = vpop.permute.xlu2 %2343 }
 0x5a5   :  { %v2246_v41 = vpop.permute.xlu1 %2245 }
 0x5a6   :  { %4195 = vmatmul.msk.f32.gmra.mxu2 %vm78_vm0, %v2152_v26  ;;  %4201 = vmatmul.msk.f32.gmra.mxu0 %vm78_vm0, %v2246_v41 }
 0x5a7   :  { %4199 = vmatmul.msk.f32.gmra.mxu3 %vm78_vm0, %v2201_v20 }
 0x5a8   :  { %v6126_v16 = vpop.f32.mrf.mxu2 }
 0x5a9   :  { %4685 = vrcp.f32 %v6126_v16  ;;  %v2563_v15 = vand.u32 2147483647, %v6126_v16  ;;  %v2565_v47 = vand.u32 2147483648, %v6126_v16  ;;  %vm2559_vm15 = vweird.f32 %v6126_v16 }
 0x5ab   :  { %v6129_v13 = vpop.f32.mrf.mxu1  ;;  %vm6194_vm1 = vcmp.eq.f32.partialorder %v2563_v15, 8.507059e+37  ;;  %v2566_v50 = vor.u32 1.1754944e-38, %v2565_v47 }
 0x5ac   :  { %4687 = vrcp.f32 %v6129_v13  ;;  %v2391_v43 = vpop.permute.xlu2 %2390  ;;  %v2495_v7 = vand.u32 2147483648, %v6129_v13  ;;  %v2493_v57 = vand.u32 2147483647, %v6129_v13  ;;  %vm2489_vm6 = vweird.f32 %v6129_v13 }
 0x5ad   :  { %v2293_v63 = vpop.permute.xlu1 %2292 }
 0x5ae   :  { %4202 = vmatmul.msk.f32.gmra.mxu0 %vm78_vm0, %v2248_v9  ;;  %4204 = vmatmul.msk.f32.vlgmr.msrb.gmra.mxu1 %vm78_vm0, %v2293_v63  ;;  %v2496_v48 = vor.u32 1.1754944e-38, %v2495_v7  ;;  %vm2494_vm9 = vcmp.eq.f32.partialorder %v2493_v57, 8.507059e+37 }
 0x5af   :  { %v6136_v3 = vpop.eup %4685  ;;  %4208 = vmatmul.msk.f32.vlgmr.msra.gmra.mxu2 %vm78_vm0, %v2342_v8  ;;  %4212 = vmatmul.msk.f32.vlgmr.msra.gmra.mxu3 %vm78_vm0, %v2391_v43 }
 0x5b0   :  { %v2555_v22 = vmul.f32 %v6136_v3, %v6126_v16  ;;  %vm2560_vm11 = vweird.f32 %v6136_v3 }
 0x5b1   :  { %vm6204_vm4 = vmor %vm2559_vm15, %vm2560_vm11 }
 0x5b2   :  { %v4688_v29 = vpop.eup %4687  ;;  %v2556_v23 = vsub.f32 1.0, %v2555_v22 }
 0x5b3   :  { %v2485_v38 = vmul.f32 %v4688_v29, %v6129_v13  ;;  %v6145_v55 = vpop.f32.mrf.mxu1  ;;  %vm2490_vm5 = vweird.f32 %v4688_v29 }
 0x5b4   :  { %4689 = vrcp.f32 %v6145_v55  ;;  %vm2491_vm7 = vmor %vm2489_vm6, %vm2490_vm5  ;;  %v2557_v0 = vmul.f32 %v6136_v3, %v2556_v23  ;;  %v2507_v46 = vand.u32 2147483647, %v6145_v55  ;;  %v2509_v18 = vand.u32 2147483648, %v6145_v55 }
 0x5b5   :  { %v2486_v52 = vsub.f32 1.0, %v2485_v38  ;;  %v6148_v60 = vpop.permute.xlu1 %2298  ;;  %vm2503_vm2 = vweird.f32 %v6145_v55 }
 0x5b6   :  { %4203 = vmatmul.msk.f32.gmra.mxu0 %vm78_vm0, %v2250_v6  ;;  %4205 = vmatmul.msk.f32.gmra.mxu1 %vm78_vm0, %v2295_v35  ;;  %v2558_v11 = vadd.f32 %v6136_v3, %v2557_v0  ;;  %vm2508_vm3 = vcmp.eq.f32.partialorder %v2507_v46, 8.507059e+37  ;;  %v2510_v27 = vor.u32 1.1754944e-38, %v2509_v18 }
 0x5b7   :  { %4209 = vmatmul.msk.f32.gmra.mxu2 %vm78_vm0, %v2344_v53  ;;  %v2487_v56 = vmul.f32 %v4688_v29, %v2486_v52 }
 0x5b8   :  { %v2562_v6 = vsel %vm6204_vm4, %v6136_v3, %v2558_v11 }
 0x5b9   :  { %v6156_v14 = vpop.f32.mrf.mxu3  ;;  %v2488_v58 = vadd.f32 %v4688_v29, %v2487_v56 }
 0x5ba   :  { %v4690_v61 = vpop.eup %4689  ;;  %4691 = vrcp.f32 %v6156_v14  ;;  %v2535_v20 = vand.u32 2147483647, %v6156_v14  ;;  %v2537_v41 = vand.u32 2147483648, %v6156_v14 }
 0x5bb   :  { %v2499_v33 = vmul.f32 %v4690_v61, %v6145_v55  ;;  %v6165_v54 = vpop.f32.mrf.mxu1  ;;  %v2492_v4 = vsel %vm2491_vm7, %v4688_v29, %v2488_v58  ;;  %vm2504_vm12 = vweird.f32 %v4690_v61  ;;  %vm2531_vm7 = vweird.f32 %v6156_v14 }
 0x5bc   :  { %4693 = vrcp.f32 %v6165_v54  ;;  %v2497_v45 = vsel %vm2494_vm9, %v2496_v48, %v2492_v4  ;;  %vm2505_vm5 = vmor %vm2503_vm2, %vm2504_vm12  ;;  %v2521_v40 = vand.u32 2147483647, %v6165_v54  ;;  %v2523_v43 = vand.u32 2147483648, %v6165_v54 }
 0x5bd   :  { %v2500_v28 = vsub.f32 1.0, %v2499_v33  ;;  %v2346_v2 = vpop.permute.xlu1 %2345  ;;  %3444 = vrot.lane.b32.xlu0 %v2497_v45, %s4919_s9  ;;  %v6236_v29 = vsel %vm6194_vm1, %v2566_v50, %v2562_v6  ;;  %vm6239_vm8 = vcmp.eq.f32.partialorder %v2535_v20, 8.507059e+37  ;;  %vm2517_vm11 = vweird.f32 %v6165_v54 }
 0x5be   :  { %4206 = vmatmul.msk.f32.gmra.mxu1 %vm78_vm0, %v6116_v24  ;;  %vm6248_vm12 = vcmp.eq.f32.partialorder %v2521_v40, 8.507059e+37  ;;  %v2524_v7 = vor.u32 1.1754944e-38, %v2523_v43 }
 0x5bf   :  { %4210 = vmatmul.msk.f32.gmra.mxu2 %vm78_vm0, %v2346_v2  ;;  %v2501_v31 = vmul.f32 %v4690_v61, %v2500_v28  ;;  %v2395_v28 = vpop.permute.xlu0 %2394 }
 0x5c0   :  { %v4692_v42 = vpop.eup %4691 }
 0x5c1   :  { %v2527_v1 = vmul.f32 %v4692_v42, %v6156_v14  ;;  %v6199_v62 = vpop.f32.mrf.mxu2  ;;  %v2502_v30 = vadd.f32 %v4690_v61, %v2501_v31  ;;  %vm2532_vm6 = vweird.f32 %v4692_v42 }
 0x5c2   :  { %v6208_v36 = vpop.eup %4693  ;;  %4695 = vrcp.f32 %v6199_v62  ;;  %v6211_v21 = vpop.f32.mrf.mxu3  ;;  %vm2533_vm10 = vmor %vm2531_vm7, %vm2532_vm6  ;;  %v2577_v19 = vand.u32 2147483647, %v6199_v62  ;;  %v2579_v33 = vand.u32 2147483648, %v6199_v62  ;;  %vm2573_vm14 = vweird.f32 %v6199_v62 }
 0x5c3   :  { %v2528_v26 = vsub.f32 1.0, %v2527_v1  ;;  %v2513_v9 = vmul.f32 %v6208_v36, %v6165_v54  ;;  %4697 = vrcp.f32 %v6211_v21  ;;  %v2506_v24 = vsel %vm2505_vm5, %v4690_v61, %v2502_v30 }
 0x5c4   :  { %v6221_v35 = vpop.f32.mrf.mxu1  ;;  %v2511_v53 = vsel %vm2508_vm3, %v2510_v27, %v2506_v24  ;;  %vm2518_vm9 = vweird.f32 %v6208_v36  ;;  %v2607_v47 = vand.u32 2147483648, %v6211_v21  ;;  %v2605_v18 = vand.u32 2147483647, %v6211_v21 }
 0x5c5   :  { %8147 = vst [vmem:[#allocation12_spill] sm:$0xff] %v6221_v35  ;;  %v2514_v63 = vsub.f32 1.0, %v2513_v9  ;;  %4699 = vrcp.f32 %v6221_v35  ;;  %v2393_v8 = vpop.permute.xlu1 %2392  ;;  %3446 = vrot.lane.b32.xlu2 %v2511_v53, %s4919_s9  ;;  %v2529_v3 = vmul.f32 %v4692_v42, %v2528_v26  ;;  %vm2519_vm13 = vmor %vm2517_vm11, %vm2518_vm9  ;;  %vm6295_vm1 = vcmp.eq.f32.partialorder %v2577_v19, 8.507059e+37 }
 0x5c6   :  { %4207 = vmatmul.msk.f32.gmra.mxu1 %vm78_vm0, %v6148_v60  ;;  %4213 = vmatmul.msk.f32.gmra.mxu3 %vm78_vm0, %v2393_v8  ;;  %v2538_v60 = vor.u32 1.1754944e-38, %v2537_v41  ;;  %vm2601_vm2 = vweird.f32 %v6211_v21  ;;  %v2608_v50 = vor.u32 1.1754944e-38, %v2607_v47  ;;  %v2717_v1 = vand.u32 2147483647, %v6221_v35 }
 0x5c7   :  { %4211 = vmatmul.msk.f32.gmra.mxu2 %vm78_vm0, %v2348_v5  ;;  %v2530_v22 = vadd.f32 %v4692_v42, %v2529_v3  ;;  %v2515_v38 = vmul.f32 %v6208_v36, %v2514_v63  ;;  %v2719_v30 = vand.u32 2147483648, %v6221_v35  ;;  %vm6310_vm6 = vcmp.eq.f32.partialorder %v2605_v18, 8.507059e+37  ;;  %v2397_v63 = vpop.permute.xlu2 %2396 }
 0x5c8   :  { %v6245_v52 = vpop.eup %4695 }
 0x5c9   :  { %v6252_v56 = vpop.eup %4697  ;;  %v2569_v57 = vmul.f32 %v6245_v52, %v6199_v62  ;;  %v6256_v17 = vpop.f32.mrf.mxu2  ;;  %v2534_v58 = vsel %vm2533_vm10, %v4692_v42, %v2530_v22  ;;  %v2516_v34 = vadd.f32 %v6208_v36, %v2515_v38  ;;  %vm2574_vm15 = vweird.f32 %v6245_v52 }
 0x5ca   :  { %v2597_v61 = vmul.f32 %v6252_v56, %v6211_v21  ;;  %4701 = vrcp.f32 %v6256_v17  ;;  %v6263_v48 = vpop.f32.mrf.mxu3  ;;  %v2539_v0 = vsel %vm6239_vm8, %v2538_v60, %v2534_v58  ;;  %v2580_v42 = vor.u32 1.1754944e-38, %v2579_v33  ;;  %vm2575_vm3 = vmor %vm2573_vm14, %vm2574_vm15  ;;  %v2442_v60 = vpop.permute.xlu0 %2441 }
 0x5cb   :  { %v6270_v4 = vpop.eup %4699  ;;  %v2570_v44 = vsub.f32 1.0, %v2569_v57  ;;  %4703 = vrcp.f32 %v6263_v48  ;;  %v6273_v45 = vpop.f32.mrf.mxu0  ;;  %3450 = vrot.lane.b32.xlu0 %v2539_v0, %s4919_s9  ;;  %v2520_v15 = vsel %vm2519_vm13, %v6208_v36, %v2516_v34  ;;  %vm2615_vm4 = vweird.f32 %v6263_v48 }
 0x5cc   :  { %8152 = vst [vmem:[#allocation61_spill] sm:$0xff] %v6273_v45  ;;  %v2598_v2 = vsub.f32 1.0, %v2597_v61  ;;  %4705 = vrcp.f32 %v6273_v45  ;;  %v2525_v46 = vsel %vm6248_vm12, %v2524_v7, %v2520_v15  ;;  %v6284_v11 = vmul.f32 %v6270_v4, %v6221_v35  ;;  %v6286_v31 = vpop.f32.mrf.mxu1 }
 0x5cd   :  { %8153 = vst [vmem:[#allocation54_spill] sm:$0xff] %v6286_v31  ;;  %v2440_v12 = vpop.permute.xlu1 %2439  ;;  %3452 = vrot.lane.b32.xlu2 %v2553_v59, %s4919_s9  ;;  %3448 = vrot.lane.b32.xlu1 %v2525_v46, %s4919_s9  ;;  %v2571_v25 = vmul.f32 %v6245_v52, %v2570_v44  ;;  %4707 = vrcp.f32 %v6286_v31  ;;  %v2619_v36 = vand.u32 2147483647, %v6263_v48  ;;  %vm2587_vm5 = vweird.f32 %v6256_v17 }
 0x5ce   :  { %4214 = vmatmul.msk.f32.gmra.mxu3 %vm78_vm0, %v2395_v28  ;;  %4216 = vmatmul.msk.f32.vlgmr.msra.gmra.mxu0 %vm78_vm0, %v2440_v12  ;;  %v2599_v37 = vmul.f32 %v6252_v56, %v2598_v2  ;;  %v2710_v6 = vsub.f32 1.0, %v6284_v11  ;;  %v2621_v24 = vand.u32 2147483648, %v6263_v48  ;;  %vm2602_vm7 = vweird.f32 %v6252_v56 }
 0x5cf   :  { %v2572_v32 = vadd.f32 %v6245_v52, %v2571_v25  ;;  %v2591_v22 = vand.u32 2147483647, %v6256_v17  ;;  %vm6336_vm8 = vcmp.eq.f32.partialorder %v2619_v36, 8.507059e+37  ;;  %vm6351_vm10 = vmor %vm2601_vm2, %vm2602_vm7  ;;  %v2661_v44 = vand.u32 2147483647, %v6273_v45 }
 0x5d0   :  { %v6304_v51 = vpop.eup %4701  ;;  %v2600_v43 = vadd.f32 %v6252_v56, %v2599_v37  ;;  %v2622_v57 = vor.u32 1.1754944e-38, %v2621_v24  ;;  %v2663_v15 = vand.u32 2147483648, %v6273_v45  ;;  %vm2657_vm14 = vweird.f32 %v6273_v45 }
 0x5d1   :  { %v4704_v20 = vpop.eup %4703  ;;  %v2583_v26 = vmul.f32 %v6304_v51, %v6256_v17  ;;  %v2576_v9 = vsel %vm2575_vm3, %v6245_v52, %v2572_v32  ;;  %v2593_v52 = vand.u32 2147483648, %v6256_v17  ;;  %vm2588_vm9 = vweird.f32 %v6304_v51 }
 0x5d2   :  { %v6319_v5 = vpop.eup %4705  ;;  %v2611_v53 = vmul.f32 %v4704_v20, %v6263_v48  ;;  %v6322_v41 = vpop.f32.mrf.mxu3  ;;  %v2581_v40 = vsel %vm6295_vm1, %v2580_v42, %v2576_v9  ;;  %vm2616_vm11 = vweird.f32 %v4704_v20  ;;  %v2604_v61 = vsel %vm6351_vm10, %v6252_v56, %v2600_v43  ;;  %vm6369_vm12 = vmor %vm2587_vm5, %vm2588_vm9 }
 0x5d3   :  { %v2584_v8 = vsub.f32 1.0, %v2583_v26  ;;  %v2653_v3 = vmul.f32 %v6319_v5, %v6273_v45  ;;  %4709 = vrcp.f32 %v6322_v41  ;;  %v6331_v59 = vpop.f32.mrf.mxu2  ;;  %3456 = vrot.lane.b32.xlu0 %v2581_v40, %s4919_s9  ;;  %v6355_v19 = vpop.eup %4707  ;;  %vm2592_vm13 = vcmp.eq.f32.partialorder %v2591_v22, 8.507059e+37  ;;  %vm2617_vm15 = vmor %vm2615_vm4, %vm2616_vm11 }
 0x5d4   :  { %8158 = vst [vmem:[#allocation13_spill] sm:$0xff] %v6331_v59  ;;  %v2612_v10 = vsub.f32 1.0, %v2611_v53  ;;  %4711 = vrcp.f32 %v6331_v59  ;;  %v2594_v2 = vor.u32 1.1754944e-38, %v2593_v52  ;;  %v2609_v18 = vsel %vm6310_vm6, %v2608_v50, %v2604_v61  ;;  %v2444_v43 = vpop.permute.xlu2 %2443 }
 0x5d5   :  { %v2654_v23 = vsub.f32 1.0, %v2653_v3  ;;  %v6341_v7 = vpop.f32.mrf.mxu0  ;;  %3454 = vrot.lane.b32.xlu1 %v6236_v29, %s4919_s9  ;;  %v2585_v58 = vmul.f32 %v6304_v51, %v2584_v8  ;;  %vm2658_vm1 = vweird.f32 %v6319_v5  ;;  %v6387_v49 = vmul.f32 %v6355_v19, %v6286_v31 }
 0x5d6   :  { %8161 = vst [vmem:[#allocation62_spill] sm:$0xff] %v6341_v7  ;;  %4713 = vrcp.f32 %v6341_v7  ;;  %4215 = vmatmul.msk.f32.gmra.mxu3 %vm78_vm0, %v2397_v63  ;;  %4217 = vmatmul.msk.f32.gmra.mxu0 %vm78_vm0, %v2442_v60  ;;  %v2613_v29 = vmul.f32 %v4704_v20, %v2612_v10  ;;  %vm6398_vm2 = vcmp.eq.f32.partialorder %v2661_v44, 8.507059e+37  ;;  %v2664_v26 = vor.u32 1.1754944e-38, %v2663_v15  ;;  %vm6410_vm3 = vmor %vm2657_vm14, %vm2658_vm1 }
 0x5d7   :  { %v2586_v0 = vadd.f32 %v6304_v51, %v2585_v58  ;;  %v2655_v33 = vmul.f32 %v6319_v5, %v2654_v23  ;;  %v2633_v53 = vand.u32 2147483647, %v6322_v41  ;;  %v2635_v40 = vand.u32 2147483648, %v6322_v41 }
 0x5d8   :  { %v2614_v47 = vadd.f32 %v4704_v20, %v2613_v29  ;;  %v2675_v10 = vand.u32 2147483647, %v6341_v7  ;;  %v2677_v52 = vand.u32 2147483648, %v6341_v7  ;;  %v2724_v60 = vsub.f32 1.0, %v6387_v49 }
 0x5d9   :  { %v4710_v56 = vpop.eup %4709  ;;  %v2590_v46 = vsel %vm6369_vm12, %v6304_v51, %v2586_v0  ;;  %v2656_v12 = vadd.f32 %v6319_v5, %v2655_v33  ;;  %vm2629_vm5 = vweird.f32 %v6322_v41  ;;  %vm2671_vm6 = vweird.f32 %v6341_v7 }
 0x5da   :  { %v6383_v25 = vpop.eup %4711  ;;  %v2625_v42 = vmul.f32 %v4710_v56, %v6322_v41  ;;  %v6390_v37 = vpop.f32.mrf.mxu3  ;;  %v2618_v32 = vsel %vm2617_vm15, %v4704_v20, %v2614_v47  ;;  %v2595_v36 = vsel %vm2592_vm13, %v2594_v2, %v2590_v46  ;;  %vm2630_vm4 = vweird.f32 %v4710_v56 }
 0x5db   :  { %4715 = vrcp.f32 %v6390_v37  ;;  %v2623_v50 = vsel %vm6336_vm8, %v2622_v57, %v2618_v32  ;;  %3458 = vrot.lane.b32.xlu2 %v2595_v36, %s4919_s9  ;;  %v6396_v51 = vpop.f32.mrf.mxu1  ;;  %v6418_v63 = vmul.f32 %v6383_v25, %v6331_v59  ;;  %v2660_v22 = vsel %vm6410_vm3, %v6319_v5, %v2656_v12  ;;  %vm2631_vm9 = vmor %vm2629_vm5, %vm2630_vm4  ;;  %v2446_v32 = vpop.permute.xlu1 %2445 }
 0x5dc   :  { %8166 = vst [vmem:[#allocation63_spill] sm:$0xff] %v6396_v51  ;;  %v6402_v9 = vpop.eup %4713  ;;  %v2626_v24 = vsub.f32 1.0, %v2625_v42  ;;  %3462 = vrot.lane.b32.xlu0 %v2623_v50, %s4919_s9  ;;  %4717 = vrcp.f32 %v6396_v51  ;;  %vm2713_vm7 = vweird.f32 %v6221_v35  ;;  %v2665_v5 = vsel %vm6398_vm2, %v2664_v26, %v2660_v22 }
 0x5dd   :  { %v2667_v8 = vmul.f32 %v6402_v9, %v6341_v7  ;;  %v6422_v3 = vpop.f32.mrf.mxu0  ;;  %3460 = vrot.lane.b32.xlu1 %v2609_v18, %s4919_s9  ;;  %vm2634_vm8 = vcmp.eq.f32.partialorder %v2633_v53, 8.507059e+37  ;;  %v2636_v58 = vor.u32 1.1754944e-38, %v2635_v40  ;;  %v2766_v29 = vsub.f32 1.0, %v6418_v63 }
 0x5de   :  { %4719 = vrcp.f32 %v6422_v3  ;;  %4218 = vmatmul.msk.f32.gmra.mxu0 %vm78_vm0, %v2444_v43  ;;  %v2627_v38 = vmul.f32 %v4710_v56, %v2626_v24  ;;  %vm2672_vm10 = vweird.f32 %v6402_v9  ;;  %v2711_v0 = vmul.f32 %v6270_v4, %v2710_v6 }
 0x5df   :  { %v2668_v23 = vsub.f32 1.0, %v2667_v8  ;;  %vm6447_vm11 = vcmp.eq.f32.partialorder %v2675_v10, 8.507059e+37  ;;  %v2678_v28 = vor.u32 1.1754944e-38, %v2677_v52  ;;  %v2647_v12 = vand.u32 2147483647, %v6390_v37  ;;  %vm6486_vm1 = vmor %vm2671_vm6, %vm2672_vm10 }
 0x5e0   :  { %v2628_v57 = vadd.f32 %v4710_v56, %v2627_v38  ;;  %v2649_v11 = vand.u32 2147483648, %v6390_v37  ;;  %vm6458_vm12 = vcmp.eq.f32.partialorder %v2717_v1, 8.507059e+37  ;;  %vm2643_vm13 = vweird.f32 %v6390_v37 }
 0x5e1   :  { %v4716_v34 = vpop.eup %4715  ;;  %v2669_v61 = vmul.f32 %v6402_v9, %v2668_v23  ;;  %v2691_v42 = vand.u32 2147483648, %v6422_v3  ;;  %vm2685_vm14 = vweird.f32 %v6422_v3  ;;  %v2712_v27 = vadd.f32 %v6270_v4, %v2711_v0 }
 0x5e2   :  { %v6444_v33 = vpop.eup %4717  ;;  %v2639_v44 = vmul.f32 %v4716_v34, %v6390_v37  ;;  %v2632_v15 = vsel %vm2631_vm9, %v4710_v56, %v2628_v57  ;;  %vm2714_vm15 = vweird.f32 %v6270_v4  ;;  %vm2644_vm2 = vweird.f32 %v4716_v34 }
 0x5e3   :  { %v2637_v2 = vsel %vm2634_vm8, %v2636_v58, %v2632_v15  ;;  %v6451_v46 = vpop.f32.mrf.mxu1  ;;  %v2670_v18 = vadd.f32 %v6402_v9, %v2669_v61  ;;  %v6473_v36 = vmul.f32 %v6444_v33, %v6396_v51  ;;  %v2689_v20 = vand.u32 2147483647, %v6422_v3  ;;  %vm6500_vm4 = vmor %vm2713_vm7, %vm2714_vm15 }
 0x5e4   :  { %8173 = vst [vmem:[#allocation22_spill] sm:$0xff] %v6451_v46  ;;  %v6462_v56 = vpop.eup %4719  ;;  %v2640_v49 = vsub.f32 1.0, %v2639_v44  ;;  %3468 = vrot.lane.b32.xlu0 %v2665_v5, %s4919_s9  ;;  %3464 = vrot.lane.b32.xlu2 %v2637_v2, %s4919_s9  ;;  %4721 = vrcp.f32 %v6451_v46  ;;  %vm6494_vm3 = vcmp.eq.f32.partialorder %v2647_v12, 8.507059e+37  ;;  %v2650_v8 = vor.u32 1.1754944e-38, %v2649_v11  ;;  %vm2645_vm5 = vmor %vm2643_vm13, %vm2644_vm2 }
 0x5e5   :  { %v2681_v1 = vmul.f32 %v6462_v56, %v6422_v3  ;;  %v6475_v50 = vpop.f32.mrf.mxu0  ;;  %v2674_v40 = vsel %vm6486_vm1, %v6402_v9, %v2670_v18  ;;  %v2692_v10 = vor.u32 1.1754944e-38, %v2691_v42  ;;  %v2720_v52 = vor.u32 1.1754944e-38, %v2719_v30 }
 0x5e6   :  { %8176 = vst [vmem:[#allocation23_spill] sm:$0xff] %v6475_v50  ;;  %4723 = vrcp.f32 %v6475_v50  ;;  %4219 = vmatmul.msk.f32.gmra.mxu0 %vm78_vm0, %v2446_v32  ;;  %v2641_v24 = vmul.f32 %v4716_v34, %v2640_v49  ;;  %v2725_v23 = vmul.f32 %v6355_v19, %v2724_v60  ;;  %v2738_v9 = vsub.f32 1.0, %v6473_v36 }
 0x5e7   :  { %v2682_v53 = vsub.f32 1.0, %v2681_v1  ;;  %vm2686_vm6 = vweird.f32 %v6462_v56  ;;  %v2716_v58 = vsel %vm6500_vm4, %v6270_v4, %v2712_v27  ;;  %v2679_v30 = vsel %vm6447_vm11, %v2678_v28, %v2674_v40 }
 0x5e8   :  { %v2642_v22 = vadd.f32 %v4716_v34, %v2641_v24  ;;  %vm6522_vm7 = vcmp.eq.f32.partialorder %v2689_v20, 8.507059e+37  ;;  %v2703_v44 = vand.u32 2147483647, %v6475_v50  ;;  %v2705_v2 = vand.u32 2147483648, %v6475_v50  ;;  %vm6552_vm10 = vmor %vm2685_vm14, %vm2686_vm6 }
 0x5e9   :  { %v6508_v5 = vpop.f32.mrf.mxu2  ;;  %v2683_v57 = vmul.f32 %v6462_v56, %v2682_v53  ;;  %v2731_v18 = vand.u32 2147483647, %v6286_v31  ;;  %v2721_v28 = vsel %vm6458_vm12, %v2720_v52, %v2716_v58  ;;  %v2726_v11 = vadd.f32 %v6355_v19, %v2725_v23 }
 0x5ea   :  { %8183 = vst [vmem:[#allocation64_spill] sm:$0xff] %v6508_v5  ;;  %v6517_v61 = vpop.eup %4721  ;;  %4725 = vrcp.f32 %v6508_v5  ;;  %v2646_v60 = vsel %vm2645_vm5, %v4716_v34, %v2642_v22  ;;  %vm2728_vm8 = vweird.f32 %v6355_v19  ;;  %vm2699_vm9 = vweird.f32 %v6475_v50 }
 0x5eb   :  { %v2751_v15 = vmul.f32 %v6517_v61, %v6451_v46  ;;  %v2651_v4 = vsel %vm6494_vm3, %v2650_v8, %v2646_v60  ;;  %v2684_v47 = vadd.f32 %v6462_v56, %v2683_v57  ;;  %vm6556_vm11 = vcmp.eq.f32.partialorder %v2703_v44, 8.507059e+37 }
 0x5ec   :  { %v4724_v12 = vpop.eup %4723  ;;  %3470 = vrot.lane.b32.xlu2 %v2679_v30, %s4919_s9  ;;  %3466 = vrot.lane.b32.xlu1 %v2651_v4, %s4919_s9  ;;  %v6535_v34 = vpop.f32.mrf.mxu1  ;;  %vm2727_vm12 = vweird.f32 %v6286_v31  ;;  %v2733_v36 = vand.u32 2147483648, %v6286_v31  ;;  %v2706_v26 = vor.u32 1.1754944e-38, %v2705_v2  ;;  %vm6566_vm15 = vcmp.eq.f32.partialorder %v2731_v18, 8.507059e+37 }
 0x5ed   :  { %8186 = vst [vmem:[#allocation14_spill] sm:$0xff] %v6535_v34  ;;  %v2695_v49 = vmul.f32 %v4724_v12, %v6475_v50  ;;  %v2752_v42 = vsub.f32 1.0, %v2751_v15  ;;  %v6543_v32 = vpop.f32.mrf.mxu0  ;;  %4727 = vrcp.f32 %v6535_v34  ;;  %vm6562_vm13 = vmor %vm2727_vm12, %vm2728_vm8  ;;  %v2688_v43 = vsel %vm6552_vm10, %v6462_v56, %v2684_v47 }
 0x5ee   :  { %8187 = vst [vmem:[#allocation24_spill] sm:$0xff] %v6543_v32  ;;  %4729 = vrcp.f32 %v6543_v32  ;;  %v2730_v8 = vsel %vm6562_vm13, %v6355_v19, %v2726_v11  ;;  %vm2756_vm14 = vweird.f32 %v6517_v61  ;;  %v2739_v22 = vmul.f32 %v6444_v33, %v2738_v9 }
 0x5ef   :  { %v2696_v27 = vsub.f32 1.0, %v2695_v49  ;;  %v2753_v53 = vmul.f32 %v6517_v61, %v2752_v42  ;;  %vm2700_vm1 = vweird.f32 %v4724_v12  ;;  %v2761_v58 = vand.u32 2147483648, %v6451_v46 }
 0x5f0   :  { %v6571_v40 = vpop.eup %4725  ;;  %v2734_v56 = vor.u32 1.1754944e-38, %v2733_v36  ;;  %vm2755_vm2 = vweird.f32 %v6451_v46  ;;  %v2759_v19 = vand.u32 2147483647, %v6451_v46  ;;  %v2693_v60 = vsel %vm6522_vm7, %v2692_v10, %v2688_v43  ;;  %vm2701_vm4 = vmor %vm2699_vm9, %vm2700_vm1 }
 0x5f1   :  { %v6581_v38 = vpop.f32.mrf.mxu2  ;;  %v6583_v52 = vpop.f32.mrf.mxu3  ;;  %v2697_v23 = vmul.f32 %v4724_v12, %v2696_v27  ;;  %v2754_v57 = vadd.f32 %v6517_v61, %v2753_v53  ;;  %v2779_v9 = vmul.f32 %v6571_v40, %v6508_v5  ;;  %vm6599_vm3 = vmor %vm2755_vm2, %vm2756_vm14  ;;  %v2740_v2 = vadd.f32 %v6444_v33, %v2739_v22 }
 0x5f2   :  { %8196 = vst [vmem:[#allocation18_spill] sm:$0xff] %v6581_v38  ;;  %4731 = vrcp.f32 %v6581_v38  ;;  %v2735_v10 = vsel %vm6566_vm15, %v2734_v56, %v2730_v8  ;;  %vm2742_vm5 = vweird.f32 %v6444_v33  ;;  %v2762_v11 = vor.u32 1.1754944e-38, %v2761_v58 }
 0x5f3   :  { %8197 = vst [vmem:[#allocation25_spill] sm:$0xff] %v6583_v52  ;;  %v6590_v30 = vpop.eup %4727  ;;  %4733 = vrcp.f32 %v6583_v52  ;;  %v2698_v44 = vadd.f32 %v4724_v12, %v2697_v23  ;;  %v2758_v0 = vsel %vm6599_vm3, %v6517_v61, %v2754_v57  ;;  %v2767_v49 = vmul.f32 %v6383_v25, %v2766_v29 }
 0x5f4   :  { %v6603_v4 = vpop.eup %4729  ;;  %3472 = vrot.lane.b32.xlu1 %v2693_v60, %s4919_s9  ;;  %3476 = vrot.lane.b32.xlu2 %v2721_v28, %s4919_s9  ;;  %v2745_v28 = vand.u32 2147483647, %v6396_v51  ;;  %vm2760_vm6 = vcmp.eq.f32.partialorder %v2759_v19, 8.507059e+37  ;;  %vm2741_vm7 = vweird.f32 %v6396_v51  ;;  %v2780_v6 = vsub.f32 1.0, %v2779_v9 }
 0x5f5   :  { %v6617_v18 = vpop.f32.mrf.mxu0  ;;  %v2702_v47 = vsel %vm2701_vm4, %v4724_v12, %v2698_v44  ;;  %v6625_v42 = vmul.f32 %v6603_v4, %v6543_v32  ;;  %v6632_v12 = vmul.f32 %v6590_v30, %v6535_v34  ;;  %v2763_v63 = vsel %vm2760_vm6, %v2762_v11, %v2758_v0  ;;  %vm6635_vm8 = vmor %vm2741_vm7, %vm2742_vm5 }
 0x5f6   :  { %8200 = vst [vmem:[#allocation38_spill] sm:$0xff] %v6617_v18  ;;  %v2707_v61 = vsel %vm6556_vm11, %v2706_v26, %v2702_v47  ;;  %v2747_v36 = vand.u32 2147483648, %v6396_v51  ;;  %4735 = vrcp.f32 %v6617_v18  ;;  %v2744_v1 = vsel %vm6635_vm8, %v6444_v33, %v2740_v2 }
 0x5f7   :  { %3474 = vrot.lane.b32.xlu0 %v2707_v61, %s4919_s9  ;;  %v2768_v26 = vadd.f32 %v6383_v25, %v2767_v49  ;;  %vm2770_vm9 = vweird.f32 %v6383_v25  ;;  %vm6653_vm10 = vcmp.eq.f32.partialorder %v2745_v28, 8.507059e+37  ;;  %vm2769_vm11 = vweird.f32 %v6331_v59 }
 0x5f8   :  { %v4732_v27 = vpop.eup %4731  ;;  %v2775_v33 = vand.u32 2147483648, %v6331_v59  ;;  %v2878_v22 = vsub.f32 1.0, %v6625_v42  ;;  %v2773_v23 = vand.u32 2147483647, %v6331_v59  ;;  %v2801_v57 = vand.u32 2147483647, %v6581_v38  ;;  %vm6668_vm12 = vmor %vm2769_vm11, %vm2770_vm9 }
 0x5f9   :  { %v6646_v24 = vpop.eup %4733  ;;  %v2793_v20 = vmul.f32 %v4732_v27, %v6581_v38  ;;  %v6649_v53 = vpop.f32.mrf.mxu2  ;;  %v2748_v19 = vor.u32 1.1754944e-38, %v2747_v36  ;;  %v2772_v60 = vsel %vm6668_vm12, %v6383_v25, %v2768_v26  ;;  %vm2797_vm13 = vweird.f32 %v6581_v38 }
 0x5fa   :  { %8203 = vst [vmem:[#allocation26_spill] sm:$0xff] %v6649_v53  ;;  %v6651_v43 = vpop.f32.mrf.mxu3  ;;  %4737 = vrcp.f32 %v6649_v53  ;;  %v2821_v56 = vmul.f32 %v6646_v24, %v6583_v52  ;;  %v2803_v44 = vand.u32 2147483648, %v6581_v38  ;;  %v2781_v15 = vmul.f32 %v6571_v40, %v2780_v6 }
 0x5fb   :  { %8204 = vst [vmem:[#allocation15_spill] sm:$0xff] %v6651_v43  ;;  %v2794_v58 = vsub.f32 1.0, %v2793_v20  ;;  %4739 = vrcp.f32 %v6651_v43  ;;  %v2749_v2 = vsel %vm6653_vm10, %v2748_v19, %v2744_v1  ;;  %v2776_v47 = vor.u32 1.1754944e-38, %v2775_v33 }
 0x5fc   :  { %3478 = vrot.lane.b32.xlu1 %v2735_v10, %s4919_s9  ;;  %3482 = vrot.lane.b32.xlu2 %v2763_v63, %s4919_s9  ;;  %vm2798_vm15 = vweird.f32 %v4732_v27  ;;  %v6684_v10 = vpop.eup %4735  ;;  %vm2774_vm14 = vcmp.eq.f32.partialorder %v2773_v23, 8.507059e+37  ;;  %vm6686_vm1 = vcmp.eq.f32.partialorder %v2801_v57, 8.507059e+37  ;;  %v2782_v25 = vadd.f32 %v6571_v40, %v2781_v15 }
 0x5fd   :  { %v6680_v0 = vpop.f32.mrf.mxu0  ;;  %v2795_v11 = vmul.f32 %v4732_v27, %v2794_v58  ;;  %vm2784_vm2 = vweird.f32 %v6571_v40  ;;  %v2822_v49 = vsub.f32 1.0, %v2821_v56  ;;  %v2777_v61 = vsel %vm2774_vm14, %v2776_v47, %v2772_v60  ;;  %vm2799_vm3 = vmor %vm2797_vm13, %vm2798_vm15 }
 0x5fe   :  { %8209 = vst [vmem:[#allocation68_spill] sm:$0xff] %v6680_v0  ;;  %v2789_v63 = vand.u32 2147483648, %v6508_v5  ;;  %v2804_v36 = vor.u32 1.1754944e-38, %v2803_v44  ;;  %vm2783_vm4 = vweird.f32 %v6508_v5  ;;  %v2787_v1 = vand.u32 2147483647, %v6508_v5 }
 0x5ff   :  { %3480 = vrot.lane.b32.xlu0 %v2749_v2, %s4919_s9  ;;  %v2796_v6 = vadd.f32 %v4732_v27, %v2795_v11  ;;  %v2815_v26 = vand.u32 2147483647, %v6649_v53  ;;  %v6701_v8 = vmul.f32 %v6684_v10, %v6617_v18  ;;  %4741 = vrcp.f32 %v6680_v0  ;;  %vm6709_vm5 = vmor %vm2783_vm4, %vm2784_vm2 }
 0x600   :  { %v4738_v29 = vpop.eup %4737  ;;  %v2786_v9 = vsel %vm6709_vm5, %v6571_v40, %v2782_v25  ;;  %vm2811_vm6 = vweird.f32 %v6649_v53  ;;  %v2817_v15 = vand.u32 2147483648, %v6649_v53  ;;  %vm2788_vm7 = vcmp.eq.f32.partialorder %v2787_v1, 8.507059e+37 }
 0x601   :  { %v4740_v20 = vpop.eup %4739  ;;  %v2807_v33 = vmul.f32 %v4738_v29, %v6649_v53  ;;  %v2800_v57 = vsel %vm2799_vm3, %v4732_v27, %v2796_v6  ;;  %v2790_v27 = vor.u32 1.1754944e-38, %v2789_v63  ;;  %vm2812_vm8 = vweird.f32 %v4738_v29 }
 0x602   :  { %v6705_v23 = vpop.f32.mrf.mxu3  ;;  %v2835_v56 = vmul.f32 %v4740_v20, %v6651_v43  ;;  %v2805_v19 = vsel %vm6686_vm1, %v2804_v36, %v2800_v57  ;;  %vm6726_vm9 = vcmp.eq.f32.partialorder %v2815_v26, 8.507059e+37  ;;  %v2845_v25 = vand.u32 2147483648, %v6651_v43  ;;  %vm2813_vm12 = vmor %vm2811_vm6, %vm2812_vm8 }
 0x603   :  { %8212 = vst [vmem:[#allocation27_spill] sm:$0xff] %v6705_v23  ;;  %4743 = vrcp.f32 %v6705_v23  ;;  %v2808_v60 = vsub.f32 1.0, %v2807_v33  ;;  %v6720_v44 = vpop.f32.mrf.mxu1  ;;  %v2791_v11 = vsel %vm2788_vm7, %v2790_v27, %v2786_v9  ;;  %v2823_v6 = vmul.f32 %v6646_v24, %v2822_v49 }
 0x604   :  { %8215 = vst [vmem:[#allocation67_spill] sm:$0xff] %v6720_v44  ;;  %v2836_v2 = vsub.f32 1.0, %v2835_v56  ;;  %3484 = vrot.lane.b32.xlu1 %v2777_v61, %s4919_s9  ;;  %3488 = vrot.lane.b32.xlu2 %v2805_v19, %s4919_s9  ;;  %vm2840_vm10 = vweird.f32 %v4740_v20  ;;  %v2843_v61 = vand.u32 2147483647, %v6651_v43  ;;  %v2818_v26 = vor.u32 1.1754944e-38, %v2817_v15 }
 0x605   :  { %v6730_v40 = vpop.f32.mrf.mxu0  ;;  %v2809_v28 = vmul.f32 %v4738_v29, %v2808_v60  ;;  %v6736_v36 = vpop.eup %4741  ;;  %v2824_v33 = vadd.f32 %v6646_v24, %v2823_v6  ;;  %vm2826_vm11 = vweird.f32 %v6646_v24  ;;  %vm2839_vm13 = vweird.f32 %v6651_v43 }
 0x606   :  { %8218 = vst [vmem:[#allocation16_spill] sm:$0xff] %v6730_v40  ;;  %4745 = vrcp.f32 %v6730_v40  ;;  %v2837_v63 = vmul.f32 %v4740_v20, %v2836_v2  ;;  %vm2825_vm15 = vweird.f32 %v6583_v52  ;;  %v2831_v58 = vand.u32 2147483648, %v6583_v52  ;;  %vm2841_vm14 = vmor %vm2839_vm13, %vm2840_vm10 }
 0x607   :  { %3486 = vrot.lane.b32.xlu0 %v2791_v11, %s4919_s9  ;;  %v2810_v1 = vadd.f32 %v4738_v29, %v2809_v28  ;;  %v2846_v60 = vor.u32 1.1754944e-38, %v2845_v25  ;;  %v2829_v27 = vand.u32 2147483647, %v6583_v52  ;;  %vm2844_vm1 = vcmp.eq.f32.partialorder %v2843_v61, 8.507059e+37  ;;  %vm6757_vm2 = vmor %vm2825_vm15, %vm2826_vm11 }
 0x608   :  { %v2838_v49 = vadd.f32 %v4740_v20, %v2837_v63  ;;  %v2828_v63 = vsel %vm6757_vm2, %v6646_v24, %v2824_v33  ;;  %v2859_v61 = vand.u32 2147483648, %v6705_v23  ;;  %vm2853_vm5 = vweird.f32 %v6705_v23 }
 0x609   :  { %v4744_v57 = vpop.eup %4743  ;;  %v2814_v9 = vsel %vm2813_vm12, %v4738_v29, %v2810_v1  ;;  %v2892_v29 = vsub.f32 1.0, %v6701_v8  ;;  %v2879_v8 = vmul.f32 %v6603_v4, %v2878_v22  ;;  %v6777_v1 = vmul.f32 %v6736_v36, %v6680_v0 }
 0x60a   :  { %v2849_v56 = vmul.f32 %v4744_v57, %v6705_v23  ;;  %v6748_v19 = vpop.f32.mrf.mxu3  ;;  %v2819_v15 = vsel %vm6726_vm9, %v2818_v26, %v2814_v9  ;;  %v2842_v2 = vsel %vm2841_vm14, %v4740_v20, %v2838_v49  ;;  %v2832_v20 = vor.u32 1.1754944e-38, %v2831_v58 }
 0x60b   :  { %8219 = vst [vmem:[#allocation40_spill] sm:$0xff] %v6748_v19  ;;  %4747 = vrcp.f32 %v6748_v19  ;;  %v2847_v6 = vsel %vm2844_vm1, %v2846_v60, %v2842_v2  ;;  %v6762_v25 = vpop.f32.mrf.mxu1  ;;  %vm2854_vm3 = vweird.f32 %v4744_v57  ;;  %vm2830_vm4 = vcmp.eq.f32.partialorder %v2829_v27, 8.507059e+37 }
 0x60c   :  { %v2850_v28 = vsub.f32 1.0, %v2849_v56  ;;  %8222 = vst [vmem:[#allocation69_spill] sm:$0xff] %v6762_v25  ;;  %v6767_v47 = vpop.eup %4745  ;;  %3490 = vrot.lane.b32.xlu1 %v2819_v15, %s4919_s9  ;;  %3494 = vrot.lane.b32.xlu2 %v2847_v6, %s4919_s9  ;;  %v2857_v26 = vand.u32 2147483647, %v6705_v23  ;;  %4749 = vrcp.f32 %v6762_v25  ;;  %v2833_v33 = vsel %vm2830_vm4, %v2832_v20, %v2828_v63  ;;  %vm6786_vm6 = vmor %vm2853_vm5, %vm2854_vm3 }
 0x60d   :  { %v2880_v49 = vadd.f32 %v6603_v4, %v2879_v8  ;;  %v2919_v42 = vmul.f32 %v6767_v47, %v6730_v40  ;;  %vm2881_vm7 = vweird.f32 %v6543_v32  ;;  %vm2882_vm8 = vweird.f32 %v6603_v4 }
 0x60e   :  { %v2851_v24 = vmul.f32 %v4744_v57, %v2850_v28  ;;  %v2860_v9 = vor.u32 1.1754944e-38, %v2859_v61  ;;  %vm6792_vm9 = vmor %vm2881_vm7, %vm2882_vm8  ;;  %v2885_v27 = vand.u32 2147483647, %v6543_v32  ;;  %v2887_v15 = vand.u32 2147483648, %v6543_v32 }
 0x60f   :  { %3492 = vrot.lane.b32.xlu0 %v2833_v33, %s4919_s9  ;;  %v2893_v2 = vmul.f32 %v6684_v10, %v2892_v29  ;;  %vm2858_vm10 = vcmp.eq.f32.partialorder %v2857_v26, 8.507059e+37  ;;  %v2884_v63 = vsel %vm6792_vm9, %v6603_v4, %v2880_v49  ;;  %4751 = vrcp.f32 %v6720_v44 }
 0x610   :  { %v2852_v22 = vadd.f32 %v4744_v57, %v2851_v24  ;;  %v2888_v8 = vor.u32 1.1754944e-38, %v2887_v15  ;;  %vm2886_vm11 = vcmp.eq.f32.partialorder %v2885_v27, 8.507059e+37  ;;  %v2920_v33 = vsub.f32 1.0, %v2919_v42 }
 0x611   :  { %v4748_v56 = vpop.eup %4747  ;;  %v6800_v28 = vpop.f32.mrf.mxu2  ;;  %vm2896_vm12 = vweird.f32 %v6684_v10  ;;  %v2934_v4 = vsub.f32 1.0, %v6632_v12  ;;  %v2906_v26 = vsub.f32 1.0, %v6777_v1  ;;  %vm2895_vm13 = vweird.f32 %v6617_v18 }
 0x612   :  { %v2863_v11 = vmul.f32 %v4748_v56, %v6748_v19  ;;  %8227 = vst [vmem:[#allocation17_spill] sm:$0xff] %v6800_v28  ;;  %v2856_v6 = vsel %vm6786_vm6, %v4744_v57, %v2852_v22  ;;  %v6807_v20 = vpop.f32.mrf.mxu3  ;;  %v6810_v29 = vpop.eup %4749  ;;  %v2889_v58 = vsel %vm2886_vm11, %v2888_v8, %v2884_v63  ;;  %v2894_v57 = vadd.f32 %v6684_v10, %v2893_v2  ;;  %vm6824_vm14 = vmor %vm2895_vm13, %vm2896_vm12 }
 0x613   :  { %8228 = vst [vmem:[#allocation20_spill] sm:$0xff] %v6807_v20  ;;  %v2861_v61 = vsel %vm2858_vm10, %v2860_v9, %v2856_v6  ;;  %v6818_v49 = vpop.f32.mrf.mxu1  ;;  %v2901_v22 = vand.u32 2147483648, %v6617_v18  ;;  %4753 = vrcp.f32 %v6800_v28  ;;  %v2899_v42 = vand.u32 2147483647, %v6617_v18 }
 0x614   :  { %v2864_v24 = vsub.f32 1.0, %v2863_v11  ;;  %3496 = vrot.lane.b32.xlu1 %v2861_v61, %s4919_s9  ;;  %3500 = vrot.lane.b32.xlu2 %v2889_v58, %s4919_s9  ;;  %8229 = vst [vmem:[#allocation70_spill] sm:$0xff] %v6818_v49  ;;  %vm2868_vm15 = vweird.f32 %v4748_v56  ;;  %vm2867_vm1 = vweird.f32 %v6748_v19  ;;  %v2871_v1 = vand.u32 2147483647, %v6748_v19 }
 0x615   :  { %v2873_v27 = vand.u32 2147483648, %v6748_v19  ;;  %v6833_v15 = vmul.f32 %v6810_v29, %v6762_v25  ;;  %4755 = vrcp.f32 %v6818_v49  ;;  %v2898_v2 = vsel %vm6824_vm14, %v6684_v10, %v2894_v57  ;;  %vm2869_vm2 = vmor %vm2867_vm1, %vm2868_vm15  ;;  %v6840_v6 = vpop.eup %4751 }
 0x616   :  { %v2865_v9 = vmul.f32 %v4748_v56, %v2864_v24  ;;  %v2921_v11 = vmul.f32 %v6767_v47, %v2920_v33  ;;  %v2902_v61 = vor.u32 1.1754944e-38, %v2901_v22  ;;  %vm2924_vm3 = vweird.f32 %v6767_v47 }
 0x617   :  { %v2874_v24 = vor.u32 1.1754944e-38, %v2873_v27  ;;  %vm2900_vm4 = vcmp.eq.f32.partialorder %v2899_v42, 8.507059e+37  ;;  %vm2872_vm5 = vcmp.eq.f32.partialorder %v2871_v1, 8.507059e+37  ;;  %vm2923_vm6 = vweird.f32 %v6730_v40 }
 0x618   :  { %v2866_v12 = vadd.f32 %v4748_v56, %v2865_v9  ;;  %v2922_v10 = vadd.f32 %v6767_v47, %v2921_v11  ;;  %v2903_v57 = vsel %vm2900_vm4, %v2902_v61, %v2898_v2  ;;  %v2927_v33 = vand.u32 2147483647, %v6730_v40  ;;  %vm6857_vm7 = vmor %vm2923_vm6, %vm2924_vm3  ;;  %v6870_v11 = vpop.f32.mrf.mxu0 }
 0x619   :  { %v6842_v63 = vpop.f32.mrf.mxu2  ;;  %v6851_v60 = vpop.eup %4753  ;;  %v2929_v42 = vand.u32 2147483648, %v6730_v40  ;;  %v2907_v27 = vmul.f32 %v6736_v36, %v2906_v26  ;;  %vm2910_vm8 = vweird.f32 %v6736_v36  ;;  %8236 = vst [vmem:[#allocation56_spill] sm:$0xff] %v6870_v11  ;;  %vm2909_vm10 = vweird.f32 %v6680_v0 }
 0x61a   :  { %8232 = vst [vmem:[#allocation19_spill] sm:$0xff] %v6842_v63  ;;  %v2870_v8 = vsel %vm2869_vm2, %v4748_v56, %v2866_v12  ;;  %4757 = vrcp.f32 %v6842_v63  ;;  %v6846_v58 = vpop.f32.mrf.mxu3  ;;  %v2947_v56 = vmul.f32 %v6840_v6, %v6720_v44  ;;  %v2962_v12 = vsub.f32 1.0, %v6833_v15  ;;  %vm6881_vm12 = vmor %vm2909_vm10, %vm2910_vm8 }
 0x61b   :  { %8233 = vst [vmem:[#allocation30_spill] sm:$0xff] %v6846_v58  ;;  %v2875_v9 = vsel %vm2872_vm5, %v2874_v24, %v2870_v8  ;;  %v2926_v1 = vsel %vm6857_vm7, %v6767_v47, %v2922_v10  ;;  %v6868_v2 = vpop.eup %4755  ;;  %v2930_v61 = vor.u32 1.1754944e-38, %v2929_v42  ;;  %v2913_v8 = vand.u32 2147483647, %v6680_v0 }
 0x61c   :  { %3502 = vrot.lane.b32.xlu1 %v2903_v57, %s4919_s9  ;;  %3498 = vrot.lane.b32.xlu0 %v2875_v9, %s4919_s9  ;;  %v2915_v24 = vand.u32 2147483648, %v6680_v0  ;;  %v2935_v57 = vmul.f32 %v6590_v30, %v2934_v4  ;;  %vm2928_vm9 = vcmp.eq.f32.partialorder %v2927_v33, 8.507059e+37  ;;  %v2908_v15 = vadd.f32 %v6736_v36, %v2907_v27 }
 0x61d   :  { %vm2938_vm11 = vweird.f32 %v6590_v30  ;;  %4759 = vrcp.f32 %v6807_v20  ;;  %v2931_v26 = vsel %vm2928_vm9, %v2930_v61, %v2926_v1  ;;  %vm2937_vm13 = vweird.f32 %v6535_v34 }
 0x61e   :  { %v2941_v4 = vand.u32 2147483647, %v6535_v34  ;;  %3506 = vrot.lane.b32.xlu2 %v2931_v26, %s4919_s9  ;;  %v2912_v22 = vsel %vm6881_vm12, %v6736_v36, %v2908_v15  ;;  %v2916_v42 = vor.u32 1.1754944e-38, %v2915_v24  ;;  %v2936_v1 = vadd.f32 %v6590_v30, %v2935_v57  ;;  %vm6904_vm14 = vmor %vm2937_vm13, %vm2938_vm11 }
 0x61f   :  { %v2948_v27 = vsub.f32 1.0, %v2947_v56  ;;  %v6898_v61 = vmul.f32 %v6851_v60, %v6800_v28  ;;  %vm2914_vm15 = vcmp.eq.f32.partialorder %v2913_v8, 8.507059e+37  ;;  %v2943_v10 = vand.u32 2147483648, %v6535_v34  ;;  %v6911_v24 = vpop.permute.xlu2 %3446 }
 0x620   :  { %v6878_v47 = vpop.eup %4757  ;;  %v2975_v36 = vmul.f32 %v6868_v2, %v6818_v49  ;;  %v2917_v56 = vsel %vm2914_vm15, %v2916_v42, %v2912_v22  ;;  %v2940_v57 = vsel %vm6904_vm14, %v6590_v30, %v2936_v1  ;;  %v2963_v8 = vmul.f32 %v6810_v29, %v2962_v12 }
 0x621   :  { %v3003_v9 = vmul.f32 %v6878_v47, %v6842_v63  ;;  %v6890_v33 = vpop.f32.mrf.mxu2  ;;  %vm2942_vm1 = vcmp.eq.f32.partialorder %v2941_v4, 8.507059e+37  ;;  %v2944_v0 = vor.u32 1.1754944e-38, %v2943_v10  ;;  %vm2965_vm2 = vweird.f32 %v6762_v25 }
 0x622   :  { %8239 = vst [vmem:[#allocation32_spill] sm:$0xff] %v6890_v33  ;;  %v6900_v40 = vpop.f32.mrf.mxu3  ;;  %v2964_v34 = vadd.f32 %v6810_v29, %v2963_v8  ;;  %vm2966_vm3 = vweird.f32 %v6810_v29  ;;  %v2969_v32 = vand.u32 2147483647, %v6762_v25  ;;  %v2971_v22 = vand.u32 2147483648, %v6762_v25 }
 0x623   :  { %8240 = vst [vmem:[#allocation42_spill] sm:$0xff] %v6900_v40  ;;  %v3004_v15 = vsub.f32 1.0, %v3003_v9  ;;  %v6923_v42 = vpop.eup %4759  ;;  %4761 = vrcp.f32 %v6890_v33  ;;  %v6926_v30 = vpop.f32.mrf.mxu0  ;;  %v2945_v12 = vsel %vm2942_vm1, %v2944_v0, %v2940_v57  ;;  %vm2967_vm4 = vmor %vm2965_vm2, %vm2966_vm3  ;;  %v2949_v4 = vmul.f32 %v6840_v6, %v2948_v27 }
 0x624   :  { %3504 = vrot.lane.b32.xlu0 %v2917_v56, %s4919_s9  ;;  %8243 = vst [vmem:[#allocation34_spill] sm:$0xff] %v6926_v30  ;;  %vm2952_vm5 = vweird.f32 %v6840_v6  ;;  %3508 = vrot.lane.b32.xlu1 %v2945_v12, %s4919_s9  ;;  %v2968_v9 = vsel %vm2967_vm4, %v6810_v29, %v2964_v34  ;;  %v2972_v1 = vor.u32 1.1754944e-38, %v2971_v22  ;;  %vm2951_vm6 = vweird.f32 %v6720_v44 }
 0x625   :  { %v2955_v26 = vand.u32 2147483647, %v6720_v44  ;;  %vm2970_vm7 = vcmp.eq.f32.partialorder %v2969_v32, 8.507059e+37  ;;  %v2950_v10 = vadd.f32 %v6840_v6, %v2949_v4  ;;  %v2957_v56 = vand.u32 2147483648, %v6720_v44  ;;  %vm2953_vm8 = vmor %vm2951_vm6, %vm2952_vm5 }
 0x626   :  { %v3005_v0 = vmul.f32 %v6878_v47, %v3004_v15  ;;  %v2976_v57 = vsub.f32 1.0, %v2975_v36  ;;  %v2973_v27 = vsel %vm2970_vm7, %v2972_v1, %v2968_v9  ;;  %4763 = vrcp.f32 %v6870_v11 }
 0x627   :  { %v3045_v34 = vmul.f32 %v6923_v42, %v6807_v20  ;;  %3512 = vrot.lane.b32.xlu2 %v2973_v27, %s4919_s9  ;;  %v2954_v32 = vsel %vm2953_vm8, %v6840_v6, %v2950_v10  ;;  %v2958_v22 = vor.u32 1.1754944e-38, %v2957_v56  ;;  %v2990_v12 = vsub.f32 1.0, %v6898_v61  ;;  %v6954_v9 = vpop.permute.xlu2 %3452 }
 0x628   :  { %vm2956_vm9 = vcmp.eq.f32.partialorder %v2955_v26, 8.507059e+37  ;;  %v3006_v36 = vadd.f32 %v6878_v47, %v3005_v0  ;;  %vm3007_vm10 = vweird.f32 %v6842_v63  ;;  %vm3008_vm11 = vweird.f32 %v6878_v47 }
 0x629   :  { %v6937_v8 = vpop.f32.mrf.mxu2  ;;  %v6949_v15 = vpop.eup %4761  ;;  %v2959_v4 = vsel %vm2956_vm9, %v2958_v22, %v2954_v32  ;;  %vm6958_vm12 = vmor %vm3007_vm10, %vm3008_vm11  ;;  %v3011_v61 = vand.u32 2147483647, %v6842_v63  ;;  %v3013_v1 = vand.u32 2147483648, %v6842_v63  ;;  %v2977_v26 = vmul.f32 %v6868_v2, %v2976_v57 }
 0x62a   :  { %8244 = vst [vmem:[#allocation21_spill] sm:$0xff] %v6937_v8  ;;  %v6943_v29 = vpop.f32.mrf.mxu3  ;;  %4765 = vrcp.f32 %v6937_v8  ;;  %v3010_v10 = vsel %vm6958_vm12, %v6878_v47, %v3006_v36  ;;  %vm2980_vm13 = vweird.f32 %v6868_v2  ;;  %v2983_v56 = vand.u32 2147483647, %v6818_v49 }
 0x62b   :  { %8245 = vst [vmem:[#allocation35_spill] sm:$0xff] %v6943_v29  ;;  %4767 = vrcp.f32 %v6846_v58  ;;  %v3014_v0 = vor.u32 1.1754944e-38, %v3013_v1  ;;  %v2978_v27 = vadd.f32 %v6868_v2, %v2977_v26  ;;  %vm2979_vm15 = vweird.f32 %v6818_v49  ;;  %v6989_v44 = vpop.f32.mrf.mxu1 }
 0x62c   :  { %4769 = vrcp.f32 %v6943_v29  ;;  %3510 = vrot.lane.b32.xlu0 %v2959_v4, %s4919_s9  ;;  %v2985_v32 = vand.u32 2147483648, %v6818_v49  ;;  %v6973_v22 = vpop.eup %4763  ;;  %v3017_v57 = vmul.f32 %v6949_v15, %v6890_v33  ;;  %v6977_v4 = vpop.f32.mrf.mxu0  ;;  %vm3012_vm14 = vcmp.eq.f32.partialorder %v3011_v61, 8.507059e+37  ;;  %vm6979_vm1 = vmor %vm2979_vm15, %vm2980_vm13  ;;  %8251 = vst [vmem:[#allocation44_spill] sm:$0xff] %v6989_v44 }
 0x62d   :  { %8248 = vst [vmem:[#allocation36_spill] sm:$0xff] %v6977_v4  ;;  %v2991_v36 = vmul.f32 %v6851_v60, %v2990_v12  ;;  %v3046_v1 = vsub.f32 1.0, %v3045_v34  ;;  %v3015_v26 = vsel %vm3012_vm14, %v3014_v0, %v3010_v10  ;;  %v2982_v49 = vsel %vm6979_vm1, %v6868_v2, %v2978_v27 }
 0x62e   :  { %v2986_v25 = vor.u32 1.1754944e-38, %v2985_v32  ;;  %4771 = vrcp.f32 %v6900_v40  ;;  %vm2984_vm2 = vcmp.eq.f32.partialorder %v2983_v56, 8.507059e+37  ;;  %vm2994_vm3 = vweird.f32 %v6851_v60 }
 0x62f   :  { %3518 = vrot.lane.b32.xlu2 %v3015_v26, %s4919_s9  ;;  %v2992_v12 = vadd.f32 %v6851_v60, %v2991_v36  ;;  %v7003_v2 = vmul.f32 %v6973_v22, %v6870_v11  ;;  %4773 = vrcp.f32 %v6926_v30  ;;  %v3018_v0 = vsub.f32 1.0, %v3017_v57 }
 0x630   :  { %v6984_v6 = vpop.eup %4765  ;;  %v2987_v10 = vsel %vm2984_vm2, %v2986_v25, %v2982_v49  ;;  %vm2993_vm4 = vweird.f32 %v6800_v28  ;;  %v2997_v56 = vand.u32 2147483647, %v6800_v28  ;;  %4775 = vrcp.f32 %v6977_v4 }
 0x631   :  { %v6991_v63 = vpop.eup %4767  ;;  %v3031_v27 = vmul.f32 %v6984_v6, %v6937_v8  ;;  %3514 = vrot.lane.b32.xlu1 %v2987_v10, %s4919_s9  ;;  %vm7016_vm5 = vmor %vm2993_vm4, %vm2994_vm3  ;;  %v2999_v25 = vand.u32 2147483648, %v6800_v28  ;;  %v3047_v49 = vmul.f32 %v6923_v42, %v3046_v1  ;;  %vm3050_vm6 = vweird.f32 %v6923_v42 }
 0x632   :  { %v6995_v61 = vpop.f32.mrf.mxu2  ;;  %v6999_v34 = vpop.eup %4769  ;;  %v7013_v32 = vmul.f32 %v6991_v63, %v6846_v58  ;;  %v2996_v26 = vsel %vm7016_vm5, %v6851_v60, %v2992_v12  ;;  %v3053_v10 = vand.u32 2147483647, %v6807_v20  ;;  %vm3049_vm7 = vweird.f32 %v6807_v20 }
 0x633   :  { %8252 = vst [vmem:[#allocation37_spill] sm:$0xff] %v6995_v61  ;;  %v3087_v36 = vmul.f32 %v6999_v34, %v6943_v29  ;;  %v3000_v19 = vor.u32 1.1754944e-38, %v2999_v25  ;;  %v3048_v18 = vadd.f32 %v6923_v42, %v3047_v49  ;;  %v3055_v1 = vand.u32 2147483648, %v6807_v20  ;;  %vm7036_vm9 = vmor %vm3049_vm7, %vm3050_vm6 }
 0x634   :  { %v7034_v28 = vpop.eup %4771  ;;  %v3032_v43 = vsub.f32 1.0, %v3031_v27  ;;  %vm2998_vm8 = vcmp.eq.f32.partialorder %v2997_v56, 8.507059e+37  ;;  %v3019_v60 = vmul.f32 %v6949_v15, %v3018_v0  ;;  %vm3022_vm10 = vweird.f32 %v6949_v15  ;;  %v7047_v20 = vpop.f32.mrf.mxu0 }
 0x635   :  { %v7022_v57 = vpop.permute.xlu2 %3458  ;;  %v7042_v12 = vpop.eup %4773  ;;  %v3001_v47 = vsel %vm2998_vm8, %v3000_v19, %v2996_v26  ;;  %v3052_v25 = vsel %vm7036_vm9, %v6923_v42, %v3048_v18  ;;  %vm3054_vm11 = vcmp.eq.f32.partialorder %v3053_v10, 8.507059e+37  ;;  %v3056_v49 = vor.u32 1.1754944e-38, %v3055_v1  ;;  %8257 = vst [vmem:[#allocation28_spill] sm:$0xff] %v7047_v20 }
 0x636   :  { %3516 = vrot.lane.b32.xlu0 %v3001_v47, %s4919_s9  ;;  %v3020_v27 = vadd.f32 %v6949_v15, %v3019_v60  ;;  %vm3021_vm12 = vweird.f32 %v6890_v33  ;;  %v3025_v0 = vand.u32 2147483647, %v6890_v33  ;;  %v3027_v56 = vand.u32 2147483648, %v6890_v33  ;;  %v7056_v19 = vpop.eup %4775  ;;  %v7065_v10 = vpop.f32.mrf.mxu1 }
 0x637   :  { %v3088_v18 = vsub.f32 1.0, %v3087_v36  ;;  %v3057_v42 = vsel %vm3054_vm11, %v3056_v49, %v3052_v25  ;;  %vm7061_vm13 = vmor %vm3021_vm12, %vm3022_vm10  ;;  %8261 = vst [vmem:[#allocation39_spill] sm:$0xff] %v7065_v10  ;;  %v3060_v1 = vsub.f32 1.0, %v7013_v32  ;;  %v7070_v60 = vmul.f32 %v7034_v28, %v6900_v40  ;;  %v7088_v26 = vpop.permute.xlu0 %3444 }
 0x638   :  { %4777 = vrcp.f32 %v6989_v44  ;;  %3524 = vrot.lane.b32.xlu2 %v3057_v42, %s4919_s9  ;;  %v3024_v36 = vsel %vm7061_vm13, %v6949_v15, %v3020_v27  ;;  %v7079_v47 = vmul.f32 %v7042_v12, %v6926_v30  ;;  %v3028_v25 = vor.u32 1.1754944e-38, %v3027_v56 }
 0x639   :  { %4779 = vrcp.f32 %v7047_v20  ;;  %v3033_v32 = vmul.f32 %v6984_v6, %v3032_v43  ;;  %vm3026_vm15 = vcmp.eq.f32.partialorder %v3025_v0, 8.507059e+37  ;;  %vm3035_vm14 = vweird.f32 %v6937_v8 }
 0x63a   :  { %v7054_v23 = vpop.f32.mrf.mxu2  ;;  %vm3036_vm1 = vweird.f32 %v6984_v6  ;;  %v3039_v49 = vand.u32 2147483647, %v6937_v8  ;;  %v3029_v15 = vsel %vm3026_vm15, %v3028_v25, %v3024_v36  ;;  %v3041_v52 = vand.u32 2147483648, %v6937_v8 }
 0x63b   :  { %8258 = vst [vmem:[#allocation71_spill] sm:$0xff] %v7054_v23  ;;  %v3034_v27 = vadd.f32 %v6984_v6, %v3033_v32  ;;  %v3089_v56 = vmul.f32 %v6999_v34, %v3088_v18  ;;  %v3129_v43 = vmul.f32 %v7056_v19, %v6977_v4  ;;  %3520 = vrot.lane.b32.xlu1 %v3029_v15, %s4919_s9  ;;  %vm7096_vm2 = vmor %vm3035_vm14, %vm3036_vm1  ;;  %vm3091_vm3 = vweird.f32 %v6943_v29 }
 0x63c   :  { %vm3092_vm4 = vweird.f32 %v6999_v34  ;;  %v3095_v36 = vand.u32 2147483647, %v6943_v29  ;;  %v3042_v18 = vor.u32 1.1754944e-38, %v3041_v52  ;;  %v3097_v8 = vand.u32 2147483648, %v6943_v29  ;;  %v7121_v52 = vpop.f32.mrf.mxu3 }
 0x63d   :  { %v3038_v25 = vsel %vm7096_vm2, %v6984_v6, %v3034_v27  ;;  %v3090_v32 = vadd.f32 %v6999_v34, %v3089_v56  ;;  %v3074_v33 = vsub.f32 1.0, %v7070_v60  ;;  %4781 = vrcp.f32 %v7065_v10  ;;  %vm7112_vm6 = vmor %vm3091_vm3, %vm3092_vm4 }
 0x63e   :  { %v7086_v42 = vpop.permute.xlu2 %3464  ;;  %v7108_v15 = vpop.eup %4777  ;;  %vm3040_vm5 = vcmp.eq.f32.partialorder %v3039_v49, 8.507059e+37  ;;  %v3061_v5 = vmul.f32 %v6991_v63, %v3060_v1  ;;  %v3098_v56 = vor.u32 1.1754944e-38, %v3097_v8  ;;  %vm3064_vm7 = vweird.f32 %v6991_v63 }
 0x63f   :  { %v7117_v0 = vpop.permute.xlu1 %3448  ;;  %v7119_v6 = vpop.eup %4779  ;;  %v3043_v27 = vsel %vm3040_vm5, %v3042_v18, %v3038_v25  ;;  %v3094_v60 = vsel %vm7112_vm6, %v6999_v34, %v3090_v32  ;;  %vm3096_vm8 = vcmp.eq.f32.partialorder %v3095_v36, 8.507059e+37  ;;  %vm3063_vm9 = vweird.f32 %v6846_v58 }
 0x640   :  { %3522 = vrot.lane.b32.xlu0 %v3043_v27, %s4919_s9  ;;  %v3062_v49 = vadd.f32 %v6991_v63, %v3061_v5  ;;  %v3067_v1 = vand.u32 2147483647, %v6846_v58  ;;  %v3130_v53 = vsub.f32 1.0, %v3129_v43  ;;  %4783 = vrcp.f32 %v6995_v61  ;;  %vm7134_vm10 = vmor %vm3063_vm9, %vm3064_vm7  ;;  %v7139_v34 = vpop.f32.mrf.mxu1  ;;  %v7157_v27 = vpop.permute.xlu0 %3450 }
 0x641   :  { %v3099_v25 = vsel %vm3096_vm8, %v3098_v56, %v3094_v60  ;;  %v3069_v8 = vand.u32 2147483648, %v6846_v58  ;;  %8268 = vst [vmem:[#allocation41_spill] sm:$0xff] %v7139_v34  ;;  %v3116_v5 = vsub.f32 1.0, %v7079_v47  ;;  %v7144_v36 = vmul.f32 %v7108_v15, %v6989_v44 }
 0x642   :  { %v7131_v29 = vpop.f32.mrf.mxu2  ;;  %4785 = vrcp.f32 %v7121_v52  ;;  %3530 = vrot.lane.b32.xlu2 %v3099_v25, %s4919_s9  ;;  %v3066_v43 = vsel %vm7134_vm10, %v6991_v63, %v3062_v49  ;;  %v7155_v32 = vmul.f32 %v7119_v6, %v7047_v20  ;;  %vm3068_vm11 = vcmp.eq.f32.partialorder %v3067_v1, 8.507059e+37 }
 0x643   :  { %v3070_v47 = vor.u32 1.1754944e-38, %v3069_v8  ;;  %v3075_v60 = vmul.f32 %v7034_v28, %v3074_v33  ;;  %v7160_v56 = vpop.eup %4781  ;;  %vm3077_vm12 = vweird.f32 %v6900_v40  ;;  %vm3078_vm13 = vweird.f32 %v7034_v28 }
 0x644   :  { %v3081_v63 = vand.u32 2147483647, %v6900_v40  ;;  %v3083_v49 = vand.u32 2147483648, %v6900_v40  ;;  %v3131_v1 = vmul.f32 %v7056_v19, %v3130_v53  ;;  %vm3133_vm15 = vweird.f32 %v6977_v4  ;;  %vm3079_vm14 = vmor %vm3077_vm12, %vm3078_vm13 }
 0x645   :  { %v3071_v25 = vsel %vm3068_vm11, %v3070_v47, %v3066_v43  ;;  %v3076_v38 = vadd.f32 %v7034_v28, %v3075_v60  ;;  %vm3134_vm2 = vweird.f32 %v7056_v19  ;;  %v3137_v8 = vand.u32 2147483647, %v6977_v4 }
 0x646   :  { %v7151_v18 = vpop.permute.xlu2 %3470  ;;  %3526 = vrot.lane.b32.xlu1 %v3071_v25, %s4919_s9  ;;  %vm3082_vm1 = vcmp.eq.f32.partialorder %v3081_v63, 8.507059e+37  ;;  %v3084_v33 = vor.u32 1.1754944e-38, %v3083_v49  ;;  %v7172_v58 = vpop.eup %4783  ;;  %v3132_v43 = vadd.f32 %v7056_v19, %v3131_v1  ;;  %v3139_v47 = vand.u32 2147483648, %v6977_v4  ;;  %vm7187_vm3 = vmor %vm3133_vm15, %vm3134_vm2 }
 0x647   :  { %8269 = vst [vmem:[#allocation29_spill] sm:$0xff] %v7151_v18  ;;  %v3080_v40 = vsel %vm3079_vm14, %v7034_v28, %v3076_v38  ;;  %v8270_v53 = vsub.f32 1.0, %v7003_v2  ;;  %v3171_v63 = vmul.f32 %v7160_v56, %v7065_v10  ;;  %4787 = vrcp.f32 %v7054_v23  ;;  %v7192_v38 = vpop.permute.xlu1 %3454 }
 0x648   :  { %v7180_v25 = vpop.eup %4785  ;;  %v3085_v49 = vsel %vm3082_vm1, %v3084_v33, %v3080_v40  ;;  %vm3105_vm4 = vweird.f32 %v6870_v11  ;;  %v3136_v2 = vsel %vm7187_vm3, %v7056_v19, %v3132_v43  ;;  %v3140_v1 = vor.u32 1.1754944e-38, %v3139_v47  ;;  %v7214_v47 = vpop.f32.mrf.mxu1 }
 0x649   :  { %v3103_v60 = vmul.f32 %v6973_v22, %v8270_v53  ;;  %3528 = vrot.lane.b32.xlu0 %v3085_v49, %s4919_s9  ;;  %vm3106_vm5 = vweird.f32 %v6973_v22  ;;  %4789 = vrcp.f32 %v7139_v34  ;;  %vm3138_vm6 = vcmp.eq.f32.partialorder %v3137_v8, 8.507059e+37  ;;  %8277 = vst [vmem:[#allocation45_spill] sm:$0xff] %v7214_v47  ;;  %v7216_v8 = vpop.f32.mrf.mxu3  ;;  %v7223_v59 = vpop.permute.xlu0 %3456 }
 0x64a   :  { %vm7201_vm7 = vmor %vm3105_vm4, %vm3106_vm5  ;;  %v3109_v33 = vand.u32 2147483647, %v6870_v11  ;;  %v3111_v49 = vand.u32 2147483648, %v6870_v11  ;;  %v7207_v4 = vpop.f32.mrf.mxu2  ;;  %v3141_v19 = vsel %vm3138_vm6, %v3140_v1, %v3136_v2  ;;  %v3172_v1 = vsub.f32 1.0, %v3171_v63 }
 0x64b   :  { %v3104_v53 = vadd.f32 %v6973_v22, %v3103_v60  ;;  %8275 = vst [vmem:[#allocation43_spill] sm:$0xff] %v7207_v4  ;;  %v3144_v60 = vsub.f32 1.0, %v7155_v32  ;;  %3536 = vrot.lane.b32.xlu2 %v3141_v19, %s4919_s9  ;;  %v7220_v51 = vpop.f32.mrf.mxu0  ;;  %4791 = vrcp.f32 %v7207_v4  ;;  %vm3120_vm9 = vweird.f32 %v7042_v12 }
 0x64c   :  { %v3112_v46 = vor.u32 1.1754944e-38, %v3111_v49  ;;  %vm3110_vm8 = vcmp.eq.f32.partialorder %v3109_v33, 8.507059e+37  ;;  %4793 = vrcp.f32 %v7214_v47  ;;  %vm3119_vm10 = vweird.f32 %v6926_v30 }
 0x64d   :  { %v3108_v43 = vsel %vm7201_vm7, %v6973_v22, %v3104_v53  ;;  %v3117_v22 = vmul.f32 %v7042_v12, %v3116_v5  ;;  %v7227_v2 = vpop.eup %4787  ;;  %v3123_v40 = vand.u32 2147483647, %v6926_v30  ;;  %v3125_v33 = vand.u32 2147483648, %v6926_v30  ;;  %vm7244_vm11 = vmor %vm3119_vm10, %vm3120_vm9 }
 0x64e   :  { %v7209_v28 = vpop.permute.xlu2 %3476  ;;  %v3113_v53 = vsel %vm3110_vm8, %v3112_v46, %v3108_v43  ;;  %v3213_v5 = vmul.f32 %v7172_v58, %v6995_v61  ;;  %v7242_v46 = vmul.f32 %v7180_v25, %v7121_v52  ;;  %v3145_v19 = vmul.f32 %v7119_v6, %v3144_v60 }
 0x64f   :  { %8276 = vst [vmem:[#allocation65_spill] sm:$0xff] %v7209_v28  ;;  %3532 = vrot.lane.b32.xlu1 %v3113_v53, %s4919_s9  ;;  %v3118_v32 = vadd.f32 %v7042_v12, %v3117_v22  ;;  %v7236_v49 = vpop.eup %4789  ;;  %vm3148_vm12 = vweird.f32 %v7119_v6  ;;  %v3126_v22 = vor.u32 1.1754944e-38, %v3125_v33  ;;  %v3151_v53 = vand.u32 2147483647, %v7047_v20  ;;  %v7258_v35 = vpop.permute.xlu1 %3460 }
 0x650   :  { %v3153_v11 = vand.u32 2147483648, %v7047_v20  ;;  %vm3124_vm13 = vcmp.eq.f32.partialorder %v3123_v40, 8.507059e+37  ;;  %v3146_v30 = vadd.f32 %v7119_v6, %v3145_v19  ;;  %vm3147_vm15 = vweird.f32 %v7047_v20 }
 0x651   :  { %v3122_v43 = vsel %vm7244_vm11, %v7042_v12, %v3118_v32  ;;  %v3173_v28 = vmul.f32 %v7160_v56, %v3172_v1  ;;  %v7262_v50 = vpop.eup %4791  ;;  %v7266_v12 = vmul.f32 %v7227_v2, %v7054_v23  ;;  %v3185_v32 = vmul.f32 %v7236_v49, %v7139_v34  ;;  %vm7272_vm14 = vmor %vm3147_vm15, %vm3148_vm12  ;;  %v7293_v31 = vpop.f32.mrf.mxu3 }
 0x652   :  { %v3127_v40 = vsel %vm3124_vm13, %v3126_v22, %v3122_v43  ;;  %vm3176_vm1 = vweird.f32 %v7160_v56  ;;  %v7277_v1 = vpop.eup %4793  ;;  %v3150_v63 = vsel %vm7272_vm14, %v7119_v6, %v3146_v30  ;;  %v3154_v19 = vor.u32 1.1754944e-38, %v3153_v11 }
 0x653   :  { %3534 = vrot.lane.b32.xlu0 %v3127_v40, %s4919_s9  ;;  %v3174_v20 = vadd.f32 %v7160_v56, %v3173_v28  ;;  %vm3175_vm2 = vweird.f32 %v7065_v10  ;;  %v3255_v43 = vmul.f32 %v7262_v50, %v7207_v4  ;;  %vm3152_vm3 = vcmp.eq.f32.partialorder %v3151_v53, 8.507059e+37  ;;  %v7298_v28 = vpop.f32.mrf.mxu0 }
 0x654   :  { %vm7287_vm4 = vmor %vm3175_vm2, %vm3176_vm1  ;;  %v3181_v40 = vand.u32 2147483648, %v7065_v10  ;;  %v3214_v30 = vsub.f32 1.0, %v3213_v5  ;;  %v3155_v11 = vsel %vm3152_vm3, %v3154_v19, %v3150_v63  ;;  %4795 = vrcp.f32 %v7131_v29 }
 0x655   :  { %v3178_v6 = vsel %vm7287_vm4, %v7160_v56, %v3174_v20  ;;  %v3186_v7 = vsub.f32 1.0, %v3185_v32  ;;  %v7308_v5 = vmul.f32 %v7277_v1, %v7214_v47  ;;  %4797 = vrcp.f32 %v7293_v31 }
 0x656   :  { %v7260_v60 = vpop.permute.xlu2 %3482  ;;  %v3182_v18 = vor.u32 1.1754944e-38, %v3181_v40  ;;  %v3256_v20 = vsub.f32 1.0, %v3255_v43  ;;  %4799 = vrcp.f32 %v7298_v28  ;;  %v8285_v63 = vsub.f32 1.0, %v7144_v36 }
 0x657   :  { %8280 = vst [vmem:[#allocation46_spill] sm:$0xff] %v7260_v60  ;;  %v3179_v60 = vand.u32 2147483647, %v7065_v10  ;;  %3538 = vrot.lane.b32.xlu1 %v3155_v11, %s4919_s9  ;;  %v7304_v10 = vpop.permute.xlu0 %3462  ;;  %vm3162_vm6 = vweird.f32 %v7108_v15  ;;  %v3165_v32 = vand.u32 2147483647, %v6989_v44  ;;  %v3167_v22 = vand.u32 2147483648, %v6989_v44 }
 0x658   :  { %v3159_v19 = vmul.f32 %v7108_v15, %v8285_v63  ;;  %vm3161_vm7 = vweird.f32 %v6989_v44  ;;  %vm3217_vm8 = vweird.f32 %v6995_v61  ;;  %vm3218_vm9 = vweird.f32 %v7172_v58 }
 0x659   :  { %vm3180_vm5 = vcmp.eq.f32.partialorder %v3179_v60, 8.507059e+37  ;;  %v3215_v60 = vmul.f32 %v7172_v58, %v3214_v30  ;;  %vm3163_vm10 = vmor %vm3161_vm7, %vm3162_vm6  ;;  %v3168_v36 = vor.u32 1.1754944e-38, %v3167_v22  ;;  %v3223_v30 = vand.u32 2147483648, %v6995_v61 }
 0x65a   :  { %v3183_v56 = vsel %vm3180_vm5, %v3182_v18, %v3178_v6  ;;  %v3160_v18 = vadd.f32 %v7108_v15, %v3159_v19  ;;  %v3221_v6 = vand.u32 2147483647, %v6995_v61  ;;  %v3257_v63 = vmul.f32 %v7262_v50, %v3256_v20  ;;  %vm7335_vm12 = vmor %vm3217_vm8, %vm3218_vm9 }
 0x65b   :  { %3542 = vrot.lane.b32.xlu2 %v3183_v56, %s4919_s9  ;;  %v3216_v11 = vadd.f32 %v7172_v58, %v3215_v60  ;;  %v7331_v56 = vpop.eup %4795  ;;  %vm3166_vm11 = vcmp.eq.f32.partialorder %v3165_v32, 8.507059e+37  ;;  %v3187_v33 = vmul.f32 %v7236_v49, %v3186_v7  ;;  %vm3189_vm13 = vweird.f32 %v7139_v34 }
 0x65c   :  { %v3164_v19 = vsel %vm3163_vm10, %v7108_v15, %v3160_v18  ;;  %v7340_v22 = vpop.eup %4797  ;;  %vm3190_vm15 = vweird.f32 %v7236_v49  ;;  %v3224_v15 = vor.u32 1.1754944e-38, %v3223_v30  ;;  %v3193_v7 = vand.u32 2147483647, %v7139_v34 }
 0x65d   :  { %v3169_v60 = vsel %vm3166_vm11, %v3168_v36, %v3164_v19  ;;  %v3220_v61 = vsel %vm7335_vm12, %v7172_v58, %v3216_v11  ;;  %v7347_v20 = vpop.eup %4799  ;;  %v3188_v32 = vadd.f32 %v7236_v49, %v3187_v33  ;;  %v3195_v18 = vand.u32 2147483648, %v7139_v34  ;;  %v7353_v36 = vpop.f32.mrf.mxu3  ;;  %vm3191_vm2 = vmor %vm3189_vm13, %vm3190_vm15 }
 0x65e   :  { %v7320_v40 = vpop.permute.xlu1 %3466  ;;  %v7322_v43 = vpop.permute.xlu2 %3488  ;;  %3540 = vrot.lane.b32.xlu0 %v3169_v60, %s4919_s9  ;;  %v7357_v58 = vmul.f32 %v7331_v56, %v7131_v29  ;;  %vm3259_vm14 = vweird.f32 %v7207_v4  ;;  %4801 = vrcp.f32 %v7216_v8  ;;  %vm3222_vm1 = vcmp.eq.f32.partialorder %v3221_v6, 8.507059e+37 }
 0x65f   :  { %8286 = vst [vmem:[#allocation48_spill] sm:$0xff] %v7322_v43  ;;  %v3297_v53 = vmul.f32 %v7340_v22, %v7293_v31  ;;  %v3225_v33 = vsel %vm3222_vm1, %v3224_v15, %v3220_v61  ;;  %v3192_v11 = vsel %vm3191_vm2, %v7236_v49, %v3188_v32  ;;  %v3196_v30 = vor.u32 1.1754944e-38, %v3195_v18  ;;  %v7364_v19 = vpop.permute.xlu0 %3468 }
 0x660   :  { %8289 = vst [vmem:[#allocation49_spill] sm:$0xff] %v7364_v19  ;;  %v3200_v60 = vsub.f32 1.0, %v7308_v5  ;;  %vm3194_vm3 = vcmp.eq.f32.partialorder %v3193_v7, 8.507059e+37  ;;  %4803 = vrcp.f32 %v7353_v36  ;;  %v3258_v34 = vadd.f32 %v7262_v50, %v3257_v63 }
 0x661   :  { %4805 = vrcp.f32 %v7220_v51  ;;  %v3197_v44 = vsel %vm3194_vm3, %v3196_v30, %v3192_v11  ;;  %vm3260_vm4 = vweird.f32 %v7262_v50  ;;  %v3263_v61 = vand.u32 2147483647, %v7207_v4  ;;  %v7400_v30 = vpop.f32.mrf.mxu0 }
 0x662   :  { %v7377_v49 = vmul.f32 %v7347_v20, %v7298_v28  ;;  %3544 = vrot.lane.b32.xlu1 %v3197_v44, %s4919_s9  ;;  %vm7382_vm5 = vmor %vm3259_vm14, %vm3260_vm4  ;;  %v3265_v63 = vand.u32 2147483648, %v7207_v4  ;;  %v8292_v15 = vsub.f32 1.0, %v7266_v12  ;;  %vm3232_vm6 = vweird.f32 %v7227_v2 }
 0x663   :  { %3548 = vrot.lane.b32.xlu2 %v3225_v33, %s4919_s9  ;;  %v3298_v18 = vsub.f32 1.0, %v3297_v53  ;;  %v3262_v44 = vsel %vm7382_vm5, %v7262_v50, %v3258_v34  ;;  %vm3231_vm7 = vweird.f32 %v7054_v23  ;;  %v3237_v33 = vand.u32 2147483648, %v7054_v23 }
 0x664   :  { %v3229_v32 = vmul.f32 %v7227_v2, %v8292_v15  ;;  %v7398_v11 = vpop.eup %4801  ;;  %v3266_v12 = vor.u32 1.1754944e-38, %v3265_v63  ;;  %v3235_v4 = vand.u32 2147483647, %v7054_v23  ;;  %vm3264_vm8 = vcmp.eq.f32.partialorder %v3263_v61, 8.507059e+37  ;;  %vm7405_vm9 = vmor %vm3231_vm7, %vm3232_vm6 }
 0x665   :  { %vm3203_vm10 = vweird.f32 %v7214_v47  ;;  %vm3204_vm11 = vweird.f32 %v7277_v1  ;;  %v3207_v50 = vand.u32 2147483647, %v7214_v47  ;;  %v3209_v61 = vand.u32 2147483648, %v7214_v47 }
 0x666   :  { %v7370_v6 = vpop.permute.xlu1 %3472  ;;  %v7391_v7 = vpop.permute.xlu2 %3494  ;;  %v3230_v15 = vadd.f32 %v7227_v2, %v3229_v32  ;;  %v3267_v5 = vsel %vm3264_vm8, %v3266_v12, %v3262_v44  ;;  %v3242_v23 = vsub.f32 1.0, %v7357_v58  ;;  %v7424_v43 = vmul.f32 %v7398_v11, %v7216_v8  ;;  %vm7428_vm12 = vmor %vm3203_vm10, %vm3204_vm11 }
 0x667   :  { %8293 = vst [vmem:[#allocation47_spill] sm:$0xff] %v7391_v7  ;;  %v3201_v7 = vmul.f32 %v7277_v1, %v3200_v60  ;;  %v7412_v34 = vpop.eup %4803  ;;  %v3238_v44 = vor.u32 1.1754944e-38, %v3237_v33  ;;  %4807 = vrcp.f32 %v7400_v30  ;;  %vm3236_vm13 = vcmp.eq.f32.partialorder %v3235_v4, 8.507059e+37 }
 0x668   :  { %v3234_v63 = vsel %vm7405_vm9, %v7227_v2, %v3230_v15  ;;  %v7419_v32 = vpop.eup %4805  ;;  %v3311_v19 = vmul.f32 %v7412_v34, %v7353_v36  ;;  %vm3208_vm15 = vcmp.eq.f32.partialorder %v3207_v50, 8.507059e+37  ;;  %v3299_v47 = vmul.f32 %v7340_v22, %v3298_v18 }
 0x669   :  { %v3202_v60 = vadd.f32 %v7277_v1, %v3201_v7  ;;  %v7432_v2 = vpop.permute.xlu0 %3474  ;;  %v3210_v7 = vor.u32 1.1754944e-38, %v3209_v61  ;;  %v3239_v33 = vsel %vm3236_vm13, %v3238_v44, %v3234_v63  ;;  %v3340_v45 = vsub.f32 1.0, %v7377_v49 }
 0x66a   :  { %8298 = vst [vmem:[#allocation50_spill] sm:$0xff] %v7432_v2  ;;  %v3312_v53 = vsub.f32 1.0, %v3311_v19  ;;  %v7444_v2 = vmul.f32 %v7419_v32, %v7220_v51  ;;  %3550 = vrot.lane.b32.xlu1 %v3239_v33, %s4919_s9  ;;  %vm3302_vm14 = vweird.f32 %v7340_v22  ;;  %vm3301_vm1 = vweird.f32 %v7293_v31 }
 0x66b   :  { %3554 = vrot.lane.b32.xlu2 %v3267_v5, %s4919_s9  ;;  %v3206_v58 = vsel %vm7428_vm12, %v7277_v1, %v3202_v60  ;;  %v3300_v1 = vadd.f32 %v7340_v22, %v3299_v47  ;;  %v3305_v19 = vand.u32 2147483647, %v7293_v31  ;;  %v3307_v18 = vand.u32 2147483648, %v7293_v31  ;;  %vm7455_vm2 = vmor %vm3301_vm1, %vm3302_vm14 }
 0x66c   :  { %v3211_v4 = vsel %vm3208_vm15, %v3210_v7, %v3206_v58  ;;  %v3313_v50 = vmul.f32 %v7412_v34, %v3312_v53  ;;  %v8301_v49 = vsub.f32 1.0, %v7242_v46  ;;  %vm3274_vm3 = vweird.f32 %v7180_v25  ;;  %v7473_v46 = vpop.f32.mrf.mxu0 }
 0x66d   :  { %3546 = vrot.lane.b32.xlu0 %v3211_v4, %s4919_s9  ;;  %v3277_v47 = vand.u32 2147483647, %v7121_v52  ;;  %v3304_v61 = vsel %vm7455_vm2, %v7340_v22, %v3300_v1  ;;  %v3308_v44 = vor.u32 1.1754944e-38, %v3307_v18  ;;  %vm3273_vm4 = vweird.f32 %v7121_v52  ;;  %v7471_v58 = vpop.eup %4807 }
 0x66e   :  { %v7439_v15 = vpop.permute.xlu1 %3478  ;;  %v3271_v63 = vmul.f32 %v7180_v25, %v8301_v49  ;;  %v7464_v60 = vpop.permute.xlu2 %3500  ;;  %v3279_v12 = vand.u32 2147483648, %v7121_v52  ;;  %vm3306_vm5 = vcmp.eq.f32.partialorder %v3305_v19, 8.507059e+37  ;;  %v3243_v33 = vmul.f32 %v7331_v56, %v3242_v23  ;;  %vm3275_vm7 = vmor %vm3273_vm4, %vm3274_vm3 }
 0x66f   :  { %vm7476_vm6 = vcmp.eq.f32.partialorder %v3277_v47, 8.507059e+37  ;;  %v3309_v4 = vsel %vm3306_vm5, %v3308_v44, %v3304_v61  ;;  %vm3246_vm8 = vweird.f32 %v7331_v56  ;;  %v3249_v1 = vand.u32 2147483647, %v7131_v29 }
 0x670   :  { %v3272_v7 = vadd.f32 %v7180_v25, %v3271_v63  ;;  %v3280_v22 = vor.u32 1.1754944e-38, %v3279_v12  ;;  %v3244_v19 = vadd.f32 %v7331_v56, %v3243_v33  ;;  %vm3245_vm9 = vweird.f32 %v7131_v29 }
 0x671   :  { %v3251_v5 = vand.u32 2147483648, %v7131_v29  ;;  %v3284_v23 = vsub.f32 1.0, %v7424_v43  ;;  %v3353_v63 = vmul.f32 %v7471_v58, %v7400_v30  ;;  %4809 = vrcp.f32 %v7473_v46  ;;  %vm3247_vm10 = vmor %vm3245_vm9, %vm3246_vm8 }
 0x672   :  { %v3276_v18 = vsel %vm3275_vm7, %v7180_v25, %v3272_v7  ;;  %v7496_v25 = vpop.permute.xlu0 %3480  ;;  %v3326_v61 = vsub.f32 1.0, %v7444_v2  ;;  %vm3315_vm11 = vweird.f32 %v7353_v36  ;;  %v3248_v44 = vsel %vm3247_vm10, %v7331_v56, %v3244_v19 }
 0x673   :  { %3560 = vrot.lane.b32.xlu2 %v3309_v4, %s4919_s9  ;;  %v3281_v47 = vsel %vm7476_vm6, %v3280_v22, %v3276_v18  ;;  %v3252_v43 = vor.u32 1.1754944e-38, %v3251_v5  ;;  %vm3250_vm12 = vcmp.eq.f32.partialorder %v3249_v1, 8.507059e+37  ;;  %v3341_v12 = vmul.f32 %v7347_v20, %v3340_v45 }
 0x674   :  { %3556 = vrot.lane.b32.xlu1 %v3281_v47, %s4919_s9  ;;  %vm3344_vm13 = vweird.f32 %v7347_v20  ;;  %v3347_v7 = vand.u32 2147483647, %v7298_v28  ;;  %vm3343_vm15 = vweird.f32 %v7298_v28  ;;  %v3349_v33 = vand.u32 2147483648, %v7298_v28 }
 0x675   :  { %v3253_v53 = vsel %vm3250_vm12, %v3252_v43, %v3248_v44  ;;  %v3314_v2 = vadd.f32 %v7412_v34, %v3313_v50  ;;  %v3354_v4 = vsub.f32 1.0, %v3353_v63  ;;  %v3342_v56 = vadd.f32 %v7347_v20, %v3341_v12  ;;  %vm3345_vm14 = vmor %vm3343_vm15, %vm3344_vm13 }
 0x676   :  { %v7488_v49 = vpop.permute.xlu1 %3484  ;;  %3552 = vrot.lane.b32.xlu0 %v3253_v53, %s4919_s9  ;;  %vm3316_vm1 = vweird.f32 %v7412_v34  ;;  %v3319_v45 = vand.u32 2147483647, %v7353_v36  ;;  %vm3348_vm2 = vcmp.eq.f32.partialorder %v3347_v7, 8.507059e+37  ;;  %v3350_v22 = vor.u32 1.1754944e-38, %v3349_v33 }
 0x677   :  { %vm7514_vm3 = vmor %vm3315_vm11, %vm3316_vm1  ;;  %v3321_v50 = vand.u32 2147483648, %v7353_v36  ;;  %v3285_v18 = vmul.f32 %v7398_v11, %v3284_v23  ;;  %v7522_v5 = vpop.eup %4809  ;;  %v3346_v63 = vsel %vm3345_vm14, %v7347_v20, %v3342_v56  ;;  %vm3287_vm4 = vweird.f32 %v7216_v8 }
 0x678   :  { %v7520_v19 = vpop.permute.xlu2 %3506  ;;  %v3318_v47 = vsel %vm7514_vm3, %v7412_v34, %v3314_v2  ;;  %vm3288_vm5 = vweird.f32 %v7398_v11  ;;  %v3351_v44 = vsel %vm3348_vm2, %v3350_v22, %v3346_v63  ;;  %v3291_v23 = vand.u32 2147483647, %v7216_v8 }
 0x679   :  { %v3322_v43 = vor.u32 1.1754944e-38, %v3321_v50  ;;  %v3286_v12 = vadd.f32 %v7398_v11, %v3285_v18  ;;  %vm3320_vm6 = vcmp.eq.f32.partialorder %v3319_v45, 8.507059e+37  ;;  %vm7533_vm7 = vmor %vm3287_vm4, %vm3288_vm5  ;;  %v3293_v20 = vand.u32 2147483648, %v7216_v8 }
 0x67a   :  { %v3367_v34 = vmul.f32 %v7522_v5, %v7473_v46  ;;  %v4920_v45 = vmov 0   ;;  %v3355_v22 = vmul.f32 %v7471_v58, %v3354_v4  ;;  %vm3358_vm8 = vweird.f32 %v7471_v58  ;;  %v7548_v1 = vpop.permute.xlu0 %3486 }
 0x67b   :  { %3566 = vrot.lane.b32.xlu2 %v3351_v44, %s4919_s9  ;;  %v3323_v53 = vsel %vm3320_vm6, %v3322_v43, %v3318_v47  ;;  %v3290_v33 = vsel %vm7533_vm7, %v7398_v11, %v3286_v12  ;;  %v3294_v56 = vor.u32 1.1754944e-38, %v3293_v20  ;;  %vm3292_vm9 = vcmp.eq.f32.partialorder %v3291_v23, 8.507059e+37  ;;  %4551 = vset.pattern.permute.xlu1 %v4920_v45 }
 0x67c   :  { %3562 = vrot.lane.b32.xlu1 %v3323_v53, %s4919_s9  ;;  %4550 = vset.pattern.permute.xlu2 %v4920_v45  ;;  %v3363_v50 = vand.u32 2147483648, %v7400_v30  ;;  %v3327_v18 = vmul.f32 %v7419_v32, %v3326_v61  ;;  %v3356_v63 = vadd.f32 %v7471_v58, %v3355_v22  ;;  %vm3357_vm10 = vweird.f32 %v7400_v30 }
 0x67d   :  { %4552 = vset.pattern.permute.xlu0 %v4920_v45  ;;  %v3295_v11 = vsel %vm3292_vm9, %v3294_v56, %v3290_v33  ;;  %v3361_v47 = vand.u32 2147483647, %v7400_v30  ;;  %v3368_v44 = vsub.f32 1.0, %v3367_v34  ;;  %vm3359_vm11 = vmor %vm3357_vm10, %vm3358_vm8  ;;  %vm3330_vm12 = vweird.f32 %v7419_v32 }
 0x67e   :  { %v7543_v2 = vpop.permute.xlu1 %3490  ;;  %3558 = vrot.lane.b32.xlu0 %v3295_v11, %s4919_s9  ;;  %v3328_v4 = vadd.f32 %v7419_v32, %v3327_v18  ;;  %v3636_v61 = vmul.f32 %v7088_v26, %v6129_v13  ;;  %v3360_v43 = vsel %vm3359_vm11, %v7471_v58, %v3356_v63  ;;  %v3335_v12 = vand.u32 2147483648, %v7220_v51 }
 0x67f   :  { %v3364_v23 = vor.u32 1.1754944e-38, %v3363_v50  ;;  %vm3329_vm13 = vweird.f32 %v7220_v51  ;;  %v3333_v7 = vand.u32 2147483647, %v7220_v51  ;;  %vm3362_vm15 = vcmp.eq.f32.partialorder %v3361_v47, 8.507059e+37 }
 0x680   :  { %vm3331_vm14 = vmor %vm3329_vm13, %vm3330_vm12  ;;  %v3369_v34 = vmul.f32 %v7522_v5, %v3368_v44  ;;  %v3336_v13 = vor.u32 1.1754944e-38, %v3335_v12  ;;  %vm3372_vm2 = vweird.f32 %v7522_v5  ;;  %v3639_v22 = vmul.f32 %v7157_v27, %v6156_v14 }
 0x681   :  { %v7564_v20 = vpop.permute.xlu2 %3512  ;;  %v3365_v53 = vsel %vm3362_vm15, %v3364_v23, %v3360_v43  ;;  %v3332_v33 = vsel %vm3331_vm14, %v7419_v32, %v3328_v4  ;;  %vm3334_vm1 = vcmp.eq.f32.partialorder %v3333_v7, 8.507059e+37  ;;  %v3377_v32 = vand.u32 2147483648, %v7473_v46 }
 0x682   :  { %v3337_v58 = vsel %vm3334_vm1, %v3336_v13, %v3332_v33  ;;  %v7571_v56 = vpop.permute.xlu0 %3492  ;;  %v3370_v45 = vadd.f32 %v7522_v5, %v3369_v34  ;;  %vm3371_vm3 = vweird.f32 %v7473_v46  ;;  %v3375_v50 = vand.u32 2147483647, %v7473_v46  ;;  %v8312_v34 = vld [vmem:[#allocation54_spill] sm:$0xff]  ;;  %v8315_v33 = vld [vmem:[#allocation12_spill] sm:$0xff]  ;;  %v8316_v13 = vld [vmem:[#allocation65_spill] sm:$0xff] }
 0x683   :  { %3773 = vperm.xlu2 %4550, %v3636_v61   ;;  %v3637_v18 = vmul.f32 %v6911_v24, %v6145_v55  ;;  %vm3373_vm4 = vmor %vm3371_vm3, %vm3372_vm2  ;;  %v3378_v47 = vor.u32 1.1754944e-38, %v3377_v32  ;;  %v3641_v4 = vmul.f32 %v7192_v38, %v6126_v16  ;;  %v3640_v55 = vmul.f32 %v6954_v9, %v6120_v39  ;;  %v8317_v32 = vld [vmem:[#allocation13_spill] sm:$0xff] }
 0x684   :  { %3568 = vrot.lane.b32.xlu1 %v3365_v53, %s4919_s9  ;;  %v3374_v11 = vsel %vm3373_vm4, %v7522_v5, %v3370_v45  ;;  %vm3376_vm5 = vcmp.eq.f32.partialorder %v3375_v50, 8.507059e+37  ;;  %v3638_v24 = vmul.f32 %v7117_v0, %v6165_v54  ;;  %v3644_v61 = vmul.f32 %v7258_v35, %v6211_v21  ;;  %v8314_v53 = vld [vmem:[#allocation50_spill] sm:$0xff] }
 0x685   :  { %v3379_v44 = vsel %vm3376_vm5, %v3378_v47, %v3374_v11  ;;  %v3642_v16 = vmul.f32 %v7223_v59, %v6199_v62  ;;  %v3643_v39 = vmul.f32 %v7022_v57, %v6256_v17  ;;  %v3647_v9 = vmul.f32 %v7320_v40, %v6390_v37  ;;  %v8308_v57 = vld [vmem:[#allocation61_spill] sm:$0xff]  ;;  %v8319_v47 = vld [vmem:[#allocation22_spill] sm:$0xff] }
 0x686   :  { %v7569_v26 = vpop.permute.xlu1 %3496  ;;  %3564 = vrot.lane.b32.xlu0 %v3337_v58, %s4919_s9  ;;  %v3645_v21 = vmul.f32 %v7304_v10, %v6263_v48  ;;  %v3646_v62 = vmul.f32 %v7086_v42, %v6322_v41  ;;  %v3650_v17 = vmul.f32 %v7370_v6, %v6422_v3  ;;  %v8309_v37 = vld [vmem:[#allocation49_spill] sm:$0xff]  ;;  %v8310_v10 = vld [vmem:[#allocation62_spill] sm:$0xff]  ;;  %v3653_v41 = vmul.f32 %v7439_v15, %v8312_v34  ;;  %v8313_v42 = vld [vmem:[#allocation23_spill] sm:$0xff] }
 0x687   :  { %v3648_v38 = vmul.f32 %v8309_v37, %v8308_v57  ;;  %v8311_v40 = vld [vmem:[#allocation29_spill] sm:$0xff]  ;;  %v3651_v3 = vmul.f32 %v8314_v53, %v8313_v42  ;;  %v3652_v58 = vmul.f32 %v8316_v13, %v8315_v33  ;;  %v3656_v50 = vmul.f32 %v7488_v49, %v8317_v32  ;;  %v8330_v53 = vld [vmem:[#allocation40_spill] sm:$0xff]  ;;  %v8332_v32 = vld [vmem:[#allocation14_spill] sm:$0xff] }
 0x688   :  { %v3649_v23 = vmul.f32 %v8311_v40, %v8310_v10  ;;  %v8326_v37 = vld [vmem:[#allocation25_spill] sm:$0xff]  ;;  %v8331_v33 = vld [vmem:[#allocation24_spill] sm:$0xff]  ;;  %vm3969_vm6 = vcmask 130112   ;;  %vm3973_vm7 = vcmask 195712   ;;  %vm3977_vm8 = vcmask 261312  }
 0x689   :  { %v7584_v63 = vpop.permute.xlu2 %3518  ;;  %v3664_v13 = vmul.f32 %v7464_v60, %v8331_v33  ;;  %v8335_v60 = vld [vmem:[#allocation19_spill] sm:$0xff]  ;;  %vm4084_vm9 = vcmask 1041409   ;;  %vm4086_vm10 = vcmask 1042434   ;;  %vm4088_vm11 = vcmask 1043459  }
 0x68a   :  { %vm4090_vm12 = vcmask 1044484   ;;  %vm4092_vm13 = vcmask 1045509   ;;  %vm4094_vm15 = vcmask 1046534   ;;  %vm4096_vm14 = vcmask 1047559  }
 0x68b   :  { %3782 = vperm.xlu2 %4550, %v3639_v22  }
 0x68c   :  { %3776 = vperm.xlu1 %4551, %v3637_v18   ;;  %v8318_v18 = vld [vmem:[#allocation63_spill] sm:$0xff] }
 0x68d   :  { %v3654_v15 = vmul.f32 %v7496_v25, %v8318_v18  ;;  %v8333_v18 = vld [vmem:[#allocation68_spill] sm:$0xff] }
 0x68e   :  { %v7586_v14 = vpop.permute.xlu0 %3498  ;;  %3570 = vrot.lane.b32.xlu0 %v3379_v44, %s4919_s9  ;;  %v7589_v27 = vpop.permute.xlu1 %3502  ;;  %v8320_v44 = vld [vmem:[#allocation46_spill] sm:$0xff] }
 0x692   :  { %v7597_v5 = vpop.permute.xlu2 %3524 }
 0x693   :  { %3788 = vperm.xlu2 %4550, %v3641_v4   ;;  %v3655_v4 = vmul.f32 %v8320_v44, %v8319_v47 }
 0x694   :  { %3785 = vperm.xlu1 %4551, %v3640_v55   ;;  %v8321_v55 = vld [vmem:[#allocation26_spill] sm:$0xff] }
 0x696   :  { %3779 = vperm.xlu0 %4552, %v3638_v24   ;;  %v7601_v43 = vpop.permute.xlu0 %3504  ;;  %v7603_v12 = vpop.permute.xlu1 %3508  ;;  %v3659_v24 = vmul.f32 %v7543_v2, %v8321_v55  ;;  %v3660_v2 = vmul.f32 %v7571_v56, %v8326_v37  ;;  %v3673_v55 = vmul.f32 %v7584_v63, %v8335_v60 }
 0x69b   :  { %3797 = vperm.xlu2 %4550, %v3644_v61  }
 0x69c   :  { %3791 = vperm.xlu1 %4551, %v3642_v16   ;;  %v7609_v54 = vpop.permute.xlu2 %3530 }
 0x69e   :  { %3794 = vperm.xlu0 %4552, %v3643_v39   ;;  %v7615_v35 = vpop.permute.xlu0 %3510  ;;  %v8322_v39 = vld [vmem:[#allocation64_spill] sm:$0xff] }
 0x69f   :  { %v3657_v49 = vmul.f32 %v7548_v1, %v8322_v39  ;;  %v8327_v1 = vld [vmem:[#allocation15_spill] sm:$0xff]  ;;  %v8337_v39 = vld [vmem:[#allocation17_spill] sm:$0xff] }
 0x6a3   :  { %3806 = vperm.xlu2 %4550, %v3647_v9   ;;  %v7617_v0 = vpop.permute.xlu1 %3514  ;;  %v8323_v9 = vld [vmem:[#allocation18_spill] sm:$0xff] }
 0x6a4   :  { %3800 = vperm.xlu1 %4551, %v3645_v21   ;;  %v8324_v21 = vld [vmem:[#allocation48_spill] sm:$0xff] }
 0x6a5   :  { %v7623_v59 = vpop.permute.xlu2 %3536 }
 0x6a6   :  { %3803 = vperm.xlu0 %4552, %v3646_v62   ;;  %v3658_v62 = vmul.f32 %v8324_v21, %v8323_v9 }
 0x6a8   :  { %v3517_v48 = vpop.permute.xlu0 %3516 }
 0x6ab   :  { %3815 = vperm.xlu2 %4550, %v3650_v17   ;;  %v8325_v17 = vld [vmem:[#allocation27_spill] sm:$0xff] }
 0x6ac   :  { %3809 = vperm.xlu1 %4551, %v3648_v38   ;;  %v3662_v57 = vmul.f32 %v7569_v26, %v8325_v17  ;;  %v3663_v26 = vmul.f32 %v7586_v14, %v8330_v53  ;;  %v8339_v17 = vld [vmem:[#allocation69_spill] sm:$0xff] }
 0x6ad   :  { %v7629_v7 = vpop.permute.xlu1 %3520 }
 0x6ae   :  { %3812 = vperm.xlu0 %4552, %v3649_v23   ;;  %v8328_v23 = vld [vmem:[#allocation47_spill] sm:$0xff] }
 0x6af   :  { %v3661_v34 = vmul.f32 %v8328_v23, %v8327_v1 }
 0x6b2   :  { %v7639_v45 = vpop.permute.xlu0 %3522 }
 0x6b3   :  { %3824 = vperm.xlu2 %4550, %v3653_v41   ;;  %v8329_v41 = vld [vmem:[#allocation38_spill] sm:$0xff] }
 0x6b4   :  { %3818 = vperm.xlu1 %4551, %v3651_v3   ;;  %v3665_v42 = vmul.f32 %v7589_v27, %v8329_v41  ;;  %v3666_v27 = vmul.f32 %v7601_v43, %v8333_v18  ;;  %v8343_v41 = vld [vmem:[#allocation70_spill] sm:$0xff]  ;;  %v8347_v18 = vld [vmem:[#allocation56_spill] sm:$0xff] }
 0x6b5   :  { %v7635_v6 = vpop.permute.xlu2 %3542 }
 0x6b6   :  { %3821 = vperm.xlu0 %4552, %v3652_v58  }
 0x6b8   :  { %v7641_v22 = vpop.permute.xlu1 %3526 }
 0x6bb   :  { %3833 = vperm.xlu2 %4550, %v3656_v50   ;;  %v7653_v61 = vpop.permute.xlu0 %3528  ;;  %v3668_v50 = vmul.f32 %v7603_v12, %v8332_v32  ;;  %v8346_v32 = vlaneseq }
 0x6bc   :  { %3827 = vperm.xlu1 %4551, %v3654_v15   ;;  %v8334_v15 = vld [vmem:[#allocation16_spill] sm:$0xff] }
 0x6bd   :  { %v7647_v11 = vpop.permute.xlu2 %3548  ;;  %v3667_v47 = vmul.f32 %v7520_v19, %v8334_v15  ;;  %v8338_v19 = vld [vmem:[#allocation20_spill] sm:$0xff] }
 0x6be   :  { %3830 = vperm.xlu0 %4552, %v3655_v4   ;;  %v3676_v21 = vmul.f32 %v7597_v5, %v8338_v19  ;;  %v8342_v5 = vld [vmem:[#allocation30_spill] sm:$0xff] }
 0x6c1   :  { %v7655_v16 = vpop.permute.xlu1 %3532 }
 0x6c3   :  { %3842 = vperm.xlu2 %4550, %v3659_v24   ;;  %v8336_v24 = vld [vmem:[#allocation67_spill] sm:$0xff] }
 0x6c4   :  { %3836 = vperm.xlu1 %4551, %v3657_v49   ;;  %v3669_v12 = vmul.f32 %v7615_v35, %v8336_v24  ;;  %v3672_v49 = vmul.f32 %v3517_v48, %v8337_v39  ;;  %v8340_v35 = vld [vmem:[#allocation32_spill] sm:$0xff]  ;;  %v8341_v48 = vld [vmem:[#allocation21_spill] sm:$0xff] }
 0x6c5   :  { %v7659_v25 = vpop.permute.xlu2 %3554  ;;  %v3535_v38 = vpop.permute.xlu0 %3534  ;;  %v3674_v37 = vmul.f32 %v7629_v7, %v8340_v35  ;;  %v3675_v1 = vmul.f32 %v7639_v45, %v8341_v48  ;;  %v8344_v7 = vld [vmem:[#allocation34_spill] sm:$0xff]  ;;  %v8352_v35 = vld [vmem:[#allocation39_spill] sm:$0xff] }
 0x6c6   :  { %3839 = vperm.xlu0 %4552, %v3658_v62   ;;  %v8345_v45 = vld [vmem:[#allocation42_spill] sm:$0xff] }
 0x6c9   :  { %v7667_v10 = vpop.permute.xlu1 %3538 }
 0x6cb   :  { %3851 = vperm.xlu2 %4550, %v3662_v57   ;;  %v3670_v57 = vmul.f32 %v7564_v20, %v8339_v17  ;;  %v8351_v17 = vld [vmem:[#allocation41_spill] sm:$0xff] }
 0x6cc   :  { %3845 = vperm.xlu1 %4551, %v3660_v2  }
 0x6cd   :  { %v7669_v40 = vpop.permute.xlu2 %3560 }
 0x6ce   :  { %3848 = vperm.xlu0 %4552, %v3661_v34   ;;  %v3677_v34 = vmul.f32 %v7641_v22, %v8342_v5  ;;  %v7728_v22 = vand.u32 127, %v8346_v32 }
 0x6d0   :  { %v3541_v56 = vpop.permute.xlu0 %3540 }
 0x6d3   :  { %3860 = vperm.xlu2 %4550, %v3665_v42   ;;  %v3671_v42 = vmul.f32 %v7617_v0, %v8343_v41  ;;  %v3680_v0 = vmul.f32 %v7655_v16, %v8347_v18 }
 0x6d4   :  { %3854 = vperm.xlu1 %4551, %v3663_v26   ;;  %v7681_v58 = vpop.permute.xlu1 %3544  ;;  %v3681_v26 = vmul.f32 %v3535_v38, %v8344_v7 }
 0x6d5   :  { %v7677_v3 = vpop.permute.xlu2 %3566 }
 0x6d6   :  { %3857 = vperm.xlu0 %4552, %v3664_v13   ;;  %v3678_v13 = vmul.f32 %v7653_v61, %v8345_v45  ;;  %v8354_v45 = vld [vmem:[#allocation45_spill] sm:$0xff] }
 0x6db   :  { %3869 = vperm.xlu2 %4550, %v3668_v50  }
 0x6dc   :  { %3863 = vperm.xlu1 %4551, %v3666_v27   ;;  %v7689_v44 = vpop.permute.xlu1 %3550  ;;  %v7735_v27 = vadd.s32 4294967288, %v7728_v22 }
 0x6dd   :  { %v3774_v14 = vpop.permute.xlu2 %3773 }
 0x6de   :  { %3866 = vperm.xlu0 %4552, %v3667_v47   ;;  %v3966_v15 = vperm.slane %v3774_v14, %v7728_v22  ;;  %v8348_v47 = vld [vmem:[#allocation44_spill] sm:$0xff]  ;;  %v7750_v14 = vadd.s32 4294967280, %v7728_v22 }
 0x6df   :  { %v7691_v4 = vpop.permute.xlu0 %3546  ;;  %v3684_v60 = vmul.f32 %v3541_v56, %v8348_v47  ;;  %v7753_v56 = vadd.s32 4294967272, %v7728_v22 }
 0x6e3   :  { %3884 = vperm.xlu2 %4550, %v3673_v55  }
 0x6e4   :  { %3872 = vperm.xlu1 %4551, %v3669_v12   ;;  %v8349_v12 = vld [vmem:[#allocation35_spill] sm:$0xff] }
 0x6e5   :  { %v3783_v43 = vpop.permute.xlu2 %3782  ;;  %v3679_v39 = vmul.f32 %v7609_v54, %v8349_v12 }
 0x6e6   :  { %v7698_v9 = vpop.permute.xlu1 %3556  ;;  %3881 = vperm.xlu0 %4552, %v3672_v49   ;;  %v8350_v49 = vld [vmem:[#allocation36_spill] sm:$0xff] }
 0x6e7   :  { %v3682_v19 = vmul.f32 %v7623_v59, %v8350_v49  ;;  %v3976_v59 = vperm.slane %v3783_v43, %v7753_v56  ;;  %v3687_v43 = vmul.f32 %v7691_v4, %v8354_v45 }
 0x6e8   :  { %v7702_v62 = vpop.permute.xlu0 %3552 }
 0x6e9   :  { %v3690_v12 = vmul.f32 %v7702_v62, %v7131_v29  ;;  %v3694_v29 = vmul.f32 %v7669_v40, %v7293_v31 }
 0x6eb   :  { %3893 = vperm.xlu2 %4550, %v3676_v21  }
 0x6ec   :  { %3875 = vperm.xlu1 %4551, %v3670_v57   ;;  %v3686_v57 = vmul.f32 %v7681_v58, %v8351_v17  ;;  %v8357_v17 = vld [vmem:[#allocation43_spill] sm:$0xff] }
 0x6ed   :  { %v3789_v63 = vpop.permute.xlu2 %3788 }
 0x6ee   :  { %v7708_v2 = vpop.permute.xlu1 %3562  ;;  %3887 = vperm.xlu0 %4552, %v3674_v37   ;;  %v3685_v37 = vmul.f32 %v7635_v6, %v8352_v35  ;;  %v3980_v6 = vperm.slane %v3789_v63, %v7735_v27 }
 0x6f0   :  { %v7712_v23 = vpop.permute.xlu0 %3558 }
 0x6f3   :  { %3890 = vperm.xlu2 %4550, %v3675_v1  }
 0x6f4   :  { %3896 = vperm.xlu1 %4551, %v3677_v34   ;;  %v8353_v34 = vld [vmem:[#allocation28_spill] sm:$0xff] }
 0x6f5   :  { %v7716_v20 = vpop.permute.xlu2 %3797  ;;  %v3683_v41 = vmul.f32 %v7667_v10, %v8353_v34 }
 0x6f6   :  { %v7720_v53 = vpop.permute.xlu1 %3568  ;;  %3878 = vperm.xlu0 %4552, %v3671_v42  }
 0x6f8   :  { %v7723_v33 = vpop.permute.xlu0 %3564 }
 0x6f9   :  { %v3696_v49 = vmul.f32 %v7723_v33, %v7220_v51  ;;  %v3697_v51 = vmul.f32 %v7677_v3, %v7298_v28  ;;  %v3695_v33 = vmul.f32 %v7708_v2, %v7353_v36  ;;  %v3700_v3 = vld [vmem:[#allocation7] sm:$0xff] }
 0x6fb   :  { %3908 = vperm.xlu2 %4550, %v3681_v26  }
 0x6fc   :  { %3899 = vperm.xlu1 %4551, %v3678_v13  }
 0x6fd   :  { %v7730_v50 = vpop.permute.xlu2 %3806 }
 0x6fe   :  { %v3777_v38 = vpop.permute.xlu1 %3776  ;;  %3905 = vperm.xlu0 %4552, %v3680_v0   ;;  %v8355_v0 = vld [vmem:[#allocation37_spill] sm:$0xff] }
 0x6ff   :  { %v3968_v61 = vperm.slane %v3777_v38, %v7735_v27  ;;  %v3688_v10 = vmul.f32 %v7647_v11, %v8355_v0  ;;  %v3693_v11 = vmul.f32 %v7712_v23, %v7216_v8  ;;  %v3691_v8 = vmul.f32 %v7659_v25, %v8357_v17  ;;  %v3703_v25 = vld [vmem:[#allocation7 + $0x18] sm:$0xff] }
 0x700   :  { %v7741_v24 = vpop.permute.xlu0 %3570  ;;  %4121 = vmatpush.msra.mxu1 %v3703_v25  ;;  %v3991_v0 = vperm.slane %v7730_v50, %v7753_v56 }
 0x701   :  { %v3970_v55 = vsel %vm3969_vm6, %v3968_v61, %v3966_v15  ;;  %v8356_v15 = vld [vmem:[#allocation71_spill] sm:$0xff] }
 0x702   :  { %v3689_v61 = vmul.f32 %v7689_v44, %v8356_v15 }
 0x703   :  { %3917 = vperm.xlu2 %4550, %v3684_v60  }
 0x704   :  { %3902 = vperm.xlu1 %4551, %v3679_v39   ;;  %v3692_v39 = vmul.f32 %v7698_v9, %v7121_v52  ;;  %v3698_v52 = vmul.f32 %v7720_v53, %v7400_v30  ;;  %v3702_v30 = vld [vmem:[#allocation7 + $0x10] sm:$0xff]  ;;  %v3701_v53 = vld [vmem:[#allocation7 + $0x8] sm:$0xff] }
 0x705   :  { %v7745_v16 = vpop.permute.xlu2 %3815  ;;  %4122 = vmatpush.msra.mxu1 %v3702_v30 }
 0x706   :  { %v3786_v21 = vpop.permute.xlu1 %3785  ;;  %3911 = vperm.xlu0 %4552, %v3682_v19  }
 0x707   :  { %v3979_v1 = vperm.slane %v3786_v21, %v7728_v22  ;;  %4123 = vmatpush.msra.mxu1 %v3701_v53 }
 0x708   :  { %v3780_v54 = vpop.permute.xlu0 %3779 }
 0x709   :  { %v3972_v48 = vperm.slane %v3780_v54, %v7750_v14  ;;  %v3981_v13 = vsel %vm3969_vm6, %v3980_v6, %v3979_v1  ;;  %4124 = vmatpush.msra.mxu1 %v3700_v3 }
 0x70b   :  { %3923 = vperm.xlu2 %4550, %v3686_v57   ;;  %v3974_v5 = vsel %vm3973_vm7, %v3972_v48, %v3970_v55  ;;  %v3699_v57 = vmul.f32 %v7741_v24, %v7473_v46 }
 0x70c   :  { %3920 = vperm.xlu1 %4551, %v3685_v37   ;;  %v3978_v58 = vsel %vm3977_vm8, %v3976_v59, %v3974_v5  ;;  %v3986_v59 = vperm.slane %v7716_v20, %v7728_v22 }
 0x70d   :  { %v7766_v42 = vpop.permute.xlu2 %3824 }
 0x70e   :  { %v3792_v7 = vpop.permute.xlu1 %3791  ;;  %3914 = vperm.xlu0 %4552, %v3683_v41   ;;  %v4001_v6 = vperm.slane %v7766_v42, %v7735_v27 }
 0x70f   :  { %v3982_v26 = vperm.slane %v3792_v7, %v7750_v14 }
 0x710   :  { %v3795_v18 = vpop.permute.xlu0 %3794 }
 0x711   :  { %v3983_v32 = vsel %vm3973_vm7, %v3982_v26, %v3981_v13  ;;  %v3984_v38 = vperm.slane %v3795_v18, %v7753_v56 }
 0x713   :  { %3926 = vperm.xlu2 %4550, %v3687_v43   ;;  %v3985_v63 = vsel %vm3977_vm8, %v3984_v38, %v3983_v32 }
 0x714   :  { %3929 = vperm.xlu1 %4551, %v3688_v10   ;;  %v7781_v4 = vsel %vm4084_vm9, %v3985_v63, %v3978_v58  ;;  %v3996_v63 = vperm.slane %v7745_v16, %v7750_v14 }
 0x715   :  { %v7783_v60 = vpop.permute.xlu2 %3833 }
 0x716   :  { %v3801_v47 = vpop.permute.xlu1 %3800  ;;  %3932 = vperm.xlu0 %4552, %v3689_v61   ;;  %v4007_v7 = vperm.slane %v7783_v60, %v7728_v22 }
 0x717   :  { %v3987_v2 = vperm.slane %v3801_v47, %v7735_v27 }
 0x718   :  { %v3804_v55 = vpop.permute.xlu0 %3803 }
 0x719   :  { %v3989_v46 = vperm.slane %v3804_v55, %v7750_v14  ;;  %v3988_v24 = vsel %vm3969_vm6, %v3987_v2, %v3986_v59 }
 0x71b   :  { %3944 = vperm.xlu2 %4550, %v3693_v11   ;;  %v3990_v26 = vsel %vm3973_vm7, %v3989_v46, %v3988_v24 }
 0x71c   :  { %3935 = vperm.xlu1 %4551, %v3690_v12   ;;  %v3992_v47 = vsel %vm3977_vm8, %v3991_v0, %v3990_v26 }
 0x71d   :  { %v7793_v19 = vpop.permute.xlu2 %3842 }
 0x71e   :  { %v3810_v44 = vpop.permute.xlu1 %3809  ;;  %3941 = vperm.xlu0 %4552, %v3692_v39   ;;  %v4012_v39 = vperm.slane %v7793_v19, %v7753_v56 }
 0x71f   :  { %v3993_v1 = vperm.slane %v3810_v44, %v7728_v22 }
 0x720   :  { %v3813_v21 = vpop.permute.xlu0 %3812 }
 0x721   :  { %v3994_v5 = vperm.slane %v3813_v21, %v7735_v27 }
 0x723   :  { %3953 = vperm.xlu2 %4550, %v3696_v49   ;;  %v3995_v42 = vsel %vm3969_vm6, %v3994_v5, %v3993_v1 }
 0x724   :  { %3938 = vperm.xlu1 %4551, %v3691_v8   ;;  %v3997_v11 = vsel %vm3973_vm7, %v3996_v63, %v3995_v42  ;;  %v4087_v8 = vsel %vm4086_vm10, %v3992_v47, %v7781_v4 }
 0x725   :  { %v7805_v23 = vpop.permute.xlu2 %3851 }
 0x726   :  { %v7799_v62 = vpop.permute.xlu1 %3818  ;;  %3947 = vperm.xlu0 %4552, %v3694_v29   ;;  %v4017_v44 = vperm.slane %v7805_v23, %v7750_v14 }
 0x727   :  { %v3998_v10 = vperm.slane %v7799_v62, %v7753_v56 }
 0x728   :  { %v3822_v9 = vpop.permute.xlu0 %3821 }
 0x729   :  { %v4000_v58 = vperm.slane %v3822_v9, %v7728_v22  ;;  %v3999_v49 = vsel %vm3977_vm8, %v3998_v10, %v3997_v11 }
 0x72b   :  { %3959 = vperm.xlu2 %4550, %v3698_v52   ;;  %v4002_v15 = vsel %vm3969_vm6, %v4001_v6, %v4000_v58 }
 0x72c   :  { %3956 = vperm.xlu1 %4551, %v3697_v51   ;;  %v4089_v51 = vsel %vm4088_vm11, %v3999_v49, %v4087_v8 }
 0x72d   :  { %v3861_v54 = vpop.permute.xlu2 %3860 }
 0x72e   :  { %v3828_v31 = vpop.permute.xlu1 %3827  ;;  %3950 = vperm.xlu0 %4552, %v3695_v33   ;;  %v4022_v21 = vperm.slane %v3861_v54, %v7735_v27 }
 0x72f   :  { %v4003_v20 = vperm.slane %v3828_v31, %v7750_v14 }
 0x730   :  { %v3831_v40 = vpop.permute.xlu0 %3830 }
 0x731   :  { %v4005_v61 = vperm.slane %v3831_v40, %v7753_v56  ;;  %v4004_v50 = vsel %vm3973_vm7, %v4003_v20, %v4002_v15 }
 0x733   :  { %v4006_v29 = vsel %vm3977_vm8, %v4005_v61, %v4004_v50 }
 0x734   :  { %3962 = vperm.xlu1 %4551, %v3699_v57   ;;  %v4091_v33 = vsel %vm4090_vm12, %v4006_v29, %v4089_v51 }
 0x735   :  { %v7811_v48 = vpop.permute.xlu2 %3869 }
 0x736   :  { %v3837_v28 = vpop.permute.xlu1 %3836  ;;  %v4028_v3 = vperm.slane %v7811_v48, %v7728_v22 }
 0x737   :  { %v4008_v34 = vperm.slane %v3837_v28, %v7735_v27 }
 0x738   :  { %v3840_v35 = vpop.permute.xlu0 %3839 }
 0x739   :  { %v4010_v45 = vperm.slane %v3840_v35, %v7750_v14  ;;  %v4009_v38 = vsel %vm3969_vm6, %v4008_v34, %v4007_v7 }
 0x73b   :  { %v4011_v55 = vsel %vm3973_vm7, %v4010_v45, %v4009_v38 }
 0x73c   :  { %v4013_v52 = vsel %vm3977_vm8, %v4012_v39, %v4011_v55 }
 0x73d   :  { %v3885_v43 = vpop.permute.xlu2 %3884  ;;  %v4093_v57 = vsel %vm4092_vm13, %v4013_v52, %v4091_v33 }
 0x73e   :  { %v3846_v37 = vpop.permute.xlu1 %3845  ;;  %v4036_v2 = vperm.slane %v3885_v43, %v7735_v27 }
 0x73f   :  { %v4014_v13 = vperm.slane %v3846_v37, %v7728_v22 }
 0x740   :  { %v3849_v36 = vpop.permute.xlu0 %3848 }
 0x741   :  { %v4015_v32 = vperm.slane %v3849_v36, %v7735_v27 }
 0x743   :  { %v4016_v12 = vsel %vm3969_vm6, %v4015_v32, %v4014_v13 }
 0x744   :  { %v4018_v19 = vsel %vm3973_vm7, %v4017_v44, %v4016_v12 }
 0x745   :  { %v3894_v40 = vpop.permute.xlu2 %3893 }
 0x746   :  { %v3855_v41 = vpop.permute.xlu1 %3854  ;;  %v4042_v8 = vperm.slane %v3894_v40, %v7728_v22 }
 0x747   :  { %v4019_v16 = vperm.slane %v3855_v41, %v7753_v56 }
 0x748   :  { %v3858_v18 = vpop.permute.xlu0 %3857 }
 0x749   :  { %v4021_v60 = vperm.slane %v3858_v18, %v7728_v22  ;;  %v4020_v23 = vsel %vm3977_vm8, %v4019_v16, %v4018_v19 }
 0x74a   :  { %v4095_v30 = vsel %vm4094_vm15, %v4020_v23, %v4093_v57 }
 0x74b   :  { %v4023_v9 = vsel %vm3969_vm6, %v4022_v21, %v4021_v60 }
 0x74d   :  { %v3891_v24 = vpop.permute.xlu2 %3890 }
 0x74e   :  { %v3864_v17 = vpop.permute.xlu1 %3863  ;;  %v4040_v26 = vperm.slane %v3891_v24, %v7753_v56 }
 0x74f   :  { %v4024_v62 = vperm.slane %v3864_v17, %v7750_v14 }
 0x750   :  { %v3867_v4 = vpop.permute.xlu0 %3866 }
 0x751   :  { %v4025_v25 = vsel %vm3973_vm7, %v4024_v62, %v4023_v9  ;;  %v4026_v31 = vperm.slane %v3867_v4, %v7753_v56 }
 0x753   :  { %v4027_v53 = vsel %vm3977_vm8, %v4026_v31, %v4025_v25 }
 0x754   :  { %v4097_v54 = vsel %vm4096_vm14, %v4027_v53, %v4095_v30 }
 0x755   :  { %4220 = vmatmul.msk.f32.vlgmr.msra.gmra.mxu1 %vm78_vm0, %v4097_v54  ;;  %v3909_v6 = vpop.permute.xlu2 %3908 }
 0x756   :  { %v3873_v28 = vpop.permute.xlu1 %3872  ;;  %v4050_v9 = vperm.slane %v3909_v6, %v7735_v27 }
 0x757   :  { %v4029_v35 = vperm.slane %v3873_v28, %v7735_v27 }
 0x758   :  { %v3882_v36 = vpop.permute.xlu0 %3881 }
 0x759   :  { %v4030_v37 = vsel %vm3969_vm6, %v4029_v35, %v4028_v3  ;;  %v4035_v59 = vperm.slane %v3882_v36, %v7728_v22 }
 0x75b   :  { %v4037_v46 = vsel %vm3969_vm6, %v4036_v2, %v4035_v59 }
 0x75d   :  { %v3918_v0 = vpop.permute.xlu2 %3917 }
 0x75e   :  { %v3876_v1 = vpop.permute.xlu1 %3875  ;;  %v4056_v29 = vperm.slane %v3918_v0, %v7728_v22 }
 0x75f   :  { %v4031_v5 = vperm.slane %v3876_v1, %v7750_v14 }
 0x760   :  { %v3888_v41 = vpop.permute.xlu0 %3887 }
 0x761   :  { %v4032_v34 = vsel %vm3973_vm7, %v4031_v5, %v4030_v37  ;;  %v4038_v48 = vperm.slane %v3888_v41, %v7750_v14 }
 0x763   :  { %v4039_v7 = vsel %vm3973_vm7, %v4038_v48, %v4037_v46 }
 0x764   :  { %v4041_v43 = vsel %vm3977_vm8, %v4040_v26, %v4039_v7 }
 0x765   :  { %v3924_v63 = vpop.permute.xlu2 %3923 }
 0x766   :  { %v3897_v58 = vpop.permute.xlu1 %3896  ;;  %v4059_v4 = vperm.slane %v3924_v63, %v7750_v14 }
 0x767   :  { %v4043_v39 = vperm.slane %v3897_v58, %v7735_v27 }
 0x768   :  { %v3879_v20 = vpop.permute.xlu0 %3878 }
 0x769   :  { %v4033_v45 = vperm.slane %v3879_v20, %v7753_v56  ;;  %v4044_v51 = vsel %vm3969_vm6, %v4043_v39, %v4042_v8 }
 0x76b   :  { %v4034_v13 = vsel %vm3977_vm8, %v4033_v45, %v4032_v34 }
 0x76c   :  { %v4098_v32 = vsel %vm4084_vm9, %v4041_v43, %v4034_v13 }
 0x76d   :  { %v3927_v47 = vpop.permute.xlu2 %3926 }
 0x76e   :  { %v3900_v18 = vpop.permute.xlu1 %3899  ;;  %v4061_v24 = vperm.slane %v3927_v47, %v7753_v56 }
 0x76f   :  { %v4045_v17 = vperm.slane %v3900_v18, %v7750_v14 }
 0x770   :  { %v3906_v42 = vpop.permute.xlu0 %3905 }
 0x771   :  { %v4049_v62 = vperm.slane %v3906_v42, %v7728_v22  ;;  %v4046_v33 = vsel %vm3973_vm7, %v4045_v17, %v4044_v51 }
 0x773   :  { %v4051_v40 = vsel %vm3969_vm6, %v4050_v9, %v4049_v62 }
 0x775   :  { %v3945_v55 = vpop.permute.xlu2 %3944 }
 0x776   :  { %v3903_v10 = vpop.permute.xlu1 %3902  ;;  %v4071_v1 = vperm.slane %v3945_v55, %v7735_v27 }
 0x777   :  { %v4047_v52 = vperm.slane %v3903_v10, %v7753_v56 }
 0x778   :  { %v3912_v38 = vpop.permute.xlu0 %3911 }
 0x779   :  { %v4052_v19 = vperm.slane %v3912_v38, %v7750_v14  ;;  %v4048_v57 = vsel %vm3977_vm8, %v4047_v52, %v4046_v33 }
 0x77a   :  { %v4099_v34 = vsel %vm4086_vm10, %v4048_v57, %v4098_v32 }
 0x77b   :  { %v4053_v54 = vsel %vm3973_vm7, %v4052_v19, %v4051_v40 }
 0x77d   :  { %v3954_v49 = vpop.permute.xlu2 %3953 }
 0x77e   :  { %v3921_v15 = vpop.permute.xlu1 %3920  ;;  %v4077_v41 = vperm.slane %v3954_v49, %v7728_v22 }
 0x77f   :  { %v4057_v44 = vperm.slane %v3921_v15, %v7735_v27 }
 0x780   :  { %v3915_v61 = vpop.permute.xlu0 %3914 }
 0x781   :  { %v4058_v23 = vsel %vm3969_vm6, %v4057_v44, %v4056_v29  ;;  %v4054_v25 = vperm.slane %v3915_v61, %v7753_v56 }
 0x782   :  { %v4060_v28 = vsel %vm3973_vm7, %v4059_v4, %v4058_v23 }
 0x783   :  { %v4055_v37 = vsel %vm3977_vm8, %v4054_v25, %v4053_v54  ;;  %v4062_v6 = vsel %vm3977_vm8, %v4061_v24, %v4060_v28 }
 0x784   :  { %v4100_v7 = vsel %vm4088_vm11, %v4055_v37, %v4099_v34 }
 0x785   :  { %v3960_v48 = vpop.permute.xlu2 %3959  ;;  %v4101_v0 = vsel %vm4090_vm12, %v4062_v6, %v4100_v7 }
 0x786   :  { %v3930_v50 = vpop.permute.xlu1 %3929  ;;  %v4080_v13 = vperm.slane %v3960_v48, %v7750_v14 }
 0x787   :  { %v4063_v30 = vperm.slane %v3930_v50, %v7728_v22 }
 0x788   :  { %v3933_v60 = vpop.permute.xlu0 %3932 }
 0x789   :  { %v4064_v53 = vperm.slane %v3933_v60, %v7735_v27 }
 0x78b   :  { %v4065_v58 = vsel %vm3969_vm6, %v4064_v53, %v4063_v30 }
 0x78e   :  { %v3936_v11 = vpop.permute.xlu1 %3935 }
 0x78f   :  { %v4066_v3 = vperm.slane %v3936_v11, %v7750_v14 }
 0x790   :  { %v3942_v12 = vpop.permute.xlu0 %3941 }
 0x791   :  { %v4070_v35 = vperm.slane %v3942_v12, %v7728_v22  ;;  %v4067_v20 = vsel %vm3973_vm7, %v4066_v3, %v4065_v58 }
 0x793   :  { %v4072_v26 = vsel %vm3969_vm6, %v4071_v1, %v4070_v35 }
 0x796   :  { %v3939_v16 = vpop.permute.xlu1 %3938 }
 0x797   :  { %v4068_v36 = vperm.slane %v3939_v16, %v7753_v56 }
 0x798   :  { %v3948_v21 = vpop.permute.xlu0 %3947 }
 0x799   :  { %v4073_v2 = vperm.slane %v3948_v21, %v7750_v14  ;;  %v4069_v45 = vsel %vm3977_vm8, %v4068_v36, %v4067_v20  ;;  %v4554_v14 = vld [vmem:[%s7951_s4] ss:$0 sm:$0xff] }
 0x79a   :  { %v4102_v10 = vsel %vm4092_vm13, %v4069_v45, %v4101_v0 }
 0x79e   :  { %v3957_v31 = vpop.permute.xlu1 %3956 }
 0x79f   :  { %v4078_v59 = vperm.slane %v3957_v31, %v7735_v27  ;;  %v4074_v27 = vsel %vm3973_vm7, %v4073_v2, %v4072_v26 }
 0x7a0   :  { %v3951_v46 = vpop.permute.xlu0 %3950 }
 0x7a1   :  { %v4075_v5 = vperm.slane %v3951_v46, %v7753_v56  ;;  %v4079_v43 = vsel %vm3969_vm6, %v4078_v59, %v4077_v41 }
 0x7a2   :  { %v4081_v42 = vsel %vm3973_vm7, %v4080_v13, %v4079_v43 }
 0x7a3   :  { %v4076_v22 = vsel %vm3977_vm8, %v4075_v5, %v4074_v27 }
 0x7a4   :  { %v4103_v63 = vsel %vm4094_vm15, %v4076_v22, %v4102_v10 }
 0x7a6   :  { %v3963_v32 = vpop.permute.xlu1 %3962 }
 0x7a7   :  { %v4082_v18 = vperm.slane %v3963_v32, %v7753_v56 }
 0x7a9   :  { %v4083_v38 = vsel %vm3977_vm8, %v4082_v18, %v4081_v42 }
 0x7aa   :  { %v4104_v15 = vsel %vm4096_vm14, %v4083_v38, %v4103_v63 }
 0x7ab   :  { %4221 = vmatmul.msk.f32.gmra.mxu1 %vm78_vm0, %v4104_v15 }
 0x7d2   :  { %v4126_v61 = vpop.f32.mrf.mxu1 }
 0x7d3   :  { %v4127_v56 = vadd.f32 %v4554_v14, %v4126_v61 }
 0x7d5   :  { %4132 = vst.msk [vmem:[#allocation8] sm:$0xff] %vm78_vm0, %v4127_v56 }
 0x828   :  { %v4129_v47 = vpop.f32.mrf.mxu1 }
 0x829   :  { %v4130_v50 = vadd.f32 %v4554_v14, %v4129_v47 }
 0x82b   :  { %4133 = vst.msk [vmem:[#allocation8 + $0x8] sm:$0xff] %vm78_vm0, %v4130_v50 }
 0x82c   :  { %4146 = dma.vmem_to_hbm [thread:$0]  %s4139_s13, 256, %s4141_s16, [#allocation4], %s4914_s26, %s4914_s26, %s4915_s27  }
 0x82d   :  { %4911 = dma.done.wait [#allocation4], 256  }
 0x82e   :  { %4912 = vsyncadd [#allocation4], 4294967040 }
 0x82f   :  { %4151 = vsyncpa [#allocation3], 1 }
 0x830   :  { %4152 = vsyncpa [#allocation6], 1 }
 0x831   :  { %4153 = vsyncpa [#allocation4], 1 }

</bundles_post_ra>
